<compile_context>
chip_gen: v5e
topology: v5e:2x2
jax: 0.10.0
libtpu: 0.0.40
codegen_flags: <defaults>
</compile_context>

<pallas_src>
from functools import partial

import jax
import jax.numpy as jnp
import numpy as np
from jax.experimental import pallas as pl
from jax.experimental.pallas import tpu as pltpu


def _vq_kernel(x_ref, embt_ref, neg2_embt_ref, csq_ref,
               quant_ref, codes_ref, dist_ref, loss_ref,
               *, n_valid, tile_n):
    """One TILE_N-row slab of the VQ forward.

    x_ref:         (TILE_N, dim)    f32   flattened inputs
    embt_ref:      (K, dim)         f32   codebook rows (embed.T)
    neg2_embt_ref: (K, dim)         f32   -2 * embed.T (folds scale into the MXU op)
    csq_ref:       (1, K)           f32   ||c||^2 per codebook entry (precomputed)
    quant_ref:     (TILE_N, dim)    f32   gathered codebook vectors
    codes_ref:     (TILE_N, 1)      i32   argmin indices
    dist_ref:      (TILE_N, K)      f32   full squared-L2 distance matrix (returned)
    loss_ref:      (8, 128)         f32   per-tile partial sum of (quant - x)^2
    """
    x = x_ref[...].astype(jnp.float32)                    # (T, dim)
    embt = embt_ref[...].astype(jnp.float32)              # (K, dim)
    neg2 = neg2_embt_ref[...].astype(jnp.float32)         # (K, dim)
    csq = csq_ref[...].astype(jnp.float32)                # (1, K)

    t, _ = x.shape
    k = embt.shape[0]

    # squared-L2 distances: ||x||^2 + ||c||^2 - 2 x.c  (the -2 is baked into neg2)
    r_sq = jnp.sum(x * x, axis=-1, keepdims=True)                         # (T, 1)
    cross_m2 = jax.lax.dot_general(                                       # (T, K) = -2 x @ embed
        x, neg2, (((1,), (1,)), ((), ())),
        preferred_element_type=jnp.float32)
    dist = r_sq + csq + cross_m2                                          # (T, K)

    # argmin with first-hit tie breaking (matches torch (-dist).max(1))
    lane_idx = jax.lax.broadcasted_iota(jnp.int32, (t, k), 1)
    min_d = jnp.min(dist, axis=-1, keepdims=True)
    code = jnp.min(jnp.where(dist == min_d, lane_idx, k), axis=-1)        # (T,)

    # embedding lookup via one-hot matmul (MXU-friendly gather)
    onehot = (lane_idx == code[:, None]).astype(jnp.float32)              # (T, K)
    quant = jnp.dot(onehot, embt, preferred_element_type=jnp.float32)     # (T, dim)

    quant_ref[...] = quant.astype(quant_ref.dtype)
    codes_ref[...] = code[:, None].astype(jnp.int32)
    dist_ref[...] = dist.astype(dist_ref.dtype)

    # commitment-loss partial sum; mask rows past the true N only when padding exists
    diff = quant - x
    if n_valid % tile_n == 0:
        psum = jnp.sum(diff * diff)
    else:
        row = pl.program_id(0) * tile_n + jax.lax.broadcasted_iota(
            jnp.int32, (t, 1), 0)
        valid = (row < n_valid).astype(jnp.float32)
        psum = jnp.sum(diff * diff * valid)
    loss_ref[...] = jnp.broadcast_to(psum, loss_ref.shape).astype(jnp.float32)


@partial(jax.jit, static_argnames=("tile_n",))
def quantize2_forward(input_lr, embed, *, tile_n=256):
    """Quantize2.forward (eval mode, rtn_embed_sort=False).

    input_lr: (..., dim) float32 (e.g. (B, H, W, dim) channels-last)
    embed:    (dim, n_embed) float32 — Quantize2.embed (= codebook.weight)
    returns (quantize (same shape as input), diff (scalar),
             embed_ind (input.shape[:-1], int32), dist ((N, n_embed), float32))
    """
    dim, n_embed = embed.shape
    assert input_lr.shape[-1] == dim
    lead_shape = input_lr.shape[:-1]

    x_flat = input_lr.reshape(-1, dim).astype(jnp.float32)
    n = x_flat.shape[0]

    num_tiles = pl.cdiv(n, tile_n)
    n_pad = num_tiles * tile_n
    if n_pad != n:
        x_flat = jnp.pad(x_flat, ((0, n_pad - n), (0, 0)))

    # precompute codebook-side terms once (wrapper), feed MXU-ready operands
    embed_t = embed.T.astype(jnp.float32)                     # (K, dim)
    neg2_embed_t = (-2.0) * embed_t                           # (K, dim)
    c_sq = jnp.sum(embed * embed, axis=0, keepdims=True)      # (1, K)

    kernel = partial(_vq_kernel, n_valid=n, tile_n=tile_n)

    quant_flat, codes, dist, loss_partials = pl.pallas_call(
        kernel,
        grid=(num_tiles,),
        in_specs=[
            pl.BlockSpec((tile_n, dim), lambda i: (i, 0)),       # x tile
            pl.BlockSpec((n_embed, dim), lambda i: (0, 0)),      # embed.T (resident)
            pl.BlockSpec((n_embed, dim), lambda i: (0, 0)),      # -2*embed.T (resident)
            pl.BlockSpec((1, n_embed), lambda i: (0, 0)),        # ||c||^2 (resident)
        ],
        out_specs=[
            pl.BlockSpec((tile_n, dim), lambda i: (i, 0)),       # quant
            pl.BlockSpec((tile_n, 1), lambda i: (i, 0)),         # codes
            pl.BlockSpec((tile_n, n_embed), lambda i: (i, 0)),   # dist (lane-dense)
            pl.BlockSpec((8, 128), lambda i: (i, 0)),            # loss partial sums
        ],
        out_shape=(
            jax.ShapeDtypeStruct((n_pad, dim), jnp.float32),
            jax.ShapeDtypeStruct((n_pad, 1), jnp.int32),
            jax.ShapeDtypeStruct((n_pad, n_embed), jnp.float32),
            jax.ShapeDtypeStruct((num_tiles * 8, 128), jnp.float32),
        ),
        compiler_params=pltpu.CompilerParams(
            dimension_semantics=("parallel",),
            vmem_limit_bytes=32 << 20,
        ),
    )(x_flat, embed_t, neg2_embed_t, c_sq)

    quant_flat = quant_flat[:n]
    codes = codes[:n, 0]
    dist = dist[:n]

    # each tile wrote its scalar partial broadcast over its (8,128) block
    loss = jnp.sum(loss_partials.reshape(num_tiles, -1)[:, 0]) / jnp.float32(n * dim)

    q = quant_flat.reshape(input_lr.shape)
    quantize = input_lr + jax.lax.stop_gradient(q - input_lr)   # straight-through
    embed_ind = codes.reshape(lead_shape)                        # int32 (torch: int64)
    return quantize, loss, embed_ind, dist


def _reference_forward(x, embed):
    """Pure-numpy reference of the PyTorch eval-mode Quantize2.forward."""
    x = np.asarray(x, np.float32)
    e = np.asarray(embed, np.float32)                 # (dim, K)
    dim, _ = e.shape
    flat = x.reshape(-1, dim)
    dist = (flat ** 2).sum(1, keepdims=True) - 2.0 * flat @ e + (e ** 2).sum(0, keepdims=True)
    ind = dist.argmin(1)
    quant = e.T[ind]                                  # (N, dim)
    diff = float(((quant - flat) ** 2).mean())
    q = quant.reshape(x.shape)                        # straight-through forward value
    return q, diff, ind.reshape(x.shape[:-1]), dist


if __name__ == "__main__":
    # Module config: dim=64, n_embed=512; input latents (B, H, W, dim) = (2, 16, 16, 64)
    B, H, W = 2, 16, 16
    dim, n_embed = 64, 512

    key = jax.random.PRNGKey(0)
    kx, ke = jax.random.split(key)
    x = jax.random.normal(kx, (B, H, W, dim), dtype=jnp.float32)
    # nn.Embedding(dim, n_embed).weight is (dim, n_embed); the module's
    # uniform_(-1/n, -1/n) init is a degenerate constant, so use a random
    # ("trained") codebook to make the check meaningful.
    embed = jax.random.normal(ke, (dim, n_embed), dtype=jnp.float32)

    quantize, diff, embed_ind, dist = quantize2_forward(x, embed, tile_n=256)
    quantize, diff, embed_ind, dist = jax.block_until_ready(
        (quantize, diff, embed_ind, dist))

    # sanity check against a numpy reference of the PyTorch semantics
    q_ref, diff_ref, ind_ref, dist_ref = _reference_forward(x, embed)
    assert quantize.shape == (B, H, W, dim)
    assert embed_ind.shape == (B, H, W)
    assert dist.shape == (B * H * W, n_embed)
    np.testing.assert_allclose(np.asarray(quantize), q_ref, rtol=1e-5, atol=1e-5)
    np.testing.assert_allclose(float(diff), diff_ref, rtol=1e-5, atol=1e-6)
    np.testing.assert_array_equal(np.asarray(embed_ind), ind_ref)
    np.testing.assert_allclose(np.asarray(dist), dist_ref, rtol=1e-4, atol=1e-3)

    print("KERNEL_OK")
</pallas_src>

<mosaic_0001>
module attributes {stable_mosaic.version = 11 : i64} {
  func.func @_vq_kernel(%arg0: i32, %arg1: memref<256x64xf32, #tpu.memory_space<vmem>>, %arg2: memref<512x64xf32, #tpu.memory_space<vmem>>, %arg3: memref<512x64xf32, #tpu.memory_space<vmem>>, %arg4: memref<1x512xf32, #tpu.memory_space<vmem>>, %arg5: memref<256x64xf32, #tpu.memory_space<vmem>>, %arg6: memref<256x1xi32, #tpu.memory_space<vmem>>, %arg7: memref<256x512xf32, #tpu.memory_space<vmem>>, %arg8: memref<8x128xf32, #tpu.memory_space<vmem>>) attributes {dimension_semantics = [#tpu.dimension_semantics<parallel>], iteration_bounds = array<i64: 2>, scalar_prefetch = 0 : i64, scratch_operands = 0 : i64, tpu.core_type = #tpu.core_type<tc>, window_params = [{transform_indices = @transform_0, window_bounds = array<i64: 256, 64>}, {pipeline_mode = #tpu.pipeline_mode<synchronous>, transform_indices = @transform_1, window_bounds = array<i64: 512, 64>}, {pipeline_mode = #tpu.pipeline_mode<synchronous>, transform_indices = @transform_2, window_bounds = array<i64: 512, 64>}, {pipeline_mode = #tpu.pipeline_mode<synchronous>, transform_indices = @transform_3, window_bounds = array<i64: 1, 512>}, {transform_indices = @transform_4, window_bounds = array<i64: 256, 64>}, {transform_indices = @transform_5, window_bounds = array<i64: 256, 1>}, {transform_indices = @transform_6, window_bounds = array<i64: 256, 512>}, {transform_indices = @transform_7, window_bounds = array<i64: 8, 128>}]} {
    %c0 = arith.constant 0 : index
    %c0_0 = arith.constant 0 : index
    %0 = vector.load %arg1[%c0, %c0_0] : memref<256x64xf32, #tpu.memory_space<vmem>>, vector<256x64xf32>
    %c0_1 = arith.constant 0 : index
    %c0_2 = arith.constant 0 : index
    %1 = vector.load %arg2[%c0_1, %c0_2] : memref<512x64xf32, #tpu.memory_space<vmem>>, vector<512x64xf32>
    %c0_3 = arith.constant 0 : index
    %c0_4 = arith.constant 0 : index
    %2 = vector.load %arg3[%c0_3, %c0_4] : memref<512x64xf32, #tpu.memory_space<vmem>>, vector<512x64xf32>
    %c0_5 = arith.constant 0 : index
    %c0_6 = arith.constant 0 : index
    %3 = vector.load %arg4[%c0_5, %c0_6] : memref<1x512xf32, #tpu.memory_space<vmem>>, vector<1x512xf32>
    %4 = arith.mulf %0, %0 : vector<256x64xf32>
    %cst = arith.constant dense<0.000000e+00> : vector<256xf32>
    %5 = vector.multi_reduction <add>, %4, %cst [1] : vector<256x64xf32> to vector<256xf32>
    %6 = vector.shape_cast %5 : vector<256xf32> to vector<256x1xf32>
    %cst_7 = arith.constant dense<0.000000e+00> : vector<256x512xf32>
    %7 = tpu.matmul %0, %2, %cst_7 {dimension_numbers = #tpu.dot_dimension_numbers<[1], [1], [0], [0], [0, 0, 1, 0], [], []>} : vector<256x64xf32>, vector<512x64xf32>, vector<256x512xf32> -> vector<256x512xf32>
    %8 = vector.broadcast %6 : vector<256x1xf32> to vector<256x512xf32>
    %9 = vector.broadcast %3 : vector<1x512xf32> to vector<256x512xf32>
    %10 = arith.addf %8, %9 : vector<256x512xf32>
    %11 = arith.addf %10, %7 : vector<256x512xf32>
    %12 = tpu.iota {dimensions = array<i32: 1>} : vector<256x512xi32>
    %cst_8 = arith.constant dense<0x7F800000> : vector<256xf32>
    %13 = vector.multi_reduction <minimumf>, %11, %cst_8 [1] : vector<256x512xf32> to vector<256xf32>
    %14 = vector.shape_cast %13 : vector<256xf32> to vector<256x1xf32>
    %15 = vector.broadcast %14 : vector<256x1xf32> to vector<256x512xf32>
    %16 = arith.cmpf oeq, %11, %15 : vector<256x512xf32>
    %c512_i32 = arith.constant 512 : i32
    %17 = vector.broadcast %c512_i32 : i32 to vector<256x512xi32>
    %18 = arith.select %16, %12, %17 : vector<256x512xi1>, vector<256x512xi32>
    %cst_9 = arith.constant dense<2147483647> : vector<256xi32>
    %19 = vector.multi_reduction <minsi>, %18, %cst_9 [1] : vector<256x512xi32> to vector<256xi32>
    %20 = vector.shape_cast %19 : vector<256xi32> to vector<256x1xi32>
    %21 = vector.broadcast %20 : vector<256x1xi32> to vector<256x512xi32>
    %22 = arith.cmpi eq, %12, %21 : vector<256x512xi32>
    %23 = arith.extui %22 : vector<256x512xi1> to vector<256x512xi32>
    %24 = arith.sitofp %23 : vector<256x512xi32> to vector<256x512xf32>
    %cst_10 = arith.constant dense<0.000000e+00> : vector<256x64xf32>
    %25 = tpu.matmul %24, %1, %cst_10 {dimension_numbers = #tpu.dot_dimension_numbers<[1], [0], [0], [1], [0, 0, 1, 1], [], []>} : vector<256x512xf32>, vector<512x64xf32>, vector<256x64xf32> -> vector<256x64xf32>
    %c0_11 = arith.constant 0 : index
    %c0_12 = arith.constant 0 : index
    %26 = vector.load %arg5[%c0_11, %c0_12] : memref<256x64xf32, #tpu.memory_space<vmem>>, vector<256x64xf32>
    tpu.vector_store %arg5[%c0_11, %c0_12], %25 {strides = array<i32>} : memref<256x64xf32, #tpu.memory_space<vmem>>, vector<256x64xf32>,
    %27 = vector.shape_cast %19 : vector<256xi32> to vector<256x1xi32>
    %c0_13 = arith.constant 0 : index
    %c0_14 = arith.constant 0 : index
    %28 = vector.load %arg6[%c0_13, %c0_14] : memref<256x1xi32, #tpu.memory_space<vmem>>, vector<256x1xi32>
    tpu.vector_store %arg6[%c0_13, %c0_14], %27 {strides = array<i32>} : memref<256x1xi32, #tpu.memory_space<vmem>>, vector<256x1xi32>,
    %c0_15 = arith.constant 0 : index
    %c0_16 = arith.constant 0 : index
    %29 = vector.load %arg7[%c0_15, %c0_16] : memref<256x512xf32, #tpu.memory_space<vmem>>, vector<256x512xf32>
    tpu.vector_store %arg7[%c0_15, %c0_16], %11 {strides = array<i32>} : memref<256x512xf32, #tpu.memory_space<vmem>>, vector<256x512xf32>,
    %30 = arith.subf %25, %0 : vector<256x64xf32>
    %31 = arith.mulf %30, %30 : vector<256x64xf32>
    %32 = vector.shape_cast %31 : vector<256x64xf32> to vector<1x256x64xf32>
    %cst_17 = arith.constant dense<0.000000e+00> : vector<1xf32>
    %33 = vector.multi_reduction <add>, %32, %cst_17 [1, 2] : vector<1x256x64xf32> to vector<1xf32>
    %34 = vector.shape_cast %33 : vector<1xf32> to vector<1x1x1xf32>
    %35 = vector.extract %34[0, 0, 0] : f32 from vector<1x1x1xf32>
    %36 = vector.broadcast %35 : f32 to vector<8x128xf32>
    %c0_18 = arith.constant 0 : index
    %c0_19 = arith.constant 0 : index
    %37 = vector.load %arg8[%c0_18, %c0_19] : memref<8x128xf32, #tpu.memory_space<vmem>>, vector<8x128xf32>
    tpu.vector_store %arg8[%c0_18, %c0_19], %36 {strides = array<i32>} : memref<8x128xf32, #tpu.memory_space<vmem>>, vector<8x128xf32>,
    return
  }
  func.func @transform_0(%arg0: i32) -> (i32, i32) {
    %c0_i32 = arith.constant 0 : i32
    %c0_i32_0 = arith.constant 0 : i32
    return %arg0, %c0_i32 : i32, i32
  }
  func.func @transform_1(%arg0: i32) -> (i32, i32) {
    %c0_i32 = arith.constant 0 : i32
    %c0_i32_0 = arith.constant 0 : i32
    %c0_i32_1 = arith.constant 0 : i32
    return %c0_i32, %c0_i32_0 : i32, i32
  }
  func.func @transform_2(%arg0: i32) -> (i32, i32) {
    %c0_i32 = arith.constant 0 : i32
    %c0_i32_0 = arith.constant 0 : i32
    %c0_i32_1 = arith.constant 0 : i32
    return %c0_i32, %c0_i32_0 : i32, i32
  }
  func.func @transform_3(%arg0: i32) -> (i32, i32) {
    %c0_i32 = arith.constant 0 : i32
    %c0_i32_0 = arith.constant 0 : i32
    %c0_i32_1 = arith.constant 0 : i32
    return %c0_i32, %c0_i32_0 : i32, i32
  }
  func.func @transform_4(%arg0: i32) -> (i32, i32) {
    %c0_i32 = arith.constant 0 : i32
    %c0_i32_0 = arith.constant 0 : i32
    return %arg0, %c0_i32 : i32, i32
  }
  func.func @transform_5(%arg0: i32) -> (i32, i32) {
    %c0_i32 = arith.constant 0 : i32
    %c0_i32_0 = arith.constant 0 : i32
    return %arg0, %c0_i32 : i32, i32
  }
  func.func @transform_6(%arg0: i32) -> (i32, i32) {
    %c0_i32 = arith.constant 0 : i32
    %c0_i32_0 = arith.constant 0 : i32
    return %arg0, %c0_i32 : i32, i32
  }
  func.func @transform_7(%arg0: i32) -> (i32, i32) {
    %c0_i32 = arith.constant 0 : i32
    %c0_i32_0 = arith.constant 0 : i32
    return %arg0, %c0_i32 : i32, i32
  }
}

</mosaic_0001>

<bundles_post_ra>
// kernel: squeeze.3
= control target key start
LH: loop header
LB: loop body
LE: loop exit
PB: predicated region body
PF: predicated region fallthrough
CT: control target
= control target key end

     0   :  { %s130_s0 = inlined_call_operand.vmem [shape: s32[512], index: 0, kind: input, shape index: {}]   ;;  %s131_s1 = inlined_call_operand.hbm [shape: s32[2,16,16], index: 1, kind: output, shape index: {}]  }
   0x1   :  { %v5_v0 = vld [vmem:[%s130_s0] sm:$0xf] }
   0x2   :  { %6 = vst [vmem:[#allocation2] sm:$0xf] %v5_v0 }
   0x3   :  { %2 = vsyncpa [#allocation1], 0  ;;  %s98_s0 = smov 112   ;;  %s99_s8 = smov 80   ;;  %vm8_vm0 = vcmask 130048  }
   0x4   :  { %s100_s9 = smov 48   ;;  %s101_s10 = smov 96  }
   0x5   :  { %s102_s11 = smov 64   ;;  %s103_s12 = smov 32  }
   0x6   :  { %s104_s13 = smov 16   ;;  %s105_s14 = smov [#allocation0]  }
   0x7   :  { %s55_s15 = sshll.u32 %s105_s14, 4  ;;  %s57_s1 = sshll.u32 %s131_s1, 4  ;;  %s56_s15 = int_to_ptr.vmem [resolvable:$true] %s55_s15  ;;  %s58_s1 = int_to_ptr.hbm [resolvable:$true] %s57_s1 }
   0x9   :  { %v10_v1 = vld [vmem:[#allocation2] sm:$0xf]  }
   0xa   :  { %v22_v2 = vld [vmem:[#allocation2] sm:$0xf]   ;;  %11 = vrot.lane.b32.xlu0 %v10_v1, %s98_s0 }
   0xb   :  { %23 = vrot.lane.b32.xlu1 %v22_v2, %s99_s8  ;;  %v34_v3 = vld [vmem:[#allocation2] sm:$0xf]  }
   0xc   :  { %35 = vrot.lane.b32.xlu2 %v34_v3, %s100_s9  ;;  %v16_v4 = vld [vmem:[#allocation2] sm:$0xf]  }
   0xd   :  { %v28_v5 = vld [vmem:[#allocation2] sm:$0xf]  }
   0xe   :  { %v40_v6 = vld [vmem:[#allocation2] sm:$0xf]  }
   0xf   :  { %v46_v7 = vld [vmem:[#allocation2] sm:$0xf]  }
  0x10   :  { %v7_v9 = vld [vmem:[#allocation2] sm:$0xf]  }
  0x11   :  { %9 = vst.msk [vmem:[#allocation0] ss:$8 sm:$0xf] %vm8_vm0, %v7_v9  }
  0x12   :  { %17 = vrot.lane.b32.xlu0 %v16_v4, %s101_s10 }
  0x13   :  { %29 = vrot.lane.b32.xlu1 %v28_v5, %s102_s11 }
  0x14   :  { %41 = vrot.lane.b32.xlu2 %v40_v6, %s103_s12 }
  0x1a   :  { %47 = vrot.lane.b32.xlu0 %v46_v7, %s104_s13 }
  0x66   :  { %v36_v8 = vpop.permute.xlu2 %35  }
  0x67   :  { %39 = vst.msk [vmem:[#allocation0 + $0x5] ss:$8 sm:$0xf] %vm8_vm0, %v36_v8  }
  0x6e   :  { %v42_v10 = vpop.permute.xlu2 %41  }
  0x6f   :  { %45 = vst.msk [vmem:[#allocation0 + $0x6] ss:$8 sm:$0xf] %vm8_vm0, %v42_v10  }
  0x7c   :  { %v12_v11 = vpop.permute.xlu0 %11  }
  0x7d   :  { %v24_v12 = vpop.permute.xlu1 %23   ;;  %15 = vst.msk [vmem:[#allocation0 + $0x1] ss:$8 sm:$0xf] %vm8_vm0, %v12_v11  }
  0x7e   :  { %27 = vst.msk [vmem:[#allocation0 + $0x3] ss:$8 sm:$0xf] %vm8_vm0, %v24_v12  }
  0x84   :  { %v18_v13 = vpop.permute.xlu0 %17  }
  0x85   :  { %v30_v14 = vpop.permute.xlu1 %29   ;;  %21 = vst.msk [vmem:[#allocation0 + $0x2] ss:$8 sm:$0xf] %vm8_vm0, %v18_v13  }
  0x86   :  { %33 = vst.msk [vmem:[#allocation0 + $0x4] ss:$8 sm:$0xf] %vm8_vm0, %v30_v14  }
  0x8c   :  { %v48_v15 = vpop.permute.xlu0 %47  }
  0x8d   :  { %51 = vst.msk [vmem:[#allocation0 + $0x7] ss:$8 sm:$0xf] %vm8_vm0, %v48_v15  }
  0x8e   :  { %60 = dma.vmem_to_hbm [thread:$0]  %s56_s15, 512, %s58_s1, [#allocation1]  }
  0x8f   :  { %96 = dma.done.wait [#allocation1], 512  }
  0x90   :  { %97 = vsyncadd [#allocation1], 4294966784 }
  0x91   :  { %63 = vsyncpa [#allocation1], 1 }

// kernel: quantize2_forward.1
= control target key start
LH: loop header
LB: loop body
LE: loop exit
PB: predicated region body
PF: predicated region fallthrough
CT: control target
= control target key end

     0   :  { %s7673_s0 = inlined_call_operand.vmem [shape: f32[512,64], index: 0, kind: input, shape index: {}]   ;;  %s7674_s1 = inlined_call_operand.vmem [shape: f32[512,64], index: 1, kind: input, shape index: {}]   ;;  %s7675_s2 = inlined_call_operand.vmem [shape: f32[512,64], index: 2, kind: input, shape index: {}]   ;;  %s7676_s3 = inlined_call_operand.vmem [shape: f32[1,512], index: 3, kind: input, shape index: {}]   ;;  %s7677_s4 = inlined_call_operand.vmem [shape: f32[512,64], index: 4, kind: output, shape index: {0}]   ;;  %s7678_s5 = inlined_call_operand.vmem [shape: s32[512,1], index: 5, kind: output, shape index: {1}]   ;;  %s7679_s6 = inlined_call_operand.hbm [shape: f32[512,512], index: 6, kind: output, shape index: {2}]   ;;  %s7680_s7 = inlined_call_operand.vmem [shape: f32[16,128], index: 7, kind: output, shape index: {3}]  }
   0x1   :  { %7750 = sst [smem:[#allocation38_spill]] %s7673_s0 }
   0x2   :  { %13 = vsyncpa [#allocation3], 0 }
   0x3   :  { %15 = vsyncpa [#allocation3 + $0x1], 0  ;;  %s4697_s24 = smov 0   ;;  %s4699_s25 = smov 0  }
   0x4   :  { %s4701_s26 = smov 0   ;;  %s4703_s27 = smov 0  }
   0x5 LB: > { %s4718_s28 = sadd.s32 4294967295, %s4652_s27   ;;  %s4018_s29 = sadd.s32 4294967294, %s4652_s27   ;;  %s4652_s27 = sphi %s4703_s27, %s7871_s27   ;;  %s4648_s26 = sphi %s4701_s26, %s7870_s26   ;;  %s4644_s25 = sphi %s4699_s25, %s7869_s25   ;;  %s4640_s24 = sphi %s4697_s24, %s7868_s24  }
   0x6   : > { %s4722_s30 = sadd.s32 1, %s4652_s27   ;;  %s169_s8 = sadd.s32 1, %s4648_s26 }
   0x7   : > { %s166_s9 = ssub.s32 %s4652_s27, %s4722_s30  ;;  %p179_p0 = scmp.ne.s32.totalorder %s4648_s26, %s4644_s25 }
   0x8   : > { %p167_p1 = scmp.eq.s32.totalorder %s166_s9, 0  ;;  %p180_p2 = scmp.eq.s32.totalorder %s4718_s28, 1 }
   0x9   : > { %p185_p3 = scmp.ne.s32.totalorder %s4644_s25, %s4640_s24  ;;  %p186_p4 = scmp.eq.s32.totalorder %s4018_s29, 1 }
   0xa   : > { %s4733_s10 = scalar_select %p167_p1, %s4648_s26, %s169_s8  }
   0xb   : > { %p4735_p5 = por %p180_p2, %p179_p0  ;;  %p4739_p6 = por %p186_p4, %p185_p3 }
   0xc   : > { %p4021_p7 = scmp.ge.s32.totalorder %s4652_s27, 1  ;;  %p248_p8 = scmp.lt.s32.totalorder %s4652_s27, 3 }
   0xe   : > { %p249_p9 = pnand %p4021_p7, %p248_p8 }
  0x10   : > { %252 = sbr.rel (%p249_p9) target bundleno = 1483 (0x5cb), region = 36 }
  0x15   : > { %v460_v0 = vld [vmem:[%s7675_s2 + $0x178] sm:$0xff]  ;;  %vm510_vm0 = vcmask 523264   ;;  %v459_v4 = vld [vmem:[%s7675_s2 + $0x170] sm:$0xff]  ;;  %v458_v8 = vld [vmem:[%s7675_s2 + $0x168] sm:$0xff]  ;;  %s4023_s13 = sshll.u32 %s4718_s28, 5  ;;  %s7753_s0 = sld [smem:[#allocation38_spill]] }
  0x16   : > { %v476_v1 = vld [vmem:[%s7675_s2 + $0x1f8] sm:$0xff]  ;;  %4126 = vmatpush.xpose.msk.msra.mxu2 %vm510_vm0, %v460_v0  ;;  %v475_v5 = vld [vmem:[%s7675_s2 + $0x1f0] sm:$0xff]  ;;  %v474_v9 = vld [vmem:[%s7675_s2 + $0x1e8] sm:$0xff]  ;;  %p295_p10 = scmp.lt.s32.totalorder %s4023_s13, 63  ;;  %s285_s17 = sand.u32 1, %s4644_s25  }
  0x17   : > { %v428_v2 = vld [vmem:[%s7675_s2 + $0x78] sm:$0xff]  ;;  %4174 = vmatpush.xpose.msk.msra.mxu3 %vm510_vm0, %v476_v1  ;;  %v427_v6 = vld [vmem:[%s7675_s2 + $0x70] sm:$0xff]  ;;  %v426_v10 = vld [vmem:[%s7675_s2 + $0x68] sm:$0xff]  ;;  %s4022_s18 = sshll.u32 %s285_s17, 10 }
  0x18   : > { %v444_v3 = vld [vmem:[%s7675_s2 + $0xf8] sm:$0xff]  ;;  %4030 = vmatpush.xpose.msk.msra.mxu0 %vm510_vm0, %v428_v2  ;;  %v443_v7 = vld [vmem:[%s7675_s2 + $0xf0] sm:$0xff]  ;;  %v442_v11 = vld [vmem:[%s7675_s2 + $0xe8] sm:$0xff]  ;;  %s7873_s13 = smov (!%p295_p10, %s4023_s13), 63  ;;  %s5136_s19 = scalar_lea.vmem [#allocation2], %s4022_s18 }
  0x19   : > { %4078 = vmatpush.xpose.msk.msra.mxu1 %vm510_vm0, %v444_v3  ;;  %v457_v12 = vld [vmem:[%s7675_s2 + $0x160] sm:$0xff]  ;;  %v456_v16 = vld [vmem:[%s7675_s2 + $0x158] sm:$0xff]  ;;  %v455_v20 = vld [vmem:[%s7675_s2 + $0x150] sm:$0xff]  ;;  %s4896_s21 = sshll.u32 %s7873_s13, 3  ;;  %s3876_s13 = sshll.u32 %s5136_s19, 4  ;;  %s3877_s13 = int_to_ptr.vmem [resolvable:$true] %s3876_s13 }
  0x1a   : > { %4127 = vmatpush.xpose.msk.msra.mxu2 %vm510_vm0, %v459_v4  ;;  %v473_v13 = vld [vmem:[%s7675_s2 + $0x1e0] sm:$0xff]  ;;  %v472_v17 = vld [vmem:[%s7675_s2 + $0x1d8] sm:$0xff]  ;;  %v471_v21 = vld [vmem:[%s7675_s2 + $0x1d0] sm:$0xff]  ;;  %s6553_s20 = scalar_lea.vmem %s7678_s5, %s4896_s21  ;;  %s7004_s29 = scalar_lea.vmem %s7677_s4, %s4896_s21 }
  0x1b   : > { %4175 = vmatpush.xpose.msk.msra.mxu3 %vm510_vm0, %v475_v5  ;;  %v425_v14 = vld [vmem:[%s7675_s2 + $0x60] sm:$0xff]  ;;  %v424_v18 = vld [vmem:[%s7675_s2 + $0x58] sm:$0xff]  ;;  %v423_v22 = vld [vmem:[%s7675_s2 + $0x50] sm:$0xff]  ;;  %s4910_s15 = scalar_lea.vmem %s7753_s0, %s4896_s21  ;;  %s4485_s21 = sshll.u32 %s4718_s28, 10 }
  0x1c   : > { %4031 = vmatpush.xpose.msk.msra.mxu0 %vm510_vm0, %v427_v6  ;;  %v441_v15 = vld [vmem:[%s7675_s2 + $0xe0] sm:$0xff]  ;;  %v440_v19 = vld [vmem:[%s7675_s2 + $0xd8] sm:$0xff]  ;;  %v439_v23 = vld [vmem:[%s7675_s2 + $0xd0] sm:$0xff]  ;;  %s3875_s14 = scalar_lea.hbm %s7679_s6, %s4485_s21 }
  0x1d   : > { %4079 = vmatpush.xpose.msk.msra.mxu1 %vm510_vm0, %v443_v7  ;;  %v454_v24 = vld [vmem:[%s7675_s2 + $0x148] sm:$0xff]  ;;  %v453_v28 = vld [vmem:[%s7675_s2 + $0x140] sm:$0xff]  ;;  %v452_v32 = vld [vmem:[%s7675_s2 + $0x138] sm:$0xff]  ;;  %s3878_s16 = sshll.u32 %s3875_s14, 4  ;;  %s3879_s16 = int_to_ptr.hbm [resolvable:$true] %s3878_s16 }
  0x1e   : > { %4128 = vmatpush.xpose.msk.msra.mxu2 %vm510_vm0, %v458_v8  ;;  %v470_v25 = vld [vmem:[%s7675_s2 + $0x1c8] sm:$0xff]  ;;  %v469_v29 = vld [vmem:[%s7675_s2 + $0x1c0] sm:$0xff]  ;;  %v468_v33 = vld [vmem:[%s7675_s2 + $0x1b8] sm:$0xff]  ;;  %s4604_s18 = sshra.s32 %s3879_s16, 4  ;;  %s4605_s18 = int_to_ptr.hbm [resolvable:$true] %s4604_s18 }
  0x1f   : > { %4176 = vmatpush.xpose.msk.msra.mxu3 %vm510_vm0, %v474_v9  ;;  %v422_v26 = vld [vmem:[%s7675_s2 + $0x48] sm:$0xff]  ;;  %v421_v30 = vld [vmem:[%s7675_s2 + $0x40] sm:$0xff]  ;;  %v420_v34 = vld [vmem:[%s7675_s2 + $0x38] sm:$0xff]  ;;  %p4611_p0 = scmp.lt.s32.totalorder %s4605_s18, %s7679_s6 }
  0x20   : > { %4032 = vmatpush.xpose.msk.msra.mxu0 %vm510_vm0, %v426_v10  ;;  %v438_v27 = vld [vmem:[%s7675_s2 + $0xc8] sm:$0xff]  ;;  %v437_v31 = vld [vmem:[%s7675_s2 + $0xc0] sm:$0xff]  ;;  %v436_v35 = vld [vmem:[%s7675_s2 + $0xb8] sm:$0xff] }
  0x21   : > { %4080 = vmatpush.xpose.msk.msra.mxu1 %vm510_vm0, %v442_v11  ;;  %v451_v36 = vld [vmem:[%s7675_s2 + $0x130] sm:$0xff]  ;;  %v450_v40 = vld [vmem:[%s7675_s2 + $0x128] sm:$0xff]  ;;  %v317_v44 = vld [vmem:[%s4910_s15] sm:$0xff] }
  0x22   : > { %4129 = vmatpush.xpose.msk.msra.mxu2 %vm510_vm0, %v457_v12  ;;  %v467_v37 = vld [vmem:[%s7675_s2 + $0x1b0] sm:$0xff]  ;;  %v466_v41 = vld [vmem:[%s7675_s2 + $0x1a8] sm:$0xff]  ;;  %v478_v45 = vmul.f32 %v317_v44, %v317_v44  ;;  %v449_v46 = vld [vmem:[%s7675_s2 + $0x120] sm:$0xff] }
  0x23   : > { %4177 = vmatpush.xpose.msk.msra.mxu3 %vm510_vm0, %v473_v13  ;;  %v419_v38 = vld [vmem:[%s7675_s2 + $0x30] sm:$0xff]  ;;  %v418_v42 = vld [vmem:[%s7675_s2 + $0x28] sm:$0xff]  ;;  %v465_v47 = vld [vmem:[%s7675_s2 + $0x1a0] sm:$0xff] }
  0x24   : > { %4033 = vmatpush.xpose.msk.msra.mxu0 %vm510_vm0, %v425_v14  ;;  %v435_v39 = vld [vmem:[%s7675_s2 + $0xb0] sm:$0xff]  ;;  %v434_v43 = vld [vmem:[%s7675_s2 + $0xa8] sm:$0xff]  ;;  %v417_v48 = vld [vmem:[%s7675_s2 + $0x20] sm:$0xff]  ;;  %v511_v50 = vsel %vm510_vm0, %v478_v45, 0.0 }
  0x25   : > { %4081 = vmatpush.xpose.msk.msra.mxu1 %vm510_vm0, %v441_v15  ;;  %v433_v49 = vld [vmem:[%s7675_s2 + $0xa0] sm:$0xff]  ;;  %512 = vadd.xlane.f32.xlu0 %v511_v50  ;;  %v448_v51 = vld [vmem:[%s7675_s2 + $0x118] sm:$0xff]  ;;  %v318_v55 = vld [vmem:[%s4910_s15 + $0x8] sm:$0xff] }
  0x26   : > { %4130 = vmatpush.xpose.msk.msra.mxu2 %vm510_vm0, %v456_v16  ;;  %v464_v52 = vld [vmem:[%s7675_s2 + $0x198] sm:$0xff]  ;;  %v479_v56 = vmul.f32 %v318_v55, %v318_v55  ;;  %v447_v57 = vld [vmem:[%s7675_s2 + $0x110] sm:$0xff]  ;;  %v446_v62 = vld [vmem:[%s7675_s2 + $0x108] sm:$0xff] }
  0x27   : > { %4178 = vmatpush.xpose.msk.msra.mxu3 %vm510_vm0, %v472_v17  ;;  %v416_v53 = vld [vmem:[%s7675_s2 + $0x18] sm:$0xff]  ;;  %v463_v58 = vld [vmem:[%s7675_s2 + $0x190] sm:$0xff]  ;;  %v462_v63 = vld [vmem:[%s7675_s2 + $0x188] sm:$0xff] }
  0x28   : > { %4034 = vmatpush.xpose.msk.msra.mxu0 %vm510_vm0, %v424_v18  ;;  %v432_v54 = vld [vmem:[%s7675_s2 + $0x98] sm:$0xff]  ;;  %v415_v59 = vld [vmem:[%s7675_s2 + $0x10] sm:$0xff]  ;;  %v514_v61 = vsel %vm510_vm0, %v479_v56, 0.0  ;;  %v414_v0 = vld [vmem:[%s7675_s2 + $0x8] sm:$0xff] }
  0x29   : > { %4082 = vmatpush.xpose.msk.msra.mxu1 %vm510_vm0, %v440_v19  ;;  %v431_v60 = vld [vmem:[%s7675_s2 + $0x90] sm:$0xff]  ;;  %v430_v1 = vld [vmem:[%s7675_s2 + $0x88] sm:$0xff]  ;;  %v445_v4 = vld [vmem:[%s7675_s2 + $0x100] sm:$0xff] }
  0x2a   : > { %4131 = vmatpush.xpose.msk.msra.mxu2 %vm510_vm0, %v455_v20  ;;  %v319_v2 = vld [vmem:[%s4910_s15 + $0x10] sm:$0xff]  ;;  %v461_v5 = vld [vmem:[%s7675_s2 + $0x180] sm:$0xff]  ;;  %v320_v9 = vld [vmem:[%s4910_s15 + $0x18] sm:$0xff] }
  0x2b   : > { %4179 = vmatpush.xpose.msk.msra.mxu3 %vm510_vm0, %v471_v21  ;;  %v480_v3 = vmul.f32 %v319_v2, %v319_v2  ;;  %v413_v7 = vld [vmem:[%s7675_s2] sm:$0xff]  ;;  %v481_v10 = vmul.f32 %v320_v9, %v320_v9  ;;  %v322_v15 = vld [vmem:[%s4910_s15 + $0x28] sm:$0xff]  ;;  %v323_v18 = vld [vmem:[%s4910_s15 + $0x30] sm:$0xff] }
  0x2c   : > { %4035 = vmatpush.xpose.msk.msra.mxu0 %vm510_vm0, %v423_v22  ;;  %v429_v8 = vld [vmem:[%s7675_s2 + $0x80] sm:$0xff]  ;;  %v483_v16 = vmul.f32 %v322_v15, %v322_v15  ;;  %v484_v19 = vmul.f32 %v323_v18, %v323_v18  ;;  %v324_v21 = vld [vmem:[%s4910_s15 + $0x38] sm:$0xff] }
  0x2d   : > { %4083 = vmatpush.xpose.msk.msra.mxu1 %vm510_vm0, %v439_v23  ;;  %515 = vadd.xlane.f32.xlu0 %v514_v61  ;;  %v517_v6 = vsel %vm510_vm0, %v480_v3, 0.0  ;;  %v520_v11 = vsel %vm510_vm0, %v481_v10, 0.0  ;;  %v321_v12 = vld [vmem:[%s4910_s15 + $0x20] sm:$0xff]  ;;  %v485_v22 = vmul.f32 %v324_v21, %v324_v21 }
  0x2e   : > { %4132 = vmatpush.xpose.msk.msra.mxu2 %vm510_vm0, %v454_v24  ;;  %518 = vadd.xlane.f32.xlu1 %v517_v6  ;;  %v482_v13 = vmul.f32 %v321_v12, %v321_v12  ;;  %v526_v17 = vsel %vm510_vm0, %v483_v16, 0.0  ;;  %v529_v20 = vsel %vm510_vm0, %v484_v19, 0.0  ;;  %v325_v24 = vld [vmem:[%s4910_s15 + $0x40] sm:$0xff] }
  0x2f   : > { %4180 = vmatpush.xpose.msk.msra.mxu3 %vm510_vm0, %v470_v25  ;;  %v532_v23 = vsel %vm510_vm0, %v485_v22, 0.0  ;;  %v486_v25 = vmul.f32 %v325_v24, %v325_v24  ;;  %v5156_v6 = vld [vmem:[%s4910_s15 + $0x80] sm:$0xff] }
  0x30   : > { %4036 = vmatpush.xpose.msk.msra.mxu0 %vm510_vm0, %v422_v26  ;;  %v523_v14 = vsel %vm510_vm0, %v482_v13, 0.0 }
  0x31   : > { %4084 = vmatpush.xpose.msk.msra.mxu1 %vm510_vm0, %v438_v27  ;;  %524 = vadd.xlane.f32.xlu2 %v523_v14  ;;  %v535_v26 = vsel %vm510_vm0, %v486_v25, 0.0  ;;  %v326_v27 = vld [vmem:[%s4910_s15 + $0x48] sm:$0xff] }
  0x32   : > { %4133 = vmatpush.xpose.msk.msra.mxu2 %vm510_vm0, %v453_v28  ;;  %v487_v28 = vmul.f32 %v326_v27, %v326_v27 }
  0x33   : > { %4181 = vmatpush.xpose.msk.msra.mxu3 %vm510_vm0, %v469_v29 }
  0x34   : > { %4037 = vmatpush.xpose.msk.msra.mxu0 %vm510_vm0, %v421_v30  ;;  %v538_v29 = vsel %vm510_vm0, %v487_v28, 0.0  ;;  %v327_v30 = vld [vmem:[%s4910_s15 + $0x50] sm:$0xff] }
  0x35   : > { %4085 = vmatpush.xpose.msk.msra.mxu1 %vm510_vm0, %v437_v31  ;;  %530 = vadd.xlane.f32.xlu0 %v529_v20  ;;  %v488_v31 = vmul.f32 %v327_v30, %v327_v30 }
  0x36   : > { %4134 = vmatpush.xpose.msk.msra.mxu2 %vm510_vm0, %v452_v32  ;;  %521 = vadd.xlane.f32.xlu1 %v520_v11 }
  0x37   : > { %4182 = vmatpush.xpose.msk.msra.mxu3 %vm510_vm0, %v468_v33  ;;  %v541_v32 = vsel %vm510_vm0, %v488_v31, 0.0  ;;  %v328_v33 = vld [vmem:[%s4910_s15 + $0x58] sm:$0xff] }
  0x38   : > { %4038 = vmatpush.xpose.msk.msra.mxu0 %vm510_vm0, %v420_v34  ;;  %v489_v34 = vmul.f32 %v328_v33, %v328_v33 }
  0x39   : > { %4086 = vmatpush.xpose.msk.msra.mxu1 %vm510_vm0, %v436_v35  ;;  %527 = vadd.xlane.f32.xlu2 %v526_v17 }
  0x3a   : > { %4135 = vmatpush.xpose.msk.msra.mxu2 %vm510_vm0, %v451_v36  ;;  %v544_v35 = vsel %vm510_vm0, %v489_v34, 0.0  ;;  %v329_v36 = vld [vmem:[%s4910_s15 + $0x60] sm:$0xff] }
  0x3b   : > { %4183 = vmatpush.xpose.msk.msra.mxu3 %vm510_vm0, %v467_v37  ;;  %v490_v37 = vmul.f32 %v329_v36, %v329_v36 }
  0x3c   : > { %4039 = vmatpush.xpose.msk.msra.mxu0 %vm510_vm0, %v419_v38 }
  0x3d   : > { %4087 = vmatpush.xpose.msk.msra.mxu1 %vm510_vm0, %v435_v39  ;;  %539 = vadd.xlane.f32.xlu0 %v538_v29  ;;  %v547_v38 = vsel %vm510_vm0, %v490_v37, 0.0  ;;  %v330_v39 = vld [vmem:[%s4910_s15 + $0x68] sm:$0xff] }
  0x3e   : > { %4136 = vmatpush.xpose.msk.msra.mxu2 %vm510_vm0, %v450_v40  ;;  %536 = vadd.xlane.f32.xlu1 %v535_v26  ;;  %v491_v40 = vmul.f32 %v330_v39, %v330_v39 }
  0x3f   : > { %4184 = vmatpush.xpose.msk.msra.mxu3 %vm510_vm0, %v466_v41 }
  0x40   : > { %4040 = vmatpush.xpose.msk.msra.mxu0 %vm510_vm0, %v418_v42  ;;  %v550_v41 = vsel %vm510_vm0, %v491_v40, 0.0  ;;  %v5095_v42 = vld [vmem:[%s4910_s15 + $0x70] sm:$0xff] }
  0x41   : > { %4088 = vmatpush.xpose.msk.msra.mxu1 %vm510_vm0, %v434_v43  ;;  %533 = vadd.xlane.f32.xlu2 %v532_v23  ;;  %v477_v43 = vld [vmem:[%s7676_s3] sm:$0xf] }
  0x42   : > { %4137 = vmatpush.xpose.msk.msra.mxu2 %vm510_vm0, %v449_v46  ;;  %v5111_v46 = vperm.slane %v477_v43, 0 }
  0x43   : > { %4185 = vmatpush.xpose.msk.msra.mxu3 %vm510_vm0, %v465_v47  ;;  %v5113_v47 = vperm.slane %v477_v43, 1 }
  0x44   : > { %4041 = vmatpush.xpose.msk.msra.mxu0 %vm510_vm0, %v417_v48 }
  0x45   : > { %4089 = vmatpush.xpose.msk.msra.mxu1 %vm510_vm0, %v433_v49  ;;  %548 = vadd.xlane.f32.xlu0 %v547_v38 }
  0x46   : > { %4138 = vmatpush.xpose.msk.msra.mxu2 %vm510_vm0, %v448_v51  ;;  %545 = vadd.xlane.f32.xlu1 %v544_v35 }
  0x47   : > { %4186 = vmatpush.xpose.msk.msra.mxu3 %vm510_vm0, %v464_v52  ;;  %v5128_v52 = vperm.slane %v477_v43, 2 }
  0x48   : > { %4042 = vmatpush.xpose.msk.msra.mxu0 %vm510_vm0, %v416_v53  ;;  %v5130_v53 = vperm.slane %v477_v43, 3 }
  0x49   : > { %4090 = vmatpush.xpose.msk.msra.mxu1 %vm510_vm0, %v432_v54  ;;  %542 = vadd.xlane.f32.xlu2 %v541_v32 }
  0x4a   : > { %4139 = vmatpush.xpose.msk.msra.mxu2 %vm510_vm0, %v447_v57 }
  0x4b   : > { %4187 = vmatpush.xpose.msk.msra.mxu3 %vm510_vm0, %v463_v58 }
  0x4c   : > { %4043 = vmatpush.xpose.msk.msra.mxu0 %vm510_vm0, %v415_v59 }
  0x4d   : > { %4091 = vmatpush.xpose.msk.msra.mxu1 %vm510_vm0, %v431_v60  ;;  %551 = vadd.xlane.f32.xlu0 %v550_v41 }
  0x4e   : > { %4140 = vmatpush.xpose.msk.msra.mxu2 %vm510_vm0, %v446_v62 }
  0x4f   : > { %4188 = vmatpush.xpose.msk.msra.mxu3 %vm510_vm0, %v462_v63 }
  0x50   : > { %4044 = vmatpush.xpose.msk.msra.mxu0 %vm510_vm0, %v414_v0 }
  0x51   : > { %4092 = vmatpush.xpose.msk.msra.mxu1 %vm510_vm0, %v430_v1 }
  0x52   : > { %4141 = vmatpush.xpose.msk.msra.mxu2 %vm510_vm0, %v445_v4 }
  0x53   : > { %4189 = vmatpush.xpose.msk.msra.mxu3 %vm510_vm0, %v461_v5 }
  0x54   : > { %4045 = vmatpush.xpose.msk.msra.mxu0 %vm510_vm0, %v413_v7 }
  0x55   : > { %4093 = vmatpush.xpose.msk.msra.mxu1 %vm510_vm0, %v429_v8  ;;  %4142 = vmatmul.msk.f32.vlgmr.msra.gmra.mxu2 %vm510_vm0, %v317_v44 }
  0x56   : > { %4190 = vmatmul.msk.f32.vlgmr.msra.gmra.mxu3 %vm510_vm0, %v317_v44 }
  0x57   : > { %4046 = vmatmul.msk.f32.vlgmr.msra.gmra.mxu0 %vm510_vm0, %v317_v44 }
  0x58   : > { %4094 = vmatmul.msk.f32.vlgmr.msra.gmra.mxu1 %vm510_vm0, %v317_v44  ;;  %v5109_v44 = vld [vmem:[%s4910_s15 + $0x78] sm:$0xff] }
  0x5d   : > { %4143 = vmatmul.msk.f32.gmra.mxu2 %vm510_vm0, %v318_v55 }
  0x5e   : > { %4191 = vmatmul.msk.f32.gmra.mxu3 %vm510_vm0, %v318_v55 }
  0x5f   : > { %4047 = vmatmul.msk.f32.gmra.mxu0 %vm510_vm0, %v318_v55 }
  0x60   : > { %4095 = vmatmul.msk.f32.gmra.mxu1 %vm510_vm0, %v318_v55 }
  0x65   : > { %4144 = vmatmul.msk.f32.gmra.mxu2 %vm510_vm0, %v319_v2 }
  0x66   : > { %4192 = vmatmul.msk.f32.gmra.mxu3 %vm510_vm0, %v319_v2 }
  0x67   : > { %4048 = vmatmul.msk.f32.gmra.mxu0 %vm510_vm0, %v319_v2 }
  0x68   : > { %4096 = vmatmul.msk.f32.gmra.mxu1 %vm510_vm0, %v319_v2 }
  0x6d   : > { %4145 = vmatmul.msk.f32.gmra.mxu2 %vm510_vm0, %v320_v9 }
  0x6e   : > { %4193 = vmatmul.msk.f32.gmra.mxu3 %vm510_vm0, %v320_v9 }
  0x6f   : > { %4049 = vmatmul.msk.f32.gmra.mxu0 %vm510_vm0, %v320_v9 }
  0x70   : > { %4097 = vmatmul.msk.f32.gmra.mxu1 %vm510_vm0, %v320_v9 }
  0x75   : > { %4146 = vmatmul.msk.f32.gmra.mxu2 %vm510_vm0, %v321_v12 }
  0x76   : > { %4194 = vmatmul.msk.f32.gmra.mxu3 %vm510_vm0, %v321_v12 }
  0x77   : > { %4050 = vmatmul.msk.f32.gmra.mxu0 %vm510_vm0, %v321_v12 }
  0x78   : > { %4098 = vmatmul.msk.f32.gmra.mxu1 %vm510_vm0, %v321_v12 }
  0x7d   : > { %4147 = vmatmul.msk.f32.gmra.mxu2 %vm510_vm0, %v322_v15 }
  0x7e   : > { %4195 = vmatmul.msk.f32.gmra.mxu3 %vm510_vm0, %v322_v15 }
  0x7f   : > { %4051 = vmatmul.msk.f32.gmra.mxu0 %vm510_vm0, %v322_v15 }
  0x80   : > { %4099 = vmatmul.msk.f32.gmra.mxu1 %vm510_vm0, %v322_v15 }
  0x85   : > { %4148 = vmatmul.msk.f32.gmra.mxu2 %vm510_vm0, %v323_v18 }
  0x86   : > { %4196 = vmatmul.msk.f32.gmra.mxu3 %vm510_vm0, %v323_v18 }
  0x87   : > { %4052 = vmatmul.msk.f32.gmra.mxu0 %vm510_vm0, %v323_v18 }
  0x88   : > { %4100 = vmatmul.msk.f32.gmra.mxu1 %vm510_vm0, %v323_v18 }
  0x8d   : > { %4149 = vmatmul.msk.f32.gmra.mxu2 %vm510_vm0, %v324_v21 }
  0x8e   : > { %4197 = vmatmul.msk.f32.gmra.mxu3 %vm510_vm0, %v324_v21 }
  0x8f   : > { %4053 = vmatmul.msk.f32.gmra.mxu0 %vm510_vm0, %v324_v21 }
  0x90   : > { %4101 = vmatmul.msk.f32.gmra.mxu1 %vm510_vm0, %v324_v21 }
  0x95   : > { %4150 = vmatmul.msk.f32.gmra.mxu2 %vm510_vm0, %v325_v24 }
  0x96   : > { %4198 = vmatmul.msk.f32.gmra.mxu3 %vm510_vm0, %v325_v24 }
  0x97   : > { %4054 = vmatmul.msk.f32.gmra.mxu0 %vm510_vm0, %v325_v24 }
  0x98   : > { %4102 = vmatmul.msk.f32.gmra.mxu1 %vm510_vm0, %v325_v24  ;;  %v513_v45 = vpop.xlane.xlu0 %512 }
  0x99   : > { %v1356_v48 = vadd.f32 %v5111_v46, %v513_v45  ;;  %v1357_v49 = vadd.f32 %v5113_v47, %v513_v45  ;;  %v1358_v57 = vadd.f32 %v5128_v52, %v513_v45  ;;  %v1359_v58 = vadd.f32 %v5130_v53, %v513_v45 }
  0x9d   : > { %4151 = vmatmul.msk.f32.gmra.mxu2 %vm510_vm0, %v326_v27 }
  0x9e   : > { %4199 = vmatmul.msk.f32.gmra.mxu3 %vm510_vm0, %v326_v27 }
  0x9f   : > { %4055 = vmatmul.msk.f32.gmra.mxu0 %vm510_vm0, %v326_v27 }
  0xa0   : > { %4103 = vmatmul.msk.f32.gmra.mxu1 %vm510_vm0, %v326_v27  ;;  %v516_v56 = vpop.xlane.xlu0 %515 }
  0xa1   : > { %v1360_v62 = vadd.f32 %v5111_v46, %v516_v56  ;;  %v1361_v63 = vadd.f32 %v5113_v47, %v516_v56  ;;  %v519_v2 = vpop.xlane.xlu1 %518  ;;  %v1362_v10 = vadd.f32 %v5128_v52, %v516_v56  ;;  %v1363_v11 = vadd.f32 %v5130_v53, %v516_v56 }
  0xa2   : > { %v1364_v15 = vadd.f32 %v5111_v46, %v519_v2  ;;  %v1365_v16 = vadd.f32 %v5113_v47, %v519_v2  ;;  %v1366_v25 = vadd.f32 %v5128_v52, %v519_v2  ;;  %v1367_v26 = vadd.f32 %v5130_v53, %v519_v2 }
  0xa5   : > { %4152 = vmatmul.msk.f32.gmra.mxu2 %vm510_vm0, %v327_v30 }
  0xa6   : > { %4200 = vmatmul.msk.f32.gmra.mxu3 %vm510_vm0, %v327_v30 }
  0xa7   : > { %4056 = vmatmul.msk.f32.gmra.mxu0 %vm510_vm0, %v327_v30 }
  0xa8   : > { %4104 = vmatmul.msk.f32.gmra.mxu1 %vm510_vm0, %v327_v30 }
  0xa9   : > { %v522_v27 = vpop.xlane.xlu1 %521 }
  0xaa   : > { %v1368_v31 = vadd.f32 %v5111_v46, %v522_v27  ;;  %v1369_v32 = vadd.f32 %v5113_v47, %v522_v27  ;;  %v1370_v45 = vadd.f32 %v5128_v52, %v522_v27 }
  0xad   : > { %4153 = vmatmul.msk.f32.gmra.mxu2 %vm510_vm0, %v328_v33 }
  0xae   : > { %4201 = vmatmul.msk.f32.gmra.mxu3 %vm510_vm0, %v328_v33 }
  0xaf   : > { %4057 = vmatmul.msk.f32.gmra.mxu0 %vm510_vm0, %v328_v33 }
  0xb0   : > { %4105 = vmatmul.msk.f32.gmra.mxu1 %vm510_vm0, %v328_v33  ;;  %v492_v33 = vmul.f32 %v5095_v42, %v5095_v42 }
  0xb5   : > { %4154 = vmatmul.msk.f32.gmra.mxu2 %vm510_vm0, %v329_v36 }
  0xb6   : > { %4202 = vmatmul.msk.f32.gmra.mxu3 %vm510_vm0, %v329_v36 }
  0xb7   : > { %4058 = vmatmul.msk.f32.gmra.mxu0 %vm510_vm0, %v329_v36 }
  0xb8   : > { %4106 = vmatmul.msk.f32.gmra.mxu1 %vm510_vm0, %v329_v36  ;;  %v525_v36 = vpop.xlane.xlu2 %524 }
  0xbd   : > { %4155 = vmatmul.msk.f32.gmra.mxu2 %vm510_vm0, %v330_v39 }
  0xbe   : > { %4203 = vmatmul.msk.f32.gmra.mxu3 %vm510_vm0, %v330_v39 }
  0xbf   : > { %4059 = vmatmul.msk.f32.gmra.mxu0 %vm510_vm0, %v330_v39 }
  0xc0   : > { %4107 = vmatmul.msk.f32.gmra.mxu1 %vm510_vm0, %v330_v39 }
  0xc5   : > { %4156 = vmatmul.msk.f32.gmra.mxu2 %vm510_vm0, %v5095_v42 }
  0xc6   : > { %4204 = vmatmul.msk.f32.gmra.mxu3 %vm510_vm0, %v5095_v42 }
  0xc7   : > { %4060 = vmatmul.msk.f32.gmra.mxu0 %vm510_vm0, %v5095_v42 }
  0xc8   : > { %4108 = vmatmul.msk.f32.gmra.mxu1 %vm510_vm0, %v5095_v42  ;;  %v553_v42 = vsel %vm510_vm0, %v492_v33, 0.0 }
  0xcd   : > { %4157 = vmatmul.msk.f32.gmra.mxu2 %vm510_vm0, %v5109_v44 }
  0xce   : > { %4205 = vmatmul.msk.f32.gmra.mxu3 %vm510_vm0, %v5109_v44 }
  0xcf   : > { %4061 = vmatmul.msk.f32.gmra.mxu0 %vm510_vm0, %v5109_v44 }
  0xd0   : > { %4109 = vmatmul.msk.f32.gmra.mxu1 %vm510_vm0, %v5109_v44 }
  0xd4   : > { %v912_v50 = vpop.f32.mrf.mxu0 }
  0xd5   : > { %v1025_v51 = vpop.f32.mrf.mxu1  ;;  %v5132_v54 = vadd.f32 %v1356_v48, %v912_v50  ;;  %4158 = vmatmul.msk.f32.gmra.mxu2 %vm510_vm0, %v5156_v6  ;;  %v1371_v48 = vadd.f32 %v5130_v53, %v522_v27 }
  0xd6   : > { %v5134_v55 = vadd.f32 %v1357_v49, %v1025_v51  ;;  %4206 = vmatmul.msk.f32.gmra.mxu3 %vm510_vm0, %v5156_v6  ;;  %v5229_v49 = vld [vmem:[%s4910_s15 + $0xa0] sm:$0xff] }
  0xd7   : > { %3574 = vst [vmem:[%s5136_s19] sm:$0xff] %v5132_v54  ;;  %4062 = vmatmul.msk.f32.gmra.mxu0 %vm510_vm0, %v5156_v6 }
  0xd8   : > { %3575 = vst [vmem:[%s5136_s19 + $0x8] sm:$0xff] %v5134_v55  ;;  %v1617_v59 = vmin.f32 %v5132_v54, %v5134_v55  ;;  %v1138_v60 = vpop.f32.mrf.mxu2  ;;  %4110 = vmatmul.msk.f32.gmra.mxu1 %vm510_vm0, %v5156_v6 }
  0xd9   : > { %v1251_v61 = vpop.f32.mrf.mxu3  ;;  %v5148_v0 = vadd.f32 %v1358_v57, %v1138_v60  ;;  %v1372_v57 = vadd.f32 %v5111_v46, %v525_v36 }
  0xda   : > { %v5150_v1 = vadd.f32 %v1359_v58, %v1251_v61  ;;  %v1373_v58 = vadd.f32 %v5113_v47, %v525_v36 }
  0xdb   : > { %3576 = vst [vmem:[%s5136_s19 + $0x10] sm:$0xff] %v5148_v0  ;;  %v1618_v5 = vmin.f32 %v1617_v59, %v5148_v0  ;;  %v493_v59 = vmul.f32 %v5109_v44, %v5109_v44 }
  0xdc   : > { %v915_v3 = vpop.f32.mrf.mxu0  ;;  %3577 = vst [vmem:[%s5136_s19 + $0x18] sm:$0xff] %v5150_v1 }
  0xdd   : > { %v1028_v4 = vpop.f32.mrf.mxu1  ;;  %v5160_v7 = vadd.f32 %v1360_v62, %v915_v3  ;;  %v1619_v9 = vmin.f32 %v1618_v5, %v5150_v1  ;;  %v498_v62 = vmul.f32 %v5229_v49, %v5229_v49  ;;  %v556_v5 = vsel %vm510_vm0, %v493_v59, 0.0  ;;  %v334_v59 = vld [vmem:[%s4910_s15 + $0x88] sm:$0xff] }
  0xde   : > { %v5162_v8 = vadd.f32 %v1361_v63, %v1028_v4  ;;  %4159 = vmatmul.msk.f32.gmra.mxu2 %vm510_vm0, %v334_v59  ;;  %4207 = vmatmul.msk.f32.gmra.mxu3 %vm510_vm0, %v334_v59 }
  0xdf   : > { %3578 = vst [vmem:[%s5136_s19 + $0x20] sm:$0xff] %v5160_v7  ;;  %1620 = vmin.xlane.f32.xlu1 %v1619_v9  ;;  %4063 = vmatmul.msk.f32.gmra.mxu0 %vm510_vm0, %v334_v59 }
  0xe0   : > { %3579 = vst [vmem:[%s5136_s19 + $0x28] sm:$0xff] %v5162_v8  ;;  %v1622_v12 = vmin.f32 %v5160_v7, %v5162_v8  ;;  %v1141_v13 = vpop.f32.mrf.mxu2  ;;  %4111 = vmatmul.msk.f32.gmra.mxu1 %vm510_vm0, %v334_v59 }
  0xe1   : > { %v1254_v14 = vpop.f32.mrf.mxu3  ;;  %v5183_v17 = vadd.f32 %v1362_v10, %v1141_v13  ;;  %v1374_v10 = vadd.f32 %v5128_v52, %v525_v36  ;;  %v571_v13 = vsel %vm510_vm0, %v498_v62, 0.0 }
  0xe2   : > { %v5185_v18 = vadd.f32 %v1363_v11, %v1254_v14  ;;  %v1375_v11 = vadd.f32 %v5130_v53, %v525_v36  ;;  %v5260_v14 = vld [vmem:[%s4910_s15 + $0x98] sm:$0xff] }
  0xe3   : > { %3580 = vst [vmem:[%s5136_s19 + $0x30] sm:$0xff] %v5183_v17  ;;  %v1623_v21 = vmin.f32 %v1622_v12, %v5183_v17  ;;  %v528_v12 = vpop.xlane.xlu2 %527 }
  0xe4   : > { %v918_v19 = vpop.f32.mrf.mxu0  ;;  %3581 = vst [vmem:[%s5136_s19 + $0x38] sm:$0xff] %v5185_v18  ;;  %v1378_v36 = vadd.f32 %v5128_v52, %v528_v12 }
  0xe5   : > { %v1031_v20 = vpop.f32.mrf.mxu1  ;;  %v5192_v22 = vadd.f32 %v1364_v15, %v918_v19  ;;  %v1624_v24 = vmin.f32 %v1623_v21, %v5185_v18  ;;  %v1377_v21 = vadd.f32 %v5113_v47, %v528_v12 }
  0xe6   : > { %v5194_v23 = vadd.f32 %v1365_v16, %v1031_v20  ;;  %v1376_v20 = vadd.f32 %v5111_v46, %v528_v12 }
  0xe7   : > { %3582 = vst [vmem:[%s5136_s19 + $0x40] sm:$0xff] %v5192_v22  ;;  %1625 = vmin.xlane.f32.xlu0 %v1624_v24  ;;  %v497_v24 = vmul.f32 %v5260_v14, %v5260_v14 }
  0xe8   : > { %3583 = vst [vmem:[%s5136_s19 + $0x48] sm:$0xff] %v5194_v23  ;;  %v1627_v28 = vmin.f32 %v5192_v22, %v5194_v23  ;;  %v1144_v29 = vpop.f32.mrf.mxu2 }
  0xe9   : > { %v1257_v30 = vpop.f32.mrf.mxu3  ;;  %v5209_v34 = vadd.f32 %v1366_v25, %v1144_v29 }
  0xea   : > { %v5211_v35 = vadd.f32 %v1367_v26, %v1257_v30 }
  0xeb   : > { %3584 = vst [vmem:[%s5136_s19 + $0x50] sm:$0xff] %v5209_v34  ;;  %v1628_v39 = vmin.f32 %v1627_v28, %v5209_v34 }
  0xec   : > { %v921_v37 = vpop.f32.mrf.mxu0  ;;  %3585 = vst [vmem:[%s5136_s19 + $0x58] sm:$0xff] %v5211_v35 }
  0xed   : > { %v1034_v38 = vpop.f32.mrf.mxu1  ;;  %v5218_v40 = vadd.f32 %v1368_v31, %v921_v37  ;;  %v1629_v43 = vmin.f32 %v1628_v39, %v5211_v35  ;;  %v1379_v37 = vadd.f32 %v5130_v53, %v528_v12  ;;  %v5290_v39 = vld [vmem:[%s4910_s15 + $0xb0] sm:$0xff] }
  0xee   : > { %v5220_v41 = vadd.f32 %v1369_v32, %v1034_v38  ;;  %v568_v32 = vsel %vm510_vm0, %v497_v24, 0.0  ;;  %v531_v38 = vpop.xlane.xlu0 %530 }
  0xef   : > { %3586 = vst [vmem:[%s5136_s19 + $0x60] sm:$0xff] %v5218_v40  ;;  %1630 = vmin.xlane.f32.xlu2 %v1629_v43  ;;  %554 = vadd.xlane.f32.xlu0 %v553_v42  ;;  %v1383_v12 = vadd.f32 %v5130_v53, %v531_v38 }
  0xf0   : > { %3587 = vst [vmem:[%s5136_s19 + $0x68] sm:$0xff] %v5220_v41  ;;  %v1632_v50 = vmin.f32 %v5218_v40, %v5220_v41  ;;  %v1147_v51 = vpop.f32.mrf.mxu2 }
  0xf1   : > { %v1260_v56 = vpop.f32.mrf.mxu3  ;;  %v5239_v60 = vadd.f32 %v1370_v45, %v1147_v51  ;;  %v500_v51 = vmul.f32 %v5290_v39, %v5290_v39 }
  0xf2   : > { %v5241_v61 = vadd.f32 %v1371_v48, %v1260_v56  ;;  %v1380_v48 = vadd.f32 %v5111_v46, %v531_v38 }
  0xf3   : > { %3588 = vst [vmem:[%s5136_s19 + $0x70] sm:$0xff] %v5239_v60  ;;  %v1633_v3 = vmin.f32 %v1632_v50, %v5239_v60  ;;  %v1381_v50 = vadd.f32 %v5113_v47, %v531_v38 }
  0xf4   : > { %v924_v63 = vpop.f32.mrf.mxu0  ;;  %3589 = vst [vmem:[%s5136_s19 + $0x78] sm:$0xff] %v5241_v61 }
  0xf5   : > { %v1037_v2 = vpop.f32.mrf.mxu1  ;;  %v5250_v4 = vadd.f32 %v1372_v57, %v924_v63  ;;  %v1634_v9 = vmin.f32 %v1633_v3, %v5241_v61 }
  0xf6   : > { %v5252_v44 = vadd.f32 %v1373_v58, %v1037_v2  ;;  %v494_v58 = vmul.f32 %v5156_v6, %v5156_v6 }
  0xf7   : > { %3590 = vst [vmem:[%s5136_s19 + $0x80] sm:$0xff] %v5250_v4  ;;  %1635 = vmin.xlane.f32.xlu1 %v1634_v9  ;;  %557 = vadd.xlane.f32.xlu0 %v556_v5  ;;  %v577_v5 = vsel %vm510_vm0, %v500_v51, 0.0 }
  0xf8   : > { %3591 = vst [vmem:[%s5136_s19 + $0x88] sm:$0xff] %v5252_v44  ;;  %v1637_v15 = vmin.f32 %v5250_v4, %v5252_v44  ;;  %v1150_v16 = vpop.f32.mrf.mxu2  ;;  %572 = vadd.xlane.f32.xlu2 %v571_v13  ;;  %v534_v13 = vpop.xlane.xlu2 %533 }
  0xf9   : > { %v1263_v19 = vpop.f32.mrf.mxu3  ;;  %v5272_v25 = vadd.f32 %v1374_v10, %v1150_v16  ;;  %v559_v10 = vsel %vm510_vm0, %v494_v58, 0.0 }
  0xfa   : > { %v5274_v26 = vadd.f32 %v1375_v11, %v1263_v19  ;;  %v1382_v11 = vadd.f32 %v5128_v52, %v531_v38 }
  0xfb   : > { %3592 = vst [vmem:[%s5136_s19 + $0x90] sm:$0xff] %v5272_v25  ;;  %v1638_v29 = vmin.f32 %v1637_v15, %v5272_v25 }
  0xfc   : > { %v927_v27 = vpop.f32.mrf.mxu0  ;;  %3593 = vst [vmem:[%s5136_s19 + $0x98] sm:$0xff] %v5274_v26 }
  0xfd   : > { %v1040_v28 = vpop.f32.mrf.mxu1  ;;  %v5281_v30 = vadd.f32 %v1376_v20, %v927_v27  ;;  %v1639_v33 = vmin.f32 %v1638_v29, %v5274_v26  ;;  %v1384_v20 = vadd.f32 %v5111_v46, %v534_v13 }
  0xfe   : > { %v5283_v31 = vadd.f32 %v1377_v21, %v1040_v28  ;;  %v1385_v21 = vadd.f32 %v5113_v47, %v534_v13  ;;  %v335_v28 = vld [vmem:[%s4910_s15 + $0x90] sm:$0xff] }
  0xff   : > { %3594 = vst [vmem:[%s5136_s19 + $0xa0] sm:$0xff] %v5281_v30  ;;  %569 = vadd.xlane.f32.xlu1 %v568_v32  ;;  %1640 = vmin.xlane.f32.xlu0 %v1639_v33 }
 0x100   : > { %3595 = vst [vmem:[%s5136_s19 + $0xa8] sm:$0xff] %v5283_v31  ;;  %v1642_v42 = vmin.f32 %v5281_v30, %v5283_v31  ;;  %v1153_v43 = vpop.f32.mrf.mxu2  ;;  %4160 = vmatmul.msk.f32.gmra.mxu2 %vm510_vm0, %v335_v28  ;;  %4208 = vmatmul.msk.f32.gmra.mxu3 %vm510_vm0, %v335_v28 }
 0x101   : > { %v1266_v45 = vpop.f32.mrf.mxu3  ;;  %v5302_v56 = vadd.f32 %v1378_v36, %v1153_v43  ;;  %4064 = vmatmul.msk.f32.gmra.mxu0 %vm510_vm0, %v335_v28  ;;  %4112 = vmatmul.msk.f32.gmra.mxu1 %vm510_vm0, %v335_v28  ;;  %v1387_v43 = vadd.f32 %v5130_v53, %v534_v13 }
 0x102   : > { %v5304_v57 = vadd.f32 %v1379_v37, %v1266_v45  ;;  %v537_v45 = vpop.xlane.xlu1 %536 }
 0x103   : > { %3596 = vst [vmem:[%s5136_s19 + $0xb0] sm:$0xff] %v5302_v56  ;;  %v1643_v2 = vmin.f32 %v1642_v42, %v5302_v56  ;;  %v1386_v42 = vadd.f32 %v5128_v52, %v534_v13 }
 0x104   : > { %v930_v62 = vpop.f32.mrf.mxu0  ;;  %3597 = vst [vmem:[%s5136_s19 + $0xb8] sm:$0xff] %v5304_v57 }
 0x105   : > { %v1043_v63 = vpop.f32.mrf.mxu1  ;;  %v5318_v6 = vadd.f32 %v1380_v48, %v930_v62  ;;  %v1644_v9 = vmin.f32 %v1643_v2, %v5304_v57  ;;  %v495_v48 = vmul.f32 %v334_v59, %v334_v59  ;;  %v1389_v2 = vadd.f32 %v5113_v47, %v537_v45 }
 0x106   : > { %v5320_v3 = vadd.f32 %v1381_v50, %v1043_v63  ;;  %v1388_v63 = vadd.f32 %v5111_v46, %v537_v45 }
 0x107   : > { %3598 = vst [vmem:[%s5136_s19 + $0xc0] sm:$0xff] %v5318_v6  ;;  %1645 = vmin.xlane.f32.xlu2 %v1644_v9  ;;  %578 = vadd.xlane.f32.xlu1 %v577_v5  ;;  %v562_v51 = vsel %vm510_vm0, %v495_v48, 0.0 }
 0x108   : > { %3599 = vst [vmem:[%s5136_s19 + $0xc8] sm:$0xff] %v5320_v3  ;;  %v1647_v15 = vmin.f32 %v5318_v6, %v5320_v3  ;;  %560 = vadd.xlane.f32.xlu0 %v559_v10  ;;  %v1156_v16 = vpop.f32.mrf.mxu2  ;;  %4161 = vmatmul.msk.f32.gmra.mxu2 %vm510_vm0, %v5260_v14 }
 0x109   : > { %v1269_v19 = vpop.f32.mrf.mxu3  ;;  %v5335_v24 = vadd.f32 %v1382_v11, %v1156_v16  ;;  %4209 = vmatmul.msk.f32.gmra.mxu3 %vm510_vm0, %v5260_v14  ;;  %4065 = vmatmul.msk.f32.gmra.mxu0 %vm510_vm0, %v5260_v14  ;;  %v1390_v16 = vadd.f32 %v5128_v52, %v537_v45 }
 0x10a   : > { %v5337_v27 = vadd.f32 %v1383_v12, %v1269_v19  ;;  %4113 = vmatmul.msk.f32.gmra.mxu1 %vm510_vm0, %v5260_v14  ;;  %v1391_v19 = vadd.f32 %v5130_v53, %v537_v45 }
 0x10b   : > { %3600 = vst [vmem:[%s5136_s19 + $0xd0] sm:$0xff] %v5335_v24  ;;  %v1648_v33 = vmin.f32 %v1647_v15, %v5335_v24 }
 0x10c   : > { %v933_v29 = vpop.f32.mrf.mxu0  ;;  %3601 = vst [vmem:[%s5136_s19 + $0xd8] sm:$0xff] %v5337_v27 }
 0x10d   : > { %v1046_v32 = vpop.f32.mrf.mxu1  ;;  %v5349_v36 = vadd.f32 %v1384_v20, %v933_v29  ;;  %v1649_v38 = vmin.f32 %v1648_v33, %v5337_v27  ;;  %v540_v20 = vpop.xlane.xlu0 %539 }
 0x10e   : > { %v5351_v37 = vadd.f32 %v1385_v21, %v1046_v32  ;;  %v496_v21 = vmul.f32 %v335_v28, %v335_v28 }
 0x10f   : > { %3602 = vst [vmem:[%s5136_s19 + $0xe0] sm:$0xff] %v5349_v36  ;;  %1650 = vmin.xlane.f32.xlu1 %v1649_v38  ;;  %v1392_v38 = vadd.f32 %v5111_v46, %v540_v20 }
 0x110   : > { %3603 = vst [vmem:[%s5136_s19 + $0xe8] sm:$0xff] %v5351_v37  ;;  %v1652_v50 = vmin.f32 %v5349_v36, %v5351_v37  ;;  %v1159_v58 = vpop.f32.mrf.mxu2  ;;  %563 = vadd.xlane.f32.xlu0 %v562_v51  ;;  %v565_v29 = vsel %vm510_vm0, %v496_v21, 0.0  ;;  %4162 = vmatmul.msk.f32.gmra.mxu2 %vm510_vm0, %v5229_v49 }
 0x111   : > { %v1272_v62 = vpop.f32.mrf.mxu3  ;;  %v5365_v5 = vadd.f32 %v1386_v42, %v1159_v58  ;;  %v1393_v42 = vadd.f32 %v5113_v47, %v540_v20  ;;  %4210 = vmatmul.msk.f32.gmra.mxu3 %vm510_vm0, %v5229_v49  ;;  %4066 = vmatmul.msk.f32.gmra.mxu0 %vm510_vm0, %v5229_v49 }
 0x112   : > { %v5367_v59 = vadd.f32 %v1387_v43, %v1272_v62  ;;  %4114 = vmatmul.msk.f32.gmra.mxu1 %vm510_vm0, %v5229_v49  ;;  %v338_v62 = vld [vmem:[%s4910_s15 + $0xa8] sm:$0xff] }
 0x113   : > { %3604 = vst [vmem:[%s5136_s19 + $0xf0] sm:$0xff] %v5365_v5  ;;  %v1653_v11 = vmin.f32 %v1652_v50, %v5365_v5 }
 0x114   : > { %v936_v9 = vpop.f32.mrf.mxu0  ;;  %3605 = vst [vmem:[%s5136_s19 + $0xf8] sm:$0xff] %v5367_v59 }
 0x115   : > { %v1049_v10 = vpop.f32.mrf.mxu1  ;;  %v5382_v12 = vadd.f32 %v1388_v63, %v936_v9  ;;  %v1654_v15 = vmin.f32 %v1653_v11, %v5367_v59  ;;  %v1395_v9 = vadd.f32 %v5130_v53, %v540_v20  ;;  %v499_v11 = vmul.f32 %v338_v62, %v338_v62 }
 0x116   : > { %v5384_v13 = vadd.f32 %v1389_v2, %v1049_v10  ;;  %v1394_v2 = vadd.f32 %v5128_v52, %v540_v20  ;;  %v543_v10 = vpop.xlane.xlu2 %542 }
 0x117   : > { %3606 = vst [vmem:[%s5136_s19 + $0x100] sm:$0xff] %v5382_v12  ;;  %1655 = vmin.xlane.f32.xlu1 %v1654_v15  ;;  %v574_v15 = vsel %vm510_vm0, %v499_v11, 0.0  ;;  %v1396_v21 = vadd.f32 %v5111_v46, %v543_v10  ;;  %v1397_v20 = vadd.f32 %v5113_v47, %v543_v10 }
 0x118   : > { %3607 = vst [vmem:[%s5136_s19 + $0x108] sm:$0xff] %v5384_v13  ;;  %v1657_v14 = vmin.f32 %v5382_v12, %v5384_v13  ;;  %v1162_v32 = vpop.f32.mrf.mxu2  ;;  %566 = vadd.xlane.f32.xlu0 %v565_v29  ;;  %4163 = vmatmul.msk.f32.gmra.mxu2 %vm510_vm0, %v338_v62 }
 0x119   : > { %v1275_v33 = vpop.f32.mrf.mxu3  ;;  %v5398_v28 = vadd.f32 %v1390_v16, %v1162_v32  ;;  %4211 = vmatmul.msk.f32.gmra.mxu3 %vm510_vm0, %v338_v62  ;;  %4067 = vmatmul.msk.f32.gmra.mxu0 %vm510_vm0, %v338_v62 }
 0x11a   : > { %v5400_v43 = vadd.f32 %v1391_v19, %v1275_v33  ;;  %4115 = vmatmul.msk.f32.gmra.mxu1 %vm510_vm0, %v338_v62 }
 0x11b   : > { %3608 = vst [vmem:[%s5136_s19 + $0x110] sm:$0xff] %v5398_v28  ;;  %v1658_v50 = vmin.f32 %v1657_v14, %v5398_v28 }
 0x11c   : > { %7754 = vst [vmem:[#allocation5_spill] sm:$0xff] %v5400_v43  ;;  %v939_v45 = vpop.f32.mrf.mxu0 }
 0x11d   : > { %v1052_v48 = vpop.f32.mrf.mxu1  ;;  %3609 = vst [vmem:[%s5136_s19 + $0x118] sm:$0xff] %v5400_v43  ;;  %v5415_v51 = vadd.f32 %v1392_v38, %v939_v45  ;;  %v1659_v63 = vmin.f32 %v1658_v50, %v5400_v43  ;;  %v1398_v50 = vadd.f32 %v5128_v52, %v543_v10 }
 0x11e   : > { %v5417_v58 = vadd.f32 %v1393_v42, %v1052_v48 }
 0x11f   : > { %7755 = vst [vmem:[#allocation6_spill] sm:$0xff] %v5415_v51  ;;  %1660 = vmin.xlane.f32.xlu1 %v1659_v63  ;;  %v1399_v63 = vadd.f32 %v5130_v53, %v543_v10  ;;  %v549_v10 = vpop.xlane.xlu0 %548 }
 0x120   : > { %7756 = vst [vmem:[#allocation7_spill] sm:$0xff] %v5417_v58  ;;  %v1662_v49 = vmin.f32 %v5415_v51, %v5417_v58  ;;  %v1165_v16 = vpop.f32.mrf.mxu2  ;;  %575 = vadd.xlane.f32.xlu0 %v574_v15  ;;  %4164 = vmatmul.msk.f32.gmra.mxu2 %vm510_vm0, %v5290_v39 }
 0x121   : > { %3610 = vst [vmem:[%s5136_s19 + $0x120] sm:$0xff] %v5415_v51  ;;  %v1278_v19 = vpop.f32.mrf.mxu3  ;;  %v5432_v14 = vadd.f32 %v1394_v2, %v1165_v16  ;;  %v546_v2 = vpop.xlane.xlu1 %545  ;;  %4212 = vmatmul.msk.f32.gmra.mxu3 %vm510_vm0, %v5290_v39  ;;  %4068 = vmatmul.msk.f32.gmra.mxu0 %vm510_vm0, %v5290_v39 }
 0x122   : > { %3611 = vst [vmem:[%s5136_s19 + $0x128] sm:$0xff] %v5417_v58  ;;  %v5434_v29 = vadd.f32 %v1395_v9, %v1278_v19  ;;  %v1401_v15 = vadd.f32 %v5113_v47, %v546_v2  ;;  %4116 = vmatmul.msk.f32.gmra.mxu1 %vm510_vm0, %v5290_v39 }
 0x123   : > { %7757 = vst [vmem:[#allocation8_spill] sm:$0xff] %v5432_v14  ;;  %v1663_v38 = vmin.f32 %v1662_v49, %v5432_v14  ;;  %v1400_v49 = vadd.f32 %v5111_v46, %v546_v2 }
 0x124   : > { %7758 = vst [vmem:[#allocation9_spill] sm:$0xff] %v5434_v29  ;;  %v942_v32 = vpop.f32.mrf.mxu0 }
 0x125   : > { %3612 = vst [vmem:[%s5136_s19 + $0x130] sm:$0xff] %v5432_v14  ;;  %v1055_v33 = vpop.f32.mrf.mxu1  ;;  %v5445_v42 = vadd.f32 %v1396_v21, %v942_v32  ;;  %v1664_v48 = vmin.f32 %v1663_v38, %v5434_v29 }
 0x126   : > { %3613 = vst [vmem:[%s5136_s19 + $0x138] sm:$0xff] %v5434_v29  ;;  %v5447_v45 = vadd.f32 %v1397_v20, %v1055_v33 }
 0x127   : > { %7759 = vst [vmem:[#allocation10_spill] sm:$0xff] %v5445_v42  ;;  %1665 = vmin.xlane.f32.xlu1 %v1664_v48 }
 0x128   : > { %7760 = vst [vmem:[#allocation11_spill] sm:$0xff] %v5447_v45  ;;  %v1667_v62 = vmin.f32 %v5445_v42, %v5447_v45  ;;  %v1168_v9 = vpop.f32.mrf.mxu2 }
 0x129   : > { %3614 = vst [vmem:[%s5136_s19 + $0x140] sm:$0xff] %v5445_v42  ;;  %v1281_v11 = vpop.f32.mrf.mxu3  ;;  %v5460_v16 = vadd.f32 %v1398_v50, %v1168_v9  ;;  %v1402_v50 = vadd.f32 %v5128_v52, %v546_v2 }
 0x12a   : > { %3615 = vst [vmem:[%s5136_s19 + $0x148] sm:$0xff] %v5447_v45  ;;  %v5462_v19 = vadd.f32 %v1399_v63, %v1281_v11  ;;  %v1403_v63 = vadd.f32 %v5130_v53, %v546_v2  ;;  %v1404_v11 = vadd.f32 %v5111_v46, %v549_v10 }
 0x12b   : > { %7761 = vst [vmem:[#allocation12_spill] sm:$0xff] %v5460_v16  ;;  %v1668_v32 = vmin.f32 %v1667_v62, %v5460_v16 }
 0x12c   : > { %7762 = vst [vmem:[#allocation13_spill] sm:$0xff] %v5462_v19  ;;  %v945_v21 = vpop.f32.mrf.mxu0 }
 0x12d   : > { %3616 = vst [vmem:[%s5136_s19 + $0x150] sm:$0xff] %v5460_v16  ;;  %v1058_v20 = vpop.f32.mrf.mxu1  ;;  %v5477_v33 = vadd.f32 %v1400_v49, %v945_v21  ;;  %v1669_v48 = vmin.f32 %v1668_v32, %v5462_v19  ;;  %v1405_v49 = vadd.f32 %v5113_v47, %v549_v10 }
 0x12e   : > { %3617 = vst [vmem:[%s5136_s19 + $0x158] sm:$0xff] %v5462_v19  ;;  %v5479_v38 = vadd.f32 %v1401_v15, %v1058_v20 }
 0x12f   : > { %7763 = vst [vmem:[#allocation14_spill] sm:$0xff] %v5477_v33  ;;  %1670 = vmin.xlane.f32.xlu1 %v1669_v48 }
 0x130   : > { %7764 = vst [vmem:[#allocation15_spill] sm:$0xff] %v5479_v38  ;;  %v1672_v39 = vmin.f32 %v5477_v33, %v5479_v38  ;;  %v1171_v62 = vpop.f32.mrf.mxu2 }
 0x131   : > { %3618 = vst [vmem:[%s5136_s19 + $0x160] sm:$0xff] %v5477_v33  ;;  %v1284_v9 = vpop.f32.mrf.mxu3  ;;  %v5492_v15 = vadd.f32 %v1402_v50, %v1171_v62  ;;  %v1406_v50 = vadd.f32 %v5128_v52, %v549_v10  ;;  %v552_v62 = vpop.xlane.xlu0 %551 }
 0x132   : > { %3619 = vst [vmem:[%s5136_s19 + $0x168] sm:$0xff] %v5479_v38  ;;  %v5494_v21 = vadd.f32 %v1403_v63, %v1284_v9  ;;  %v1407_v63 = vadd.f32 %v5130_v53, %v549_v10 }
 0x133   : > { %7765 = vst [vmem:[#allocation16_spill] sm:$0xff] %v5492_v15  ;;  %v1673_v32 = vmin.f32 %v1672_v39, %v5492_v15 }
 0x134   : > { %7766 = vst [vmem:[#allocation17_spill] sm:$0xff] %v5494_v21  ;;  %v948_v2 = vpop.f32.mrf.mxu0 }
 0x135   : > { %3620 = vst [vmem:[%s5136_s19 + $0x170] sm:$0xff] %v5492_v15  ;;  %v1061_v20 = vpop.f32.mrf.mxu1  ;;  %v5501_v48 = vadd.f32 %v1404_v11, %v948_v2  ;;  %v1674_v38 = vmin.f32 %v1673_v32, %v5494_v21  ;;  %v1409_v2 = vadd.f32 %v5113_v47, %v552_v62 }
 0x136   : > { %3621 = vst [vmem:[%s5136_s19 + $0x178] sm:$0xff] %v5494_v21  ;;  %v5503_v19 = vadd.f32 %v1405_v49, %v1061_v20  ;;  %v1408_v49 = vadd.f32 %v5111_v46, %v552_v62 }
 0x137   : > { %7767 = vst [vmem:[#allocation18_spill] sm:$0xff] %v5501_v48  ;;  %1675 = vmin.xlane.f32.xlu1 %v1674_v38 }
 0x138   : > { %7768 = vst [vmem:[#allocation19_spill] sm:$0xff] %v5503_v19  ;;  %v1677_v39 = vmin.f32 %v5501_v48, %v5503_v19  ;;  %v1174_v9 = vpop.f32.mrf.mxu2 }
 0x139   : > { %3622 = vst [vmem:[%s5136_s19 + $0x180] sm:$0xff] %v5501_v48  ;;  %v1287_v11 = vpop.f32.mrf.mxu3  ;;  %v5516_v20 = vadd.f32 %v1406_v50, %v1174_v9  ;;  %v1410_v50 = vadd.f32 %v5128_v52, %v552_v62 }
 0x13a   : > { %3623 = vst [vmem:[%s5136_s19 + $0x188] sm:$0xff] %v5503_v19  ;;  %v5518_v10 = vadd.f32 %v1407_v63, %v1287_v11  ;;  %v1411_v63 = vadd.f32 %v5130_v53, %v552_v62 }
 0x13b   : > { %7769 = vst [vmem:[#allocation20_spill] sm:$0xff] %v5516_v20  ;;  %v1678_v38 = vmin.f32 %v1677_v39, %v5516_v20 }
 0x13c   : > { %7770 = vst [vmem:[#allocation21_spill] sm:$0xff] %v5518_v10  ;;  %v951_v32 = vpop.f32.mrf.mxu0 }
 0x13d   : > { %3624 = vst [vmem:[%s5136_s19 + $0x190] sm:$0xff] %v5516_v20  ;;  %v1064_v21 = vpop.f32.mrf.mxu1  ;;  %v5525_v19 = vadd.f32 %v1408_v49, %v951_v32  ;;  %v1679_v15 = vmin.f32 %v1678_v38, %v5518_v10  ;;  %v1612_v32 = vlaneseq }
 0x13e   : > { %3625 = vst [vmem:[%s5136_s19 + $0x198] sm:$0xff] %v5518_v10  ;;  %v5527_v48 = vadd.f32 %v1409_v2, %v1064_v21 }
 0x13f   : > { %7771 = vst [vmem:[#allocation22_spill] sm:$0xff] %v5525_v19  ;;  %1680 = vmin.xlane.f32.xlu2 %v1679_v15  ;;  %v5548_v15 = vand.u32 127, %v1612_v32 }
 0x140   : > { %7772 = vst [vmem:[#allocation23_spill] sm:$0xff] %v5527_v48  ;;  %v1682_v39 = vmin.f32 %v5525_v19, %v5527_v48  ;;  %v1177_v9 = vpop.f32.mrf.mxu2 }
 0x141   : > { %3626 = vst [vmem:[%s5136_s19 + $0x1a0] sm:$0xff] %v5525_v19  ;;  %v1290_v11 = vpop.f32.mrf.mxu3  ;;  %v5538_v49 = vadd.f32 %v1410_v50, %v1177_v9  ;;  %v5555_v50 = vadd.s32 128, %v5548_v15 }
 0x142   : > { %3627 = vst [vmem:[%s5136_s19 + $0x1a8] sm:$0xff] %v5527_v48  ;;  %v5540_v21 = vadd.f32 %v1411_v63, %v1290_v11 }
 0x143   : > { %7773 = vst [vmem:[#allocation24_spill] sm:$0xff] %v5538_v49  ;;  %v1683_v2 = vmin.f32 %v1682_v39, %v5538_v49 }
 0x144   : > { %7774 = vst [vmem:[#allocation25_spill] sm:$0xff] %v5540_v21  ;;  %v954_v63 = vpop.f32.mrf.mxu0 }
 0x145   : > { %3628 = vst [vmem:[%s5136_s19 + $0x1b0] sm:$0xff] %v5538_v49  ;;  %v1684_v62 = vmin.f32 %v1683_v2, %v5540_v21  ;;  %v1067_v39 = vpop.f32.mrf.mxu1  ;;  %v5568_v49 = vadd.s32 256, %v5548_v15 }
 0x146   : > { %3629 = vst [vmem:[%s5136_s19 + $0x1b8] sm:$0xff] %v5540_v21 }
 0x147   : > { %1685 = vmin.xlane.f32.xlu0 %v1684_v62 }
 0x148   : > { %v1180_v9 = vpop.f32.mrf.mxu2 }
 0x149   : > { %v1293_v32 = vpop.f32.mrf.mxu3 }
 0x152   : > { %v5552_v10 = vpop.xlane.xlu1 %1620 }
 0x153   : > { %vm1777_vm1 = vcmp.eq.f32.partialorder %v5132_v54, %v5552_v10  ;;  %vm1778_vm2 = vcmp.eq.f32.partialorder %v5134_v55, %v5552_v10  ;;  %vm1779_vm8 = vcmp.eq.f32.partialorder %v5148_v0, %v5552_v10  ;;  %vm1780_vm11 = vcmp.eq.f32.partialorder %v5150_v1, %v5552_v10 }
 0x154   : > { %v1905_v11 = vsel %vm1777_vm1, %v5548_v15, 512  ;;  %v1906_v2 = vsel %vm1778_vm2, %v5555_v50, 512  ;;  %v1907_v0 = vsel %vm1779_vm8, %v5568_v49, 512 }
 0x155   : > { %vm2033_vm5 = vcmp.lt.s32.totalorder %v1905_v11, %v1906_v2 }
 0x15a   : > { %v5550_v38 = vpop.xlane.xlu0 %1625 }
 0x15b   : > { %vm1781_vm3 = vcmp.eq.f32.partialorder %v5160_v7, %v5550_v38  ;;  %vm1782_vm4 = vcmp.eq.f32.partialorder %v5162_v8, %v5550_v38  ;;  %vm1783_vm10 = vcmp.eq.f32.partialorder %v5183_v17, %v5550_v38 }
 0x15c   : > { %v1909_v7 = vsel %vm1781_vm3, %v5548_v15, 512  ;;  %v1910_v20 = vsel %vm1782_vm4, %v5555_v50, 512  ;;  %v1911_v42 = vsel %vm1783_vm10, %v5568_v49, 512  ;;  %vm1784_vm3 = vcmp.eq.f32.partialorder %v5185_v18, %v5550_v38 }
 0x15d   : > { %vm2053_vm9 = vcmp.lt.s32.totalorder %v1909_v7, %v1910_v20 }
 0x162   : > { %v555_v62 = vpop.xlane.xlu0 %554  ;;  %v5565_v21 = vpop.xlane.xlu2 %1630 }
 0x163   : > { %v1412_v54 = vadd.f32 %v5111_v46, %v555_v62  ;;  %v1413_v55 = vadd.f32 %v5113_v47, %v555_v62  ;;  %v1414_v48 = vadd.f32 %v5128_v52, %v555_v62  ;;  %v1415_v19 = vadd.f32 %v5130_v53, %v555_v62  ;;  %v1070_v62 = vpop.f32.mrf.mxu1 }
 0x164   : > { %vm1785_vm6 = vcmp.eq.f32.partialorder %v5192_v22, %v5565_v21  ;;  %vm1786_vm7 = vcmp.eq.f32.partialorder %v5194_v23, %v5565_v21  ;;  %vm1787_vm14 = vcmp.eq.f32.partialorder %v5209_v34, %v5565_v21 }
 0x165   : > { %v5581_v8 = vadd.f32 %v1412_v54, %v954_v63  ;;  %v5584_v33 = vadd.f32 %v1413_v55, %v1067_v39  ;;  %v5586_v16 = vadd.f32 %v1414_v48, %v1180_v9  ;;  %v5588_v45 = vadd.f32 %v1415_v19, %v1293_v32  ;;  %v957_v9 = vpop.f32.mrf.mxu0  ;;  %v1183_v32 = vpop.f32.mrf.mxu2 }
 0x166   : > { %v1913_v22 = vsel %vm1785_vm6, %v5548_v15, 512  ;;  %v1914_v23 = vsel %vm1786_vm7, %v5555_v50, 512  ;;  %v2034_v63 = vsel %vm2033_vm5, %v1905_v11, %v1906_v2  ;;  %v5611_v11 = vadd.s32 384, %v5548_v15  ;;  %v1296_v54 = vpop.f32.mrf.mxu3 }
 0x167   : > { %7775 = vst [vmem:[#allocation26_spill] sm:$0xff] %v5581_v8  ;;  %v1687_v39 = vmin.f32 %v5581_v8, %v5584_v33  ;;  %vm2073_vm12 = vcmp.lt.s32.totalorder %v1913_v22, %v1914_v23  ;;  %vm2035_vm13 = vcmp.lt.s32.totalorder %v2034_v63, %v1907_v0  ;;  %vm1788_vm5 = vcmp.eq.f32.partialorder %v5211_v35, %v5565_v21 }
 0x168   : > { %7776 = vst [vmem:[#allocation27_spill] sm:$0xff] %v5584_v33  ;;  %v1916_v35 = vsel %vm1788_vm5, %v5611_v11, 512 }
 0x169   : > { %3630 = vst [vmem:[%s5136_s19 + $0x1c0] sm:$0xff] %v5581_v8  ;;  %v2054_v8 = vsel %vm2053_vm9, %v1909_v7, %v1910_v20  ;;  %v1688_v29 = vmin.f32 %v1687_v39, %v5586_v16  ;;  %v1915_v20 = vsel %vm1787_vm14, %v5568_v49, 512  ;;  %v2036_v7 = vsel %vm2035_vm13, %v2034_v63, %v1907_v0 }
 0x16a   : > { %3631 = vst [vmem:[%s5136_s19 + $0x1c8] sm:$0xff] %v5584_v33  ;;  %v5601_v48 = vpop.xlane.xlu1 %1635  ;;  %v558_v19 = vpop.xlane.xlu0 %557  ;;  %vm2055_vm2 = vcmp.lt.s32.totalorder %v2054_v8, %v1911_v42  ;;  %v1912_v63 = vsel %vm1784_vm3, %v5611_v11, 512 }
 0x16b   : > { %3632 = vst [vmem:[%s5136_s19 + $0x1d0] sm:$0xff] %v5586_v16  ;;  %v1416_v2 = vadd.f32 %v5111_v46, %v558_v19  ;;  %v1417_v55 = vadd.f32 %v5113_v47, %v558_v19  ;;  %v1418_v17 = vadd.f32 %v5128_v52, %v558_v19  ;;  %v1419_v33 = vadd.f32 %v5130_v53, %v558_v19  ;;  %v1073_v10 = vpop.f32.mrf.mxu1 }
 0x16c   : > { %3633 = vst [vmem:[%s5136_s19 + $0x1d8] sm:$0xff] %v5588_v45  ;;  %v2074_v19 = vsel %vm2073_vm12, %v1913_v22, %v1914_v23  ;;  %vm1789_vm15 = vcmp.eq.f32.partialorder %v5218_v40, %v5601_v48  ;;  %vm1790_vm1 = vcmp.eq.f32.partialorder %v5220_v41, %v5601_v48  ;;  %v1689_v34 = vmin.f32 %v1688_v29, %v5588_v45 }
 0x16d   : > { %v5623_v43 = vadd.f32 %v1416_v2, %v957_v9  ;;  %v5626_v14 = vadd.f32 %v1417_v55, %v1070_v62  ;;  %v5628_v58 = vadd.f32 %v1418_v17, %v1183_v32  ;;  %v5630_v51 = vadd.f32 %v1419_v33, %v1296_v54  ;;  %v5667_v9 = vpop.xlane.xlu2 %572 }
 0x16e   : > { %1690 = vmin.xlane.f32.xlu1 %v1689_v34  ;;  %vm2075_vm4 = vcmp.lt.s32.totalorder %v2074_v19, %v1915_v20  ;;  %v1917_v29 = vsel %vm1789_vm15, %v5548_v15, 512  ;;  %v1918_v22 = vsel %vm1790_vm1, %v5555_v50, 512  ;;  %v1908_v23 = vsel %vm1780_vm11, %v5611_v11, 512  ;;  %v1186_v34 = vpop.f32.mrf.mxu2 }
 0x16f   : > { %7777 = vst [vmem:[#allocation28_spill] sm:$0xff] %v5630_v51  ;;  %v1692_v33 = vmin.f32 %v5623_v43, %v5626_v14  ;;  %v2056_v18 = vsel %vm2055_vm2, %v2054_v8, %v1911_v42  ;;  %vm2037_vm6 = vcmp.lt.s32.totalorder %v2036_v7, %v1908_v23  ;;  %v2076_v39 = vsel %vm2075_vm4, %v2074_v19, %v1915_v20  ;;  %v960_v42 = vpop.f32.mrf.mxu0 }
 0x170   : > { %3634 = vst [vmem:[%s5136_s19 + $0x1e0] sm:$0xff] %v5623_v43  ;;  %vm2093_vm7 = vcmp.lt.s32.totalorder %v1917_v29, %v1918_v22  ;;  %vm2057_vm8 = vcmp.lt.s32.totalorder %v2056_v18, %v1912_v63  ;;  %v5673_v1 = vsel %vm2037_vm6, %v2036_v7, %v1908_v23  ;;  %vm1791_vm11 = vcmp.eq.f32.partialorder %v5239_v60, %v5601_v48 }
 0x171   : > { %3635 = vst [vmem:[%s5136_s19 + $0x1e8] sm:$0xff] %v5626_v14  ;;  %v1693_v38 = vmin.f32 %v1692_v33, %v5628_v58  ;;  %vm2077_vm12 = vcmp.lt.s32.totalorder %v2076_v39, %v1916_v35  ;;  %v5678_v21 = vsel %vm2057_vm8, %v2056_v18, %v1912_v63  ;;  %v2094_v8 = vsel %vm2093_vm7, %v1917_v29, %v1918_v22  ;;  %v1299_v22 = vpop.f32.mrf.mxu3 }
 0x172   : > { %3636 = vst [vmem:[%s5136_s19 + $0x1f0] sm:$0xff] %v5628_v58  ;;  %v5650_v40 = vpop.xlane.xlu1 %569  ;;  %v5652_v41 = vpop.xlane.xlu0 %1640  ;;  %v1919_v32 = vsel %vm1791_vm11, %v5568_v49, 512  ;;  %v5686_v55 = vsel %vm2077_vm12, %v2076_v39, %v1916_v35  ;;  %v2060_v17 = vshra.s32 %v5678_v21, 16  ;;  %vm1792_vm15 = vcmp.eq.f32.partialorder %v5241_v61, %v5601_v48 }
 0x173   : > { %3637 = vst [vmem:[%s5136_s19 + $0x1f8] sm:$0xff] %v5630_v51  ;;  %v1694_v0 = vmin.f32 %v1693_v38, %v5630_v51  ;;  %vm1793_vm9 = vcmp.eq.f32.partialorder %v5250_v4, %v5652_v41  ;;  %vm1794_vm10 = vcmp.eq.f32.partialorder %v5252_v44, %v5652_v41  ;;  %v2040_v44 = vshra.s32 %v5673_v1, 16  ;;  %v1076_v35 = vpop.f32.mrf.mxu1 }
 0x174   : > { %v1921_v62 = vsel %vm1793_vm9, %v5548_v15, 512  ;;  %v1922_v4 = vsel %vm1794_vm10, %v5555_v50, 512  ;;  %vm2095_vm13 = vcmp.lt.s32.totalorder %v2094_v8, %v1919_v32  ;;  %v2080_v23 = vshra.s32 %v5686_v55, 16 }
 0x175   : > { %1695 = vmin.xlane.f32.xlu2 %v1694_v0  ;;  %vm2113_vm14 = vcmp.lt.s32.totalorder %v1921_v62, %v1922_v4  ;;  %v5697_v29 = vcvt.s32.f32 %v2040_v44  ;;  %vm1795_vm1 = vcmp.eq.f32.partialorder %v5272_v25, %v5652_v41  ;;  %v2096_v38 = vsel %vm2095_vm13, %v2094_v8, %v1919_v32 }
 0x176   : > { %v2114_v39 = vsel %vm2113_vm14, %v1921_v62, %v1922_v4  ;;  %v1920_v32 = vsel %vm1792_vm15, %v5611_v11, 512  ;;  %vm1796_vm2 = vcmp.eq.f32.partialorder %v5274_v26, %v5652_v41  ;;  %v1923_v62 = vsel %vm1795_vm1, %v5568_v49, 512 }
 0x177   : > { %v963_v0 = vpop.f32.mrf.mxu0  ;;  %vm2097_vm3 = vcmp.lt.s32.totalorder %v2096_v38, %v1920_v32  ;;  %vm2115_vm7 = vcmp.lt.s32.totalorder %v2114_v39, %v1923_v62 }
 0x179   : > { %v1302_v41 = vpop.f32.mrf.mxu3 }
 0x17a   : > { %v5682_v2 = vpop.xlane.xlu1 %578 }
 0x17b   : > { %v561_v54 = vpop.xlane.xlu0 %560 }
 0x17c   : > { %v1420_v60 = vadd.f32 %v5111_v46, %v561_v54  ;;  %v1421_v19 = vadd.f32 %v5113_v47, %v561_v54  ;;  %v1422_v20 = vadd.f32 %v5128_v52, %v561_v54  ;;  %v1423_v33 = vadd.f32 %v5130_v53, %v561_v54 }
 0x17d   : > { %2043 = vmin.xlane.f32.xlu2 %v5697_v29  ;;  %v5732_v54 = vcvt.s32.f32 %v2080_v23 }
 0x17e   : > { %v5695_v7 = vadd.f32 %v1420_v60, %v960_v42  ;;  %v5702_v18 = vadd.f32 %v1421_v19, %v1073_v10  ;;  %v5707_v63 = vadd.f32 %v1422_v20, %v1186_v34  ;;  %v5710_v42 = vpop.xlane.xlu2 %1645  ;;  %v5714_v44 = vadd.f32 %v1423_v33, %v1299_v22 }
 0x17f   : > { %v5716_v10 = vcvt.s32.f32 %v2060_v17  ;;  %vm1797_vm8 = vcmp.eq.f32.partialorder %v5281_v30, %v5710_v42  ;;  %vm1798_vm9 = vcmp.eq.f32.partialorder %v5283_v31, %v5710_v42  ;;  %v1924_v20 = vsel %vm1796_vm2, %v5611_v11, 512 }
 0x180   : > { %7778 = vst [vmem:[#allocation29_spill] sm:$0xff] %v5702_v18  ;;  %v1697_v8 = vmin.f32 %v5695_v7, %v5702_v18  ;;  %v2116_v33 = vsel %vm2115_vm7, %v2114_v39, %v1923_v62  ;;  %v1925_v23 = vsel %vm1797_vm8, %v5548_v15, 512  ;;  %v966_v39 = vpop.f32.mrf.mxu0  ;;  %v1926_v30 = vsel %vm1798_vm9, %v5555_v50, 512 }
 0x181   : > { %3638 = vst [vmem:[%s5136_s19 + $0x200] sm:$0xff] %v5695_v7  ;;  %vm2117_vm14 = vcmp.lt.s32.totalorder %v2116_v33, %v1924_v20  ;;  %vm1799_vm15 = vcmp.eq.f32.partialorder %v5302_v56, %v5710_v42  ;;  %v1432_v56 = vadd.f32 %v5111_v46, %v5650_v40 }
 0x182   : > { %7779 = vst [vmem:[#allocation30_spill] sm:$0xff] %v5707_v63  ;;  %v1651_v4 = vpop.xlane.xlu1 %1650  ;;  %v1698_v48 = vmin.f32 %v1697_v8, %v5707_v63 }
 0x183   : > { %3639 = vst [vmem:[%s5136_s19 + $0x208] sm:$0xff] %v5702_v18  ;;  %vm1801_vm4 = vcmp.eq.f32.partialorder %v5318_v6, %v1651_v4  ;;  %vm1802_vm5 = vcmp.eq.f32.partialorder %v5320_v3, %v1651_v4  ;;  %vm1803_vm6 = vcmp.eq.f32.partialorder %v5335_v24, %v1651_v4  ;;  %vm1804_vm10 = vcmp.eq.f32.partialorder %v5337_v27, %v1651_v4  ;;  %v564_v3 = vpop.xlane.xlu0 %563  ;;  %v1189_v24 = vpop.f32.mrf.mxu2 }
 0x184   : > { %7780 = vst [vmem:[#allocation31_spill] sm:$0xff] %v5714_v44  ;;  %v1929_v61 = vsel %vm1801_vm4, %v5548_v15, 512  ;;  %v1930_v25 = vsel %vm1802_vm5, %v5555_v50, 512  ;;  %v1931_v6 = vsel %vm1803_vm6, %v5568_v49, 512  ;;  %v1699_v60 = vmin.f32 %v1698_v48, %v5714_v44  ;;  %v1079_v48 = vpop.f32.mrf.mxu1 }
 0x185   : > { %3640 = vst [vmem:[%s5136_s19 + $0x210] sm:$0xff] %v5707_v63  ;;  %vm2153_vm11 = vcmp.lt.s32.totalorder %v1929_v61, %v1930_v25  ;;  %v1424_v19 = vadd.f32 %v5111_v46, %v564_v3  ;;  %v1425_v34 = vadd.f32 %v5113_v47, %v564_v3  ;;  %v1426_v22 = vadd.f32 %v5128_v52, %v564_v3 }
 0x186   : > { %3641 = vst [vmem:[%s5136_s19 + $0x218] sm:$0xff] %v5714_v44  ;;  %v2154_v17 = vsel %vm2153_vm11, %v1929_v61, %v1930_v25  ;;  %2063 = vmin.xlane.f32.xlu2 %v5716_v10  ;;  %1700 = vmin.xlane.f32.xlu0 %v1699_v60  ;;  %v1932_v8 = vsel %vm1804_vm10, %v5611_v11, 512  ;;  %v1427_v25 = vadd.f32 %v5130_v53, %v564_v3 }
 0x187   : > { %vm2155_vm12 = vcmp.lt.s32.totalorder %v2154_v17, %v1931_v6  ;;  %v5765_v26 = vadd.f32 %v1424_v19, %v963_v0  ;;  %v5771_v62 = vadd.f32 %v1425_v34, %v1076_v35  ;;  %v5777_v0 = vsel %vm2097_vm3, %v2096_v38, %v1920_v32 }
 0x188   : > { %v2156_v61 = vsel %vm2155_vm12, %v2154_v17, %v1931_v6  ;;  %v5781_v6 = vadd.f32 %v1426_v22, %v1189_v24  ;;  %vm2133_vm5 = vcmp.lt.s32.totalorder %v1925_v23, %v1926_v30  ;;  %v2100_v19 = vshra.s32 %v5777_v0, 16 }
 0x189   : > { %vm2157_vm13 = vcmp.lt.s32.totalorder %v2156_v61, %v1932_v8  ;;  %3642 = vst [vmem:[%s5136_s19 + $0x220] sm:$0xff] %v5765_v26  ;;  %v2134_v34 = vsel %vm2133_vm5, %v1925_v23, %v1926_v30  ;;  %v1305_v23 = vpop.f32.mrf.mxu3  ;;  %v969_v30 = vpop.f32.mrf.mxu0  ;;  %vm1800_vm12 = vcmp.eq.f32.partialorder %v5304_v57, %v5710_v42 }
 0x18a   : > { %v1656_v27 = vpop.xlane.xlu1 %1655  ;;  %v5774_v4 = vsel %vm2157_vm13, %v2156_v61, %v1932_v8  ;;  %3643 = vst [vmem:[%s5136_s19 + $0x228] sm:$0xff] %v5771_v62 }
 0x18b   : > { %vm1805_vm1 = vcmp.eq.f32.partialorder %v5349_v36, %v1656_v27  ;;  %vm1806_vm2 = vcmp.eq.f32.partialorder %v5351_v37, %v1656_v27  ;;  %vm1807_vm4 = vcmp.eq.f32.partialorder %v5365_v5, %v1656_v27  ;;  %v2160_v35 = vshra.s32 %v5774_v4, 16  ;;  %3644 = vst [vmem:[%s5136_s19 + $0x230] sm:$0xff] %v5781_v6  ;;  %v567_v5 = vpop.xlane.xlu0 %566  ;;  %v1192_v32 = vpop.f32.mrf.mxu2 }
 0x18c   : > { %v1933_v31 = vsel %vm1805_vm1, %v5548_v15, 512  ;;  %v1934_v38 = vsel %vm1806_vm2, %v5555_v50, 512  ;;  %vm1808_vm3 = vcmp.eq.f32.partialorder %v5367_v59, %v1656_v27  ;;  %v1935_v36 = vsel %vm1807_vm4, %v5568_v49, 512  ;;  %v1082_v27 = vpop.f32.mrf.mxu1 }
 0x18d   : > { %vm2173_vm6 = vcmp.lt.s32.totalorder %v1933_v31, %v1934_v38  ;;  %v5797_v37 = vadd.f32 %v1427_v25, %v1302_v41  ;;  %v5799_v3 = vcvt.s32.f32 %v2160_v35  ;;  %v1428_v60 = vadd.f32 %v5111_v46, %v567_v5 }
 0x18e   : > { %v2174_v24 = vsel %vm2173_vm6, %v1933_v31, %v1934_v38  ;;  %v1429_v17 = vadd.f32 %v5113_v47, %v567_v5  ;;  %v1430_v22 = vadd.f32 %v5128_v52, %v567_v5  ;;  %2083 = vmin.xlane.f32.xlu2 %v5732_v54  ;;  %v1936_v8 = vsel %vm1808_vm3, %v5611_v11, 512 }
 0x18f   : > { %vm2175_vm7 = vcmp.lt.s32.totalorder %v2174_v24, %v1935_v36  ;;  %3645 = vst [vmem:[%s5136_s19 + $0x238] sm:$0xff] %v5797_v37  ;;  %2163 = vmin.xlane.f32.xlu0 %v5799_v3  ;;  %v5814_v41 = vsel %vm2117_vm14, %v2116_v33, %v1924_v20  ;;  %v5816_v25 = vadd.f32 %v1428_v60, %v966_v39  ;;  %v1927_v31 = vsel %vm1799_vm15, %v5568_v49, 512 }
 0x190   : > { %v2176_v61 = vsel %vm2175_vm7, %v2174_v24, %v1935_v36  ;;  %v5822_v38 = vadd.f32 %v1429_v17, %v1079_v48  ;;  %v1431_v59 = vadd.f32 %v5130_v53, %v567_v5  ;;  %vm2135_vm9 = vcmp.lt.s32.totalorder %v2134_v34, %v1927_v31 }
 0x191   : > { %vm2177_vm8 = vcmp.lt.s32.totalorder %v2176_v61, %v1936_v8  ;;  %3646 = vst [vmem:[%s5136_s19 + $0x240] sm:$0xff] %v5816_v25  ;;  %v5831_v33 = vadd.f32 %v1430_v22, %v1192_v32  ;;  %v1433_v39 = vadd.f32 %v5113_v47, %v5650_v40  ;;  %v5845_v5 = vcvt.s32.f32 %v2100_v19 }
 0x192   : > { %v5825_v35 = vpop.xlane.xlu1 %1660  ;;  %v5827_v20 = vsel %vm2177_vm8, %v2176_v61, %v1936_v8  ;;  %3647 = vst [vmem:[%s5136_s19 + $0x248] sm:$0xff] %v5822_v38  ;;  %v5853_v24 = vadd.f32 %v1431_v59, %v1305_v23  ;;  %v5857_v22 = vadd.f32 %v1432_v56, %v969_v30  ;;  %v1434_v19 = vadd.f32 %v5128_v52, %v5650_v40  ;;  %v972_v59 = vpop.f32.mrf.mxu0 }
 0x193   : > { %7781 = vst [vmem:[#allocation32_spill] sm:$0xff] %v5827_v20  ;;  %vm1809_vm10 = vcmp.eq.f32.partialorder %v5382_v12, %v5825_v35  ;;  %vm1810_vm11 = vcmp.eq.f32.partialorder %v5384_v13, %v5825_v35  ;;  %v2180_v32 = vshra.s32 %v5827_v20, 16  ;;  %v2120_v12 = vshra.s32 %v5814_v41, 16  ;;  %v1195_v60 = vpop.f32.mrf.mxu2 }
 0x194   : > { %v1937_v48 = vsel %vm1809_vm10, %v5548_v15, 512  ;;  %v1938_v36 = vsel %vm1810_vm11, %v5555_v50, 512  ;;  %3648 = vst [vmem:[%s5136_s19 + $0x250] sm:$0xff] %v5831_v33  ;;  %v2136_v13 = vsel %vm2135_vm9, %v2134_v34, %v1927_v31  ;;  %v5863_v8 = vadd.f32 %v1433_v39, %v1082_v27  ;;  %v1085_v56 = vpop.f32.mrf.mxu1 }
 0x195   : > { %vm2193_vm13 = vcmp.lt.s32.totalorder %v1937_v48, %v1938_v36  ;;  %v5855_v17 = vcvt.s32.f32 %v2180_v32  ;;  %3649 = vst [vmem:[%s5136_s19 + $0x258] sm:$0xff] %v5853_v24  ;;  %v1435_v61 = vadd.f32 %v5130_v53, %v5650_v40  ;;  %v1436_v34 = vadd.f32 %v5111_v46, %v5667_v9  ;;  %v1308_v40 = vpop.f32.mrf.mxu3 }
 0x196   : > { %v1437_v23 = vadd.f32 %v5113_v47, %v5667_v9  ;;  %2103 = vmin.xlane.f32.xlu2 %v5845_v5  ;;  %v1928_v30 = vsel %vm1800_vm12, %v5611_v11, 512  ;;  %3650 = vst [vmem:[%s5136_s19 + $0x260] sm:$0xff] %v5857_v22  ;;  %v5879_v31 = vadd.f32 %v1434_v19, %v1195_v60  ;;  %vm1811_vm14 = vcmp.eq.f32.partialorder %v5398_v28, %v5825_v35  ;;  %v7783_v60 = vld [vmem:[#allocation6_spill] sm:$0xff]  ;;  %v7784_v28 = vld [vmem:[#allocation7_spill] sm:$0xff]  ;;  %v7785_v19 = vld [vmem:[#allocation8_spill] sm:$0xff] }
 0x197   : > { %7782 = vst [vmem:[#allocation33_spill] sm:$0xff] %v5855_v17  ;;  %2183 = vmin.xlane.f32.xlu1 %v5855_v17  ;;  %vm2137_vm15 = vcmp.lt.s32.totalorder %v2136_v13, %v1928_v30  ;;  %v5885_v27 = vadd.f32 %v1435_v61, %v1308_v40  ;;  %v5887_v57 = vcvt.s32.f32 %v2120_v12  ;;  %v2194_v42 = vsel %vm2193_vm13, %v1937_v48, %v1938_v36  ;;  %v7786_v40 = vld [vmem:[#allocation9_spill] sm:$0xff] }
 0x198   : > { %3651 = vst [vmem:[%s5136_s19 + $0x268] sm:$0xff] %v5863_v8  ;;  %v5892_v32 = vadd.f32 %v1436_v34, %v972_v59  ;;  %v5899_v61 = vadd.f32 %v1437_v23, %v1085_v56  ;;  %v1939_v12 = vsel %vm1811_vm14, %v5568_v49, 512  ;;  %v5905_v34 = vsel %vm2137_vm15, %v2136_v13, %v1928_v30  ;;  %v576_v59 = vpop.xlane.xlu0 %575 }
 0x199   : > { %3652 = vst [vmem:[%s5136_s19 + $0x270] sm:$0xff] %v5879_v31  ;;  %v1438_v23 = vadd.f32 %v5128_v52, %v5667_v9  ;;  %v1439_v56 = vadd.f32 %v5130_v53, %v5667_v9  ;;  %vm2195_vm6 = vcmp.lt.s32.totalorder %v2194_v42, %v1939_v12  ;;  %v1440_v44 = vadd.f32 %v5111_v46, %v576_v59  ;;  %v7787_v9 = vld [vmem:[#allocation5_spill] sm:$0xff] }
 0x19a   : > { %v1666_v39 = vpop.xlane.xlu1 %1665  ;;  %3653 = vst [vmem:[%s5136_s19 + $0x278] sm:$0xff] %v5885_v27  ;;  %v1441_v51 = vadd.f32 %v5113_v47, %v576_v59  ;;  %vm1812_vm8 = vcmp.eq.f32.partialorder %v7787_v9, %v5825_v35  ;;  %v2140_v9 = vshra.s32 %v5905_v34, 16 }
 0x19b   : > { %vm1813_vm1 = vcmp.eq.f32.partialorder %v7783_v60, %v1666_v39  ;;  %vm1814_vm2 = vcmp.eq.f32.partialorder %v7784_v28, %v1666_v39  ;;  %vm1815_vm4 = vcmp.eq.f32.partialorder %v7785_v19, %v1666_v39  ;;  %3654 = vst [vmem:[%s5136_s19 + $0x280] sm:$0xff] %v5892_v32  ;;  %vm1816_vm5 = vcmp.eq.f32.partialorder %v7786_v40, %v1666_v39  ;;  %v1198_v60 = vpop.f32.mrf.mxu2  ;;  %v340_v28 = vld [vmem:[%s4910_s15 + $0xb8] sm:$0xff] }
 0x19c   : > { %v1941_v48 = vsel %vm1813_vm1, %v5548_v15, 512  ;;  %v1942_v36 = vsel %vm1814_vm2, %v5555_v50, 512  ;;  %3655 = vst [vmem:[%s5136_s19 + $0x288] sm:$0xff] %v5899_v61  ;;  %v1943_v13 = vsel %vm1815_vm4, %v5568_v49, 512  ;;  %4165 = vmatmul.msk.f32.gmra.mxu2 %vm510_vm0, %v340_v28  ;;  %4213 = vmatmul.msk.f32.gmra.mxu3 %vm510_vm0, %v340_v28  ;;  %v5923_v63 = vadd.f32 %v1438_v23, %v1198_v60  ;;  %v975_v60 = vpop.f32.mrf.mxu0  ;;  %v1088_v35 = vpop.f32.mrf.mxu1 }
 0x19d   : > { %vm2213_vm3 = vcmp.lt.s32.totalorder %v1941_v48, %v1942_v36  ;;  %4069 = vmatmul.msk.f32.gmra.mxu0 %vm510_vm0, %v340_v28  ;;  %4117 = vmatmul.msk.f32.gmra.mxu1 %vm510_vm0, %v340_v28  ;;  %v1944_v19 = vsel %vm1816_vm5, %v5611_v11, 512  ;;  %v2196_v23 = vsel %vm2195_vm6, %v2194_v42, %v1939_v12  ;;  %v5942_v18 = vadd.f32 %v1440_v44, %v975_v60 }
 0x19e   : > { %v2214_v30 = vsel %vm2213_vm3, %v1941_v48, %v1942_v36  ;;  %2123 = vmin.xlane.f32.xlu2 %v5887_v57  ;;  %v1311_v36 = vpop.f32.mrf.mxu3  ;;  %3656 = vst [vmem:[%s5136_s19 + $0x290] sm:$0xff] %v5923_v63  ;;  %v1442_v39 = vadd.f32 %v5128_v52, %v576_v59  ;;  %v1940_v40 = vsel %vm1812_vm8, %v5611_v11, 512  ;;  %v1443_v44 = vadd.f32 %v5130_v53, %v576_v59 }
 0x19f   : > { %vm2215_vm7 = vcmp.lt.s32.totalorder %v2214_v30, %v1943_v13  ;;  %v5937_v17 = vadd.f32 %v1439_v56, %v1311_v36  ;;  %vm2197_vm10 = vcmp.lt.s32.totalorder %v2196_v23, %v1940_v40  ;;  %3658 = vst [vmem:[%s5136_s19 + $0x2a0] sm:$0xff] %v5942_v18  ;;  %v5956_v56 = vcvt.s32.f32 %v2140_v9 }
 0x1a0   : > { %v2216_v48 = vsel %vm2215_vm7, %v2214_v30, %v1943_v13  ;;  %v5948_v13 = vadd.f32 %v1441_v51, %v1088_v35  ;;  %v1444_v51 = vadd.f32 %v5111_v46, %v5682_v2  ;;  %v1445_v36 = vadd.f32 %v5113_v47, %v5682_v2 }
 0x1a1   : > { %vm2217_vm9 = vcmp.lt.s32.totalorder %v2216_v48, %v1944_v19  ;;  %3657 = vst [vmem:[%s5136_s19 + $0x298] sm:$0xff] %v5937_v17 }
 0x1a2   : > { %v5940_v20 = vsel %vm2217_vm9, %v2216_v48, %v1944_v19  ;;  %3659 = vst [vmem:[%s5136_s19 + $0x2a8] sm:$0xff] %v5948_v13  ;;  %v5964_v48 = vsel %vm2197_vm10, %v2196_v23, %v1940_v40  ;;  %v1446_v40 = vadd.f32 %v5128_v52, %v5682_v2 }
 0x1a3   : > { %7788 = vst [vmem:[#allocation6_spill] sm:$0xff] %v5940_v20  ;;  %v2220_v42 = vshra.s32 %v5940_v20, 16  ;;  %v1201_v12 = vpop.f32.mrf.mxu2 }
 0x1a4   : > { %v5960_v19 = vadd.f32 %v1442_v39, %v1201_v12  ;;  %v978_v60 = vpop.f32.mrf.mxu0  ;;  %v1091_v9 = vpop.f32.mrf.mxu1  ;;  %v2200_v39 = vshra.s32 %v5964_v48, 16 }
 0x1a5   : > { %v5958_v30 = vcvt.s32.f32 %v2220_v42  ;;  %v5975_v23 = vadd.f32 %v1444_v51, %v978_v60  ;;  %v5981_v42 = vadd.f32 %v1445_v36, %v1091_v9  ;;  %v501_v36 = vmul.f32 %v340_v28, %v340_v28 }
 0x1a6   : > { %7790 = vst [vmem:[#allocation8_spill] sm:$0xff] %v5960_v19  ;;  %2143 = vmin.xlane.f32.xlu2 %v5956_v56  ;;  %v1314_v59 = vpop.f32.mrf.mxu3 }
 0x1a7   : > { %7789 = vst [vmem:[#allocation7_spill] sm:$0xff] %v5958_v30  ;;  %2223 = vmin.xlane.f32.xlu0 %v5958_v30  ;;  %v5972_v35 = vadd.f32 %v1443_v44, %v1314_v59  ;;  %v1447_v44 = vadd.f32 %v5130_v53, %v5682_v2  ;;  %v5989_v59 = vcvt.s32.f32 %v2200_v39  ;;  %v7797_v30 = vld [vmem:[#allocation10_spill] sm:$0xff]  ;;  %v7798_v2 = vld [vmem:[#allocation11_spill] sm:$0xff]  ;;  %v6004_v39 = vld [vmem:[%s4910_s15 + $0xc0] sm:$0xff] }
 0x1a8   : > { %3660 = vst [vmem:[%s5136_s19 + $0x2b0] sm:$0xff] %v5960_v19  ;;  %4166 = vmatmul.msk.f32.gmra.mxu2 %vm510_vm0, %v6004_v39  ;;  %4214 = vmatmul.msk.f32.gmra.mxu3 %vm510_vm0, %v6004_v39  ;;  %v6049_v19 = vld [vmem:[%s4910_s15 + $0xd0] sm:$0xff] }
 0x1a9   : > { %7791 = vst [vmem:[#allocation9_spill] sm:$0xff] %v5972_v35  ;;  %4070 = vmatmul.msk.f32.gmra.mxu0 %vm510_vm0, %v6004_v39  ;;  %4118 = vmatmul.msk.f32.gmra.mxu1 %vm510_vm0, %v6004_v39 }
 0x1aa   : > { %7792 = vst [vmem:[#allocation5_spill] sm:$0xff] %v5975_v23 }
 0x1ab   : > { %3661 = vst [vmem:[%s5136_s19 + $0x2b8] sm:$0xff] %v5972_v35  ;;  %v1204_v12 = vpop.f32.mrf.mxu2  ;;  %v6027_v35 = vld [vmem:[%s4910_s15 + $0xc8] sm:$0xff] }
 0x1ac   : > { %7793 = vst [vmem:[#allocation34_spill] sm:$0xff] %v5981_v42  ;;  %v5991_v51 = vadd.f32 %v1446_v40, %v1204_v12  ;;  %v7799_v12 = vld [vmem:[#allocation12_spill] sm:$0xff] }
 0x1ad   : > { %3662 = vst [vmem:[%s5136_s19 + $0x2c0] sm:$0xff] %v5975_v23  ;;  %v580_v23 = vsel %vm510_vm0, %v501_v36, 0.0  ;;  %v7801_v36 = vld [vmem:[#allocation15_spill] sm:$0xff] }
 0x1ae   : > { %3663 = vst [vmem:[%s5136_s19 + $0x2c8] sm:$0xff] %v5981_v42  ;;  %2203 = vmin.xlane.f32.xlu2 %v5989_v59  ;;  %v1317_v60 = vpop.f32.mrf.mxu3  ;;  %v1671_v42 = vpop.xlane.xlu1 %1670 }
 0x1af   : > { %7794 = vst [vmem:[#allocation35_spill] sm:$0xff] %v5989_v59  ;;  %v5996_v9 = vadd.f32 %v1447_v44, %v1317_v60  ;;  %vm1817_vm11 = vcmp.eq.f32.partialorder %v7797_v30, %v1671_v42  ;;  %vm1818_vm12 = vcmp.eq.f32.partialorder %v7798_v2, %v1671_v42  ;;  %vm1819_vm14 = vcmp.eq.f32.partialorder %v7799_v12, %v1671_v42  ;;  %v7800_v60 = vld [vmem:[#allocation14_spill] sm:$0xff]  ;;  %v7802_v59 = vld [vmem:[#allocation13_spill] sm:$0xff] }
 0x1b0   : > { %7795 = vst [vmem:[#allocation36_spill] sm:$0xff] %v5991_v51  ;;  %v1945_v28 = vsel %vm1817_vm11, %v5548_v15, 512  ;;  %v1946_v30 = vsel %vm1818_vm12, %v5555_v50, 512  ;;  %v1947_v2 = vsel %vm1819_vm14, %v5568_v49, 512  ;;  %vm1820_vm4 = vcmp.eq.f32.partialorder %v7802_v59, %v1671_v42  ;;  %4167 = vmatmul.msk.f32.gmra.mxu2 %vm510_vm0, %v6027_v35  ;;  %4215 = vmatmul.msk.f32.gmra.mxu3 %vm510_vm0, %v6027_v35  ;;  %v7803_v42 = vld [vmem:[#allocation16_spill] sm:$0xff] }
 0x1b1   : > { %3664 = vst [vmem:[%s5136_s19 + $0x2d0] sm:$0xff] %v5991_v51  ;;  %vm2233_vm13 = vcmp.lt.s32.totalorder %v1945_v28, %v1946_v30  ;;  %4071 = vmatmul.msk.f32.gmra.mxu0 %vm510_vm0, %v6027_v35  ;;  %4119 = vmatmul.msk.f32.gmra.mxu1 %vm510_vm0, %v6027_v35  ;;  %v1948_v12 = vsel %vm1820_vm4, %v5611_v11, 512 }
 0x1b2   : > { %7796 = vst [vmem:[#allocation37_spill] sm:$0xff] %v5996_v9  ;;  %v2234_v44 = vsel %vm2233_vm13, %v1945_v28, %v1946_v30  ;;  %v2039_v28 = vand.u32 65535, %v5673_v1 }
 0x1b3   : > { %3665 = vst [vmem:[%s5136_s19 + $0x2d8] sm:$0xff] %v5996_v9  ;;  %vm2235_vm2 = vcmp.lt.s32.totalorder %v2234_v44, %v1947_v2 }
 0x1b4   : > { %v2236_v30 = vsel %vm2235_vm2, %v2234_v44, %v1947_v2 }
 0x1b5   : > { %vm2237_vm6 = vcmp.lt.s32.totalorder %v2236_v30, %v1948_v12 }
 0x1b6   : > { %581 = vadd.xlane.f32.xlu2 %v580_v23  ;;  %v6016_v23 = vpop.xlane.xlu2 %1680  ;;  %v1676_v40 = vpop.xlane.xlu1 %1675  ;;  %v6046_v2 = vsel %vm2237_vm6, %v2236_v30, %v1948_v12  ;;  %v2059_v30 = vand.u32 65535, %v5678_v21 }
 0x1b7   : > { %vm1821_vm15 = vcmp.eq.f32.partialorder %v7800_v60, %v1676_v40  ;;  %vm1822_vm1 = vcmp.eq.f32.partialorder %v7801_v36, %v1676_v40  ;;  %vm1823_vm3 = vcmp.eq.f32.partialorder %v7803_v42, %v1676_v40  ;;  %v2041_v60 = vcvt.s32.f32 %v2039_v28  ;;  %7804 = vst [vmem:[#allocation10_spill] sm:$0xff] %v6046_v2 }
 0x1b8   : > { %v1949_v51 = vsel %vm1821_vm15, %v5548_v15, 512  ;;  %v1950_v20 = vsel %vm1822_vm1, %v5555_v50, 512  ;;  %v1951_v1 = vsel %vm1823_vm3, %v5568_v49, 512  ;;  %4168 = vmatmul.msk.f32.gmra.mxu2 %vm510_vm0, %v6049_v19  ;;  %4216 = vmatmul.msk.f32.gmra.mxu3 %vm510_vm0, %v6049_v19  ;;  %v2240_v28 = vshra.s32 %v6046_v2, 16 }
 0x1b9   : > { %vm2253_vm5 = vcmp.lt.s32.totalorder %v1949_v51, %v1950_v20  ;;  %4072 = vmatmul.msk.f32.gmra.mxu0 %vm510_vm0, %v6049_v19  ;;  %4120 = vmatmul.msk.f32.gmra.mxu1 %vm510_vm0, %v6049_v19  ;;  %v1702_v42 = vmin.f32 %v5765_v26, %v5771_v62  ;;  %v2061_v2 = vcvt.s32.f32 %v2059_v30  ;;  %v7811_v30 = vld [vmem:[#allocation23_spill] sm:$0xff] }
 0x1ba   : > { %v2254_v36 = vsel %vm2253_vm5, %v1949_v51, %v1950_v20  ;;  %v7805_v20 = vld [vmem:[#allocation17_spill] sm:$0xff]  ;;  %v7807_v51 = vld [vmem:[#allocation19_spill] sm:$0xff] }
 0x1bb   : > { %vm2255_vm8 = vcmp.lt.s32.totalorder %v2254_v36, %v1951_v1  ;;  %vm1824_vm9 = vcmp.eq.f32.partialorder %v7805_v20, %v1676_v40  ;;  %vm1826_vm11 = vcmp.eq.f32.partialorder %v7807_v51, %v6016_v23  ;;  %v6075_v51 = vpop.xlane.xlu0 %1685  ;;  %v1703_v21 = vmin.f32 %v1702_v42, %v5781_v6 }
 0x1bc   : > { %v2256_v12 = vsel %vm2255_vm8, %v2254_v36, %v1951_v1  ;;  %v1954_v40 = vsel %vm1826_vm11, %v5555_v50, 512  ;;  %v1952_v20 = vsel %vm1824_vm9, %v5611_v11, 512  ;;  %v2079_v36 = vand.u32 65535, %v5686_v55  ;;  %v7809_v1 = vld [vmem:[#allocation20_spill] sm:$0xff] }
 0x1bd   : > { %vm2257_vm12 = vcmp.lt.s32.totalorder %v2256_v12, %v1952_v20  ;;  %vm1827_vm15 = vcmp.eq.f32.partialorder %v7809_v1, %v6016_v23  ;;  %vm1830_vm2 = vcmp.eq.f32.partialorder %v7811_v30, %v6075_v51  ;;  %v1704_v6 = vmin.f32 %v1703_v21, %v5797_v37  ;;  %v7812_v21 = vld [vmem:[#allocation21_spill] sm:$0xff] }
 0x1be   : > { %v6081_v62 = vsel %vm2257_vm12, %v2256_v12, %v1952_v20  ;;  %v1958_v42 = vsel %vm1830_vm2, %v5555_v50, 512  ;;  %v1707_v37 = vmin.f32 %v5816_v25, %v5822_v38  ;;  %vm1828_vm3 = vcmp.eq.f32.partialorder %v7812_v21, %v6016_v23  ;;  %v7813_v25 = vld [vmem:[#allocation24_spill] sm:$0xff]  ;;  %v7816_v21 = vld [vmem:[#allocation25_spill] sm:$0xff] }
 0x1bf   : > { %v2260_v55 = vshra.s32 %v6081_v62, 16  ;;  %v1956_v30 = vsel %vm1828_vm3, %v5611_v11, 512 }
 0x1c0   : > { %v1708_v38 = vmin.f32 %v1707_v37, %v5831_v33 }
 0x1e1   : > { %v6116_v1 = vpop.xlane.xlu1 %1690 }
 0x1e8   : > { %v6022_v9 = vpop.xlane.xlu2 %1695 }
 0x1f0   : > { %v6041_v59 = vpop.xlane.xlu2 %2043 }
 0x1f1   : > { %vm2045_vm7 = vcmp.eq.f32.partialorder %v5697_v29, %v6041_v59  ;;  %v7806_v29 = vld [vmem:[#allocation18_spill] sm:$0xff] }
 0x1f2   : > { %v2046_v44 = vsel %vm2045_vm7, %v2041_v60, inf  ;;  %vm1825_vm10 = vcmp.eq.f32.partialorder %v7806_v29, %v6016_v23  ;;  %v6073_v29 = vcvt.s32.f32 %v2240_v28  ;;  %v7810_v28 = vld [vmem:[#allocation22_spill] sm:$0xff]  ;;  %vm1831_vm7 = vcmp.eq.f32.partialorder %v7813_v25, %v6075_v51  ;;  %v6126_v23 = vld [vmem:[%s4910_s15 + $0xe0] sm:$0xff] }
 0x1f3   : > { %2047 = vmin.xlane.f32.xlu1 %v2046_v44  ;;  %v1953_v60 = vsel %vm1825_vm10, %v5548_v15, 512  ;;  %vm1829_vm1 = vcmp.eq.f32.partialorder %v7810_v28, %v6075_v51  ;;  %v1959_v33 = vsel %vm1831_vm7, %v5568_v49, 512  ;;  %v6159_v25 = vld [vmem:[%s4910_s15 + $0xe8] sm:$0xff]  ;;  %vm1837_vm7 = vcmp.eq.f32.partialorder %v5623_v43, %v6022_v9 }
 0x1f4   : > { %7808 = vst [vmem:[#allocation11_spill] sm:$0xff] %v6073_v29  ;;  %vm2273_vm13 = vcmp.lt.s32.totalorder %v1953_v60, %v1954_v40  ;;  %v1957_v12 = vsel %vm1829_vm1, %v5548_v15, 512 }
 0x1f5   : > { %vm2293_vm6 = vcmp.lt.s32.totalorder %v1957_v12, %v1958_v42 }
 0x1f9   : > { %v6070_v44 = vpop.xlane.xlu2 %2063 }
 0x1fa   : > { %vm2065_vm14 = vcmp.eq.f32.partialorder %v5716_v10, %v6070_v44  ;;  %v2274_v10 = vsel %vm2273_vm13, %v1953_v60, %v1954_v40  ;;  %v2081_v40 = vcvt.s32.f32 %v2079_v36  ;;  %v502_v36 = vmul.f32 %v6004_v39, %v6004_v39  ;;  %v7815_v39 = vld [vmem:[#allocation27_spill] sm:$0xff] }
 0x1fb   : > { %2243 = vmin.xlane.f32.xlu1 %v6073_v29  ;;  %v2066_v26 = vsel %vm2065_vm14, %v2061_v2, inf  ;;  %v6091_v29 = vld [vmem:[%s4910_s15 + $0xd8] sm:$0xff]  ;;  %v1955_v2 = vsel %vm1827_vm15, %v5568_v49, 512  ;;  %vm1834_vm9 = vcmp.eq.f32.partialorder %v7815_v39, %v6116_v1  ;;  %vm1832_vm13 = vcmp.eq.f32.partialorder %v7816_v21, %v6075_v51  ;;  %v6183_v39 = vpop.xlane.xlu0 %1700 }
 0x1fc   : > { %2067 = vmin.xlane.f32.xlu2 %v2066_v26  ;;  %4169 = vmatmul.msk.f32.gmra.mxu2 %vm510_vm0, %v6091_v29  ;;  %vm2275_vm5 = vcmp.lt.s32.totalorder %v2274_v10, %v1955_v2  ;;  %v6114_v26 = vcvt.s32.f32 %v2260_v55  ;;  %v2294_v55 = vsel %vm2293_vm6, %v1957_v12, %v1958_v42  ;;  %v1709_v12 = vmin.f32 %v1708_v38, %v5853_v24 }
 0x1fd   : > { %4217 = vmatmul.msk.f32.gmra.mxu3 %vm510_vm0, %v6091_v29  ;;  %4073 = vmatmul.msk.f32.gmra.mxu0 %vm510_vm0, %v6091_v29  ;;  %v2276_v28 = vsel %vm2275_vm5, %v2274_v10, %v1955_v2  ;;  %vm2295_vm12 = vcmp.lt.s32.totalorder %v2294_v55, %v1959_v33  ;;  %vm1835_vm15 = vcmp.eq.f32.partialorder %v5586_v16, %v6116_v1  ;;  %v2159_v21 = vand.u32 65535, %v5774_v4 }
 0x1fe   : > { %4121 = vmatmul.msk.f32.gmra.mxu1 %vm510_vm0, %v6091_v29  ;;  %vm2277_vm10 = vcmp.lt.s32.totalorder %v2276_v28, %v1956_v30  ;;  %v1963_v16 = vsel %vm1835_vm15, %v5568_v49, 512  ;;  %vm1836_vm5 = vcmp.eq.f32.partialorder %v5588_v45, %v6116_v1  ;;  %v1712_v45 = vmin.f32 %v5857_v22, %v5863_v8 }
 0x1ff   : > { %v1965_v8 = vsel %vm1837_vm7, %v5548_v15, 512 }
 0x200   : > { %v1713_v22 = vmin.f32 %v1712_v45, %v5879_v31 }
 0x201   : > { %v6106_v60 = vpop.xlane.xlu2 %2083 }
 0x202   : > { %vm2085_vm4 = vcmp.eq.f32.partialorder %v5732_v54, %v6106_v60  ;;  %v2099_v54 = vand.u32 65535, %v5777_v0  ;;  %v7814_v0 = vld [vmem:[#allocation26_spill] sm:$0xff]  ;;  %v1714_v4 = vmin.f32 %v1713_v22, %v5885_v27  ;;  %v364_v22 = vld [vmem:[%s7674_s1 + $0x78] sm:$0xff] }
 0x203   : > { %v2086_v20 = vsel %vm2085_vm4, %v2081_v40, inf  ;;  %1705 = vmin.xlane.f32.xlu1 %v1704_v6  ;;  %vm1833_vm8 = vcmp.eq.f32.partialorder %v7814_v0, %v6116_v1  ;;  %v583_v6 = vsel %vm510_vm0, %v502_v36, 0.0  ;;  %v1962_v40 = vsel %vm1834_vm9, %v5555_v50, 512  ;;  %3057 = vmatpush.msrb.mxu0 %v364_v22  ;;  %v360_v22 = vld [vmem:[%s7674_s1 + $0x58] sm:$0xff] }
 0x204   : > { %2087 = vmin.xlane.f32.xlu0 %v2086_v20  ;;  %2263 = vmin.xlane.f32.xlu2 %v6114_v26  ;;  %v2101_v2 = vcvt.s32.f32 %v2099_v54  ;;  %v1961_v42 = vsel %vm1833_vm8, %v5548_v15, 512  ;;  %v6150_v20 = vsel %vm2277_vm10, %v2276_v28, %v1956_v30  ;;  %v503_v36 = vmul.f32 %v6027_v35, %v6027_v35 }
 0x205   : > { %4170 = vmatmul.msk.f32.gmra.mxu2 %vm510_vm0, %v6126_v23  ;;  %4218 = vmatmul.msk.f32.gmra.mxu3 %vm510_vm0, %v6126_v23  ;;  %v2296_v54 = vsel %vm2295_vm12, %v2294_v55, %v1959_v33  ;;  %vm2313_vm14 = vcmp.lt.s32.totalorder %v1961_v42, %v1962_v40  ;;  %v2280_v24 = vshra.s32 %v6150_v20, 16  ;;  %v1960_v28 = vsel %vm1832_vm13, %v5611_v11, 512 }
 0x206   : > { %4074 = vmatmul.msk.f32.gmra.mxu0 %vm510_vm0, %v6126_v23  ;;  %4122 = vmatmul.msk.f32.gmra.mxu1 %vm510_vm0, %v6126_v23  ;;  %vm2297_vm1 = vcmp.lt.s32.totalorder %v2296_v54, %v1960_v28  ;;  %v586_v35 = vsel %vm510_vm0, %v503_v36, 0.0  ;;  %v2314_v38 = vsel %vm2313_vm14, %v1961_v42, %v1962_v40  ;;  %v2139_v33 = vand.u32 65535, %v5905_v34 }
 0x207   : > { %v6175_v30 = vcvt.s32.f32 %v2280_v24  ;;  %v6180_v0 = vsel %vm2297_vm1, %v2296_v54, %v1960_v28  ;;  %vm2315_vm4 = vcmp.lt.s32.totalorder %v2314_v38, %v1963_v16  ;;  %v1964_v40 = vsel %vm1836_vm5, %v5611_v11, 512 }
 0x208   : > { %v2141_v42 = vcvt.s32.f32 %v2139_v33  ;;  %vm1838_vm8 = vcmp.eq.f32.partialorder %v5626_v14, %v6022_v9  ;;  %v1717_v14 = vmin.f32 %v5892_v32, %v5899_v61  ;;  %v2161_v54 = vcvt.s32.f32 %v2159_v21  ;;  %v7817_v61 = vld [vmem:[#allocation29_spill] sm:$0xff] }
 0x209   : > { %v6142_v10 = vpop.xlane.xlu2 %2103  ;;  %v1966_v36 = vsel %vm1838_vm8, %v5555_v50, 512  ;;  %vm1841_vm12 = vcmp.eq.f32.partialorder %v5695_v7, %v6183_v39  ;;  %vm1842_vm13 = vcmp.eq.f32.partialorder %v7817_v61, %v6183_v39  ;;  %v2199_v21 = vand.u32 65535, %v5964_v48 }
 0x20a   : > { %vm2105_vm11 = vcmp.eq.f32.partialorder %v5845_v5, %v6142_v10  ;;  %v2119_v5 = vand.u32 65535, %v5814_v41  ;;  %vm2333_vm10 = vcmp.lt.s32.totalorder %v1965_v8, %v1966_v36  ;;  %v1718_v28 = vmin.f32 %v1717_v14, %v5923_v63  ;;  %v6233_v27 = vpop.xlane.xlu1 %2183 }
 0x20b   : > { %v2106_v37 = vsel %vm2105_vm11, %v2101_v2, inf  ;;  %v2316_v2 = vsel %vm2315_vm4, %v2314_v38, %v1963_v16  ;;  %vm1839_vm11 = vcmp.eq.f32.partialorder %v5628_v58, %v6022_v9  ;;  %v2334_v32 = vsel %vm2333_vm10, %v1965_v8, %v1966_v36  ;;  %v7819_v16 = vld [vmem:[#allocation33_spill] sm:$0xff]  ;;  %v380_v8 = vld [vmem:[%s7674_s1 + $0xf8] sm:$0xff] }
 0x20c   : > { %584 = vadd.xlane.f32.xlu0 %v583_v6  ;;  %2107 = vmin.xlane.f32.xlu1 %v2106_v37  ;;  %v2121_v51 = vcvt.s32.f32 %v2119_v5  ;;  %v2300_v6 = vshra.s32 %v6180_v0, 16  ;;  %vm2317_vm6 = vcmp.lt.s32.totalorder %v2316_v2, %v1964_v40  ;;  %v1967_v58 = vsel %vm1839_vm11, %v5568_v49, 512  ;;  %v396_v36 = vld [vmem:[%s7674_s1 + $0x178] sm:$0xff] }
 0x20d   : > { %1710 = vmin.xlane.f32.xlu2 %v1709_v12  ;;  %4171 = vmatmul.msk.f32.gmra.mxu2 %vm510_vm0, %v6159_v25  ;;  %v1719_v63 = vmin.f32 %v1718_v28, %v5937_v17  ;;  %vm2335_vm14 = vcmp.lt.s32.totalorder %v2334_v32, %v1967_v58  ;;  %v1970_v38 = vsel %vm1842_vm13, %v5555_v50, 512  ;;  %vm2185_vm15 = vcmp.eq.f32.partialorder %v7819_v16, %v6233_v27  ;;  %v379_v28 = vld [vmem:[%s7674_s1 + $0xf0] sm:$0xff] }
 0x20e   : > { %4219 = vmatmul.msk.f32.gmra.mxu3 %vm510_vm0, %v6159_v25  ;;  %4075 = vmatmul.msk.f32.gmra.mxu0 %vm510_vm0, %v6159_v25  ;;  %v6196_v37 = vcvt.s32.f32 %v2300_v6  ;;  %v1722_v6 = vmin.f32 %v5942_v18, %v5948_v13  ;;  %v2336_v14 = vsel %vm2335_vm14, %v2334_v32, %v1967_v58  ;;  %v395_v58 = vld [vmem:[%s7674_s1 + $0x170] sm:$0xff]  ;;  %vm3541_vm10 = vcmask 7168  }
 0x20f   : > { %4123 = vmatmul.msk.f32.gmra.mxu1 %vm510_vm0, %v6159_v25  ;;  %3283 = vmatpush.msrb.mxu2 %v396_v36 }
 0x210   : > { %3170 = vmatpush.msrb.mxu1 %v380_v8  ;;  %v376_v8 = vld [vmem:[%s7674_s1 + $0xd8] sm:$0xff] }
 0x211   : > { %v6172_v41 = vpop.xlane.xlu2 %2123  ;;  %3284 = vmatpush.msrb.mxu2 %v395_v58 }
 0x212   : > { %vm2125_vm2 = vcmp.eq.f32.partialorder %v5887_v57, %v6172_v41  ;;  %v504_v57 = vmul.f32 %v6049_v19, %v6049_v19  ;;  %v6206_v19 = vpop.xlane.xlu0 %2163  ;;  %3171 = vmatpush.msrb.mxu1 %v379_v28 }
 0x213   : > { %v2126_v55 = vsel %vm2125_vm2, %v2121_v51, inf  ;;  %vm2165_vm9 = vcmp.eq.f32.partialorder %v5799_v3, %v6206_v19  ;;  %v505_v3 = vmul.f32 %v6091_v29, %v6091_v29  ;;  %v1969_v29 = vsel %vm1841_vm12, %v5548_v15, 512 }
 0x214   : > { %2283 = vmin.xlane.f32.xlu0 %v6175_v30  ;;  %587 = vadd.xlane.f32.xlu1 %v586_v35  ;;  %v589_v1 = vsel %vm510_vm0, %v504_v57, 0.0  ;;  %v2166_v24 = vsel %vm2165_vm9, %v2161_v54, inf  ;;  %v7818_v35 = vld [vmem:[#allocation32_spill] sm:$0xff]  ;;  %vm2353_vm2 = vcmp.lt.s32.totalorder %v1969_v29, %v1970_v38 }
 0x215   : > { %2127 = vmin.xlane.f32.xlu2 %v2126_v55  ;;  %v2179_v51 = vand.u32 65535, %v7818_v35  ;;  %v592_v7 = vsel %vm510_vm0, %v505_v3, 0.0  ;;  %v7822_v3 = vld [vmem:[#allocation8_spill] sm:$0xff]  ;;  %v411_v35 = vld [vmem:[%s7674_s1 + $0x1f0] sm:$0xff] }
 0x216   : > { %v1723_v32 = vmin.f32 %v1722_v6, %v7822_v3  ;;  %v375_v3 = vld [vmem:[%s7674_s1 + $0xd0] sm:$0xff] }
 0x219   : > { %v6191_v12 = vpop.xlane.xlu2 %2143 }
 0x21a   : > { %vm2145_vm3 = vcmp.eq.f32.partialorder %v5956_v56, %v6191_v12  ;;  %v6208_v56 = vsel %vm2317_vm6, %v2316_v2, %v1964_v40  ;;  %v981_v33 = vpop.f32.mrf.mxu0  ;;  %v1094_v2 = vpop.f32.mrf.mxu1  ;;  %v2181_v40 = vcvt.s32.f32 %v2179_v51  ;;  %v362_v51 = vld [vmem:[%s7674_s1 + $0x68] sm:$0xff] }
 0x21b   : > { %v2146_v34 = vsel %vm2145_vm3, %v2141_v42, inf  ;;  %v2320_v43 = vshra.s32 %v6208_v56, 16  ;;  %v6353_v36 = vpop.xlane.xlu0 %2223 }
 0x21c   : > { %2147 = vmin.xlane.f32.xlu0 %v2146_v34  ;;  %2303 = vmin.xlane.f32.xlu1 %v6196_v37  ;;  %v2186_v48 = vsel %vm2185_vm15, %v2181_v40, inf  ;;  %v377_v40 = vld [vmem:[%s7674_s1 + $0xe0] sm:$0xff] }
 0x21d   : > { %590 = vadd.xlane.f32.xlu2 %v589_v1  ;;  %v6224_v31 = vcvt.s32.f32 %v2320_v43  ;;  %v7820_v1 = vld [vmem:[#allocation28_spill] sm:$0xff]  ;;  %v506_v43 = vmul.f32 %v6126_v23, %v6126_v23  ;;  %v7821_v23 = vld [vmem:[#allocation30_spill] sm:$0xff] }
 0x21e   : > { %vm1840_vm1 = vcmp.eq.f32.partialorder %v7820_v1, %v6022_v9  ;;  %vm1843_vm4 = vcmp.eq.f32.partialorder %v7821_v23, %v6183_v39  ;;  %v7823_v9 = vld [vmem:[#allocation35_spill] sm:$0xff] }
 0x21f   : > { %v1207_v45 = vpop.f32.mrf.mxu2  ;;  %v1320_v13 = vpop.f32.mrf.mxu3  ;;  %v1971_v6 = vsel %vm1843_vm4, %v5568_v49, 512  ;;  %v359_v23 = vld [vmem:[%s7674_s1 + $0x50] sm:$0xff] }
 0x221   : > { %v6219_v5 = vpop.xlane.xlu2 %2203 }
 0x222   : > { %vm2205_vm5 = vcmp.eq.f32.partialorder %v7823_v9, %v6219_v5  ;;  %v7829_v9 = vld [vmem:[#allocation5_spill] sm:$0xff] }
 0x224   : > { %1715 = vmin.xlane.f32.xlu0 %v1714_v4  ;;  %2167 = vmin.xlane.f32.xlu1 %v2166_v24  ;;  %v412_v4 = vld [vmem:[%s7674_s1 + $0x1f8] sm:$0xff]  ;;  %v363_v24 = vld [vmem:[%s7674_s1 + $0x70] sm:$0xff] }
 0x225   : > { %2323 = vmin.xlane.f32.xlu2 %v6224_v31  ;;  %3396 = vmatpush.msrb.mxu3 %v412_v4  ;;  %v392_v4 = vld [vmem:[%s7674_s1 + $0x158] sm:$0xff] }
 0x226   : > { %3058 = vmatpush.msrb.mxu0 %v363_v24  ;;  %v408_v24 = vld [vmem:[%s7674_s1 + $0x1d8] sm:$0xff] }
 0x227   : > { %3397 = vmatpush.msrb.mxu3 %v411_v35  ;;  %v391_v35 = vld [vmem:[%s7674_s1 + $0x150] sm:$0xff] }
 0x228   : > { %3059 = vmatpush.msrb.mxu0 %v362_v51  ;;  %v407_v51 = vld [vmem:[%s7674_s1 + $0x1d0] sm:$0xff] }
 0x229   : > { %v582_v55 = vpop.xlane.xlu2 %581 }
 0x22a   : > { %v1448_v57 = vadd.f32 %v5111_v46, %v582_v55  ;;  %v1449_v17 = vadd.f32 %v5113_v47, %v582_v55  ;;  %v1450_v42 = vadd.f32 %v5128_v52, %v582_v55  ;;  %v1451_v34 = vadd.f32 %v5130_v53, %v582_v55  ;;  %v378_v55 = vld [vmem:[%s7674_s1 + $0xe8] sm:$0xff] }
 0x22b   : > { %3172 = vmatpush.msrb.mxu1 %v378_v55 }
 0x22c   : > { %593 = vadd.xlane.f32.xlu0 %v592_v7  ;;  %1720 = vmin.xlane.f32.xlu1 %v1719_v63  ;;  %v6253_v18 = vadd.f32 %v1448_v57, %v981_v33  ;;  %v6270_v54 = vadd.f32 %v1449_v17, %v1094_v2  ;;  %v6286_v61 = vadd.f32 %v1450_v42, %v1207_v45  ;;  %v1968_v63 = vsel %vm1840_vm1, %v5611_v11, 512  ;;  %v394_v33 = vld [vmem:[%s7674_s1 + $0x168] sm:$0xff]  ;;  %v7824_v17 = vld [vmem:[#allocation9_spill] sm:$0xff] }
 0x22d   : > { %2187 = vmin.xlane.f32.xlu2 %v2186_v48  ;;  %v2354_v7 = vsel %vm2353_vm2, %v1969_v29, %v1970_v38  ;;  %v6304_v16 = vadd.f32 %v1451_v34, %v1320_v13  ;;  %vm2337_vm3 = vcmp.lt.s32.totalorder %v2336_v14, %v1968_v63  ;;  %v410_v29 = vld [vmem:[%s7674_s1 + $0x1e8] sm:$0xff]  ;;  %v361_v38 = vld [vmem:[%s7674_s1 + $0x60] sm:$0xff]  ;;  %v2201_v57 = vcvt.s32.f32 %v2199_v21  ;;  %3285 = vmatpush.msrb.mxu2 %v394_v33  ;;  %v7825_v13 = vld [vmem:[#allocation31_spill] sm:$0xff] }
 0x22e   : > { %3666 = vst [vmem:[%s5136_s19 + $0x2e0] sm:$0xff] %v6253_v18  ;;  %v595_v2 = vsel %vm510_vm0, %v506_v43, 0.0  ;;  %v1724_v42 = vmin.f32 %v1723_v32, %v7824_v17  ;;  %vm2355_vm6 = vcmp.lt.s32.totalorder %v2354_v7, %v1971_v6  ;;  %v393_v45 = vld [vmem:[%s7674_s1 + $0x160] sm:$0xff]  ;;  %v6340_v1 = vsel %vm2337_vm3, %v2336_v14, %v1968_v63  ;;  %3398 = vmatpush.msrb.mxu3 %v410_v29  ;;  %v7826_v48 = vld [vmem:[#allocation6_spill] sm:$0xff]  ;;  %v7827_v63 = vld [vmem:[#allocation7_spill] sm:$0xff] }
 0x22f   : > { %3667 = vst [vmem:[%s5136_s19 + $0x2e8] sm:$0xff] %v6270_v54  ;;  %v2206_v34 = vsel %vm2205_vm5, %v2201_v57, inf  ;;  %3060 = vmatpush.msrb.mxu0 %v361_v38  ;;  %v409_v21 = vld [vmem:[%s7674_s1 + $0x1e0] sm:$0xff]  ;;  %vm1844_vm7 = vcmp.eq.f32.partialorder %v7825_v13, %v6183_v39  ;;  %v2219_v43 = vand.u32 65535, %v7826_v48  ;;  %v2356_v14 = vsel %vm2355_vm6, %v2354_v7, %v1971_v6  ;;  %3173 = vmatpush.msrb.mxu1 %v377_v40  ;;  %v374_v39 = vld [vmem:[%s7674_s1 + $0xc8] sm:$0xff]  ;;  %v7830_v13 = vld [vmem:[#allocation36_spill] sm:$0xff] }
 0x230   : > { %3668 = vst [vmem:[%s5136_s19 + $0x2f0] sm:$0xff] %v6286_v61  ;;  %3286 = vmatpush.msrb.mxu2 %v393_v45  ;;  %v2340_v28 = vshra.s32 %v6340_v1, 16  ;;  %3399 = vmatpush.msrb.mxu3 %v409_v21  ;;  %v507_v32 = vmul.f32 %v6159_v25, %v6159_v25  ;;  %v1972_v58 = vsel %vm1844_vm7, %v5611_v11, 512  ;;  %vm2225_vm8 = vcmp.eq.f32.partialorder %v7827_v63, %v6353_v36  ;;  %v358_v25 = vld [vmem:[%s7674_s1 + $0x48] sm:$0xff]  ;;  %v373_v40 = vld [vmem:[%s7674_s1 + $0xc0] sm:$0xff]  ;;  %v6421_v21 = vld [vmem:[%s4910_s15 + $0xf0] sm:$0xff] }
 0x231   : > { %3669 = vst [vmem:[%s5136_s19 + $0x2f8] sm:$0xff] %v6304_v16  ;;  %3061 = vmatpush.msrb.mxu0 %v360_v22  ;;  %3174 = vmatpush.msrb.mxu1 %v376_v8  ;;  %vm2357_vm9 = vcmp.lt.s32.totalorder %v2356_v14, %v1972_v58  ;;  %v2221_v7 = vcvt.s32.f32 %v2219_v43  ;;  %v7828_v33 = vld [vmem:[#allocation34_spill] sm:$0xff]  ;;  %v389_v45 = vld [vmem:[%s7674_s1 + $0x140] sm:$0xff]  ;;  %v356_v48 = vld [vmem:[%s7674_s1 + $0x38] sm:$0xff]  ;;  %v1732_v43 = vmin.f32 %v6253_v18, %v6270_v54 }
 0x232   : > { %3287 = vmatpush.msrb.mxu2 %v392_v4  ;;  %3400 = vmatpush.msrb.mxu3 %v408_v24  ;;  %v6390_v55 = vcvt.s32.f32 %v2340_v28  ;;  %v1727_v29 = vmin.f32 %v7829_v9, %v7828_v33  ;;  %v390_v38 = vld [vmem:[%s7674_s1 + $0x148] sm:$0xff]  ;;  %v598_v57 = vsel %vm510_vm0, %v507_v32, 0.0  ;;  %v6405_v17 = vsel %vm2357_vm9, %v2356_v14, %v1972_v58  ;;  %v372_v14 = vld [vmem:[%s7674_s1 + $0xb8] sm:$0xff]  ;;  %v7831_v24 = vld [vmem:[#allocation37_spill] sm:$0xff] }
 0x233   : > { %3062 = vmatpush.msrb.mxu0 %v359_v23  ;;  %3175 = vmatpush.msrb.mxu1 %v375_v3  ;;  %v406_v6 = vld [vmem:[%s7674_s1 + $0x1c8] sm:$0xff]  ;;  %v2360_v8 = vshra.s32 %v6405_v17, 16  ;;  %v388_v4 = vld [vmem:[%s7674_s1 + $0x138] sm:$0xff]  ;;  %v355_v23 = vld [vmem:[%s7674_s1 + $0x30] sm:$0xff]  ;;  %v1733_v58 = vmin.f32 %v1732_v43, %v6286_v61 }
 0x234   : > { %2207 = vmin.xlane.f32.xlu0 %v2206_v34  ;;  %596 = vadd.xlane.f32.xlu1 %v595_v2  ;;  %v2226_v2 = vsel %vm2225_vm8, %v2221_v7, inf  ;;  %v405_v34 = vld [vmem:[%s7674_s1 + $0x1c0] sm:$0xff]  ;;  %v1728_v22 = vmin.f32 %v1727_v29, %v7830_v13  ;;  %v404_v28 = vld [vmem:[%s7674_s1 + $0x1b8] sm:$0xff]  ;;  %v371_v3 = vld [vmem:[%s7674_s1 + $0xb0] sm:$0xff] }
 0x235   : > { %1725 = vmin.xlane.f32.xlu2 %v1724_v42  ;;  %3288 = vmatpush.msrb.mxu2 %v391_v35  ;;  %v357_v42 = vld [vmem:[%s7674_s1 + $0x40] sm:$0xff]  ;;  %v6443_v54 = vcvt.s32.f32 %v2360_v8  ;;  %v387_v32 = vld [vmem:[%s7674_s1 + $0x130] sm:$0xff]  ;;  %v370_v63 = vld [vmem:[%s7674_s1 + $0xa8] sm:$0xff]  ;;  %v1734_v9 = vmin.f32 %v1733_v58, %v6304_v16 }
 0x236   : > { %3401 = vmatpush.msrb.mxu3 %v407_v51  ;;  %3063 = vmatpush.msrb.mxu0 %v358_v25  ;;  %v1729_v18 = vmin.f32 %v1728_v22, %v7831_v24  ;;  %v403_v35 = vld [vmem:[%s7674_s1 + $0x1b0] sm:$0xff]  ;;  %v354_v51 = vld [vmem:[%s7674_s1 + $0x28] sm:$0xff]  ;;  %v369_v7 = vld [vmem:[%s7674_s1 + $0xa0] sm:$0xff] }
 0x237   : > { %3176 = vmatpush.msrb.mxu1 %v374_v39  ;;  %3289 = vmatpush.msrb.mxu2 %v390_v38  ;;  %v386_v25 = vld [vmem:[%s7674_s1 + $0x128] sm:$0xff]  ;;  %v353_v39 = vld [vmem:[%s7674_s1 + $0x20] sm:$0xff]  ;;  %v6490_v38 = vld [vmem:[%s4910_s15 + $0xf8] sm:$0xff] }
 0x238   : > { %3402 = vmatpush.msrb.mxu3 %v406_v6  ;;  %3064 = vmatpush.msrb.mxu0 %v357_v42  ;;  %v402_v61 = vld [vmem:[%s7674_s1 + $0x1a8] sm:$0xff]  ;;  %v385_v33 = vld [vmem:[%s7674_s1 + $0x120] sm:$0xff]  ;;  %v352_v16 = vld [vmem:[%s7674_s1 + $0x18] sm:$0xff] }
 0x239   : > { %3177 = vmatpush.msrb.mxu1 %v373_v40  ;;  %3290 = vmatpush.msrb.mxu2 %v389_v45  ;;  %v401_v29 = vld [vmem:[%s7674_s1 + $0x1a0] sm:$0xff]  ;;  %v368_v6 = vld [vmem:[%s7674_s1 + $0x98] sm:$0xff]  ;;  %v351_v42 = vld [vmem:[%s7674_s1 + $0x10] sm:$0xff] }
 0x23a   : > { %3403 = vmatpush.msrb.mxu3 %v405_v34  ;;  %4076 = vmatmul.msk.f32.gmra.mxu0 %vm510_vm0, %v6421_v21  ;;  %v367_v40 = vld [vmem:[%s7674_s1 + $0x90] sm:$0xff]  ;;  %v350_v13 = vld [vmem:[%s7674_s1 + $0x8] sm:$0xff]  ;;  %v349_v43 = vld [vmem:[%s7674_s1] sm:$0xff] }
 0x23b   : > { %4124 = vmatmul.msk.f32.gmra.mxu1 %vm510_vm0, %v6421_v21  ;;  %4172 = vmatmul.msk.f32.gmra.mxu2 %vm510_vm0, %v6421_v21  ;;  %v383_v45 = vld [vmem:[%s7674_s1 + $0x110] sm:$0xff]  ;;  %v366_v22 = vld [vmem:[%s7674_s1 + $0x88] sm:$0xff]  ;;  %v397_v24 = vld [vmem:[%s7674_s1 + $0x180] sm:$0xff] }
 0x23c   : > { %2343 = vmin.xlane.f32.xlu0 %v6390_v55  ;;  %2227 = vmin.xlane.f32.xlu1 %v2226_v2  ;;  %v400_v2 = vld [vmem:[%s7674_s1 + $0x198] sm:$0xff]  ;;  %v399_v34 = vld [vmem:[%s7674_s1 + $0x190] sm:$0xff]  ;;  %v382_v8 = vld [vmem:[%s7674_s1 + $0x108] sm:$0xff] }
 0x23d   : > { %599 = vadd.xlane.f32.xlu2 %v598_v57  ;;  %4220 = vmatmul.msk.f32.gmra.mxu3 %vm510_vm0, %v6421_v21  ;;  %v384_v57 = vld [vmem:[%s7674_s1 + $0x118] sm:$0xff]  ;;  %v7832_v58 = vld [vmem:[#allocation10_spill] sm:$0xff] }
 0x23e   : > { %3065 = vmatpush.msrb.mxu0 %v356_v48  ;;  %3178 = vmatpush.msrb.mxu1 %v372_v14  ;;  %v398_v48 = vld [vmem:[%s7674_s1 + $0x188] sm:$0xff]  ;;  %v365_v14 = vld [vmem:[%s7674_s1 + $0x80] sm:$0xff] }
 0x23f   : > { %3291 = vmatpush.msrb.mxu2 %v388_v4  ;;  %3404 = vmatpush.msrb.mxu3 %v404_v28  ;;  %v381_v4 = vld [vmem:[%s7674_s1 + $0x100] sm:$0xff] }
 0x240   : > { %3066 = vmatpush.msrb.mxu0 %v355_v23  ;;  %3179 = vmatpush.msrb.mxu1 %v371_v3 }
 0x241   : > { %3292 = vmatpush.msrb.mxu2 %v387_v32  ;;  %3405 = vmatpush.msrb.mxu3 %v403_v35  ;;  %v2239_v35 = vand.u32 65535, %v7832_v58 }
 0x242   : > { %3067 = vmatpush.msrb.mxu0 %v354_v51  ;;  %3180 = vmatpush.msrb.mxu1 %v370_v63  ;;  %v2070_v51 = vcvt.f32.s32 %v6070_v44  ;;  %v2259_v44 = vand.u32 65535, %v6081_v62  ;;  %v4530_v62 = vld [vmem:[%s5136_s19 + $0x220] sm:$0xff] }
 0x243   : > { %3293 = vmatpush.msrb.mxu2 %v386_v25  ;;  %3406 = vmatpush.msrb.mxu3 %v402_v61  ;;  %v2241_v25 = vcvt.s32.f32 %v2239_v35  ;;  %v7833_v61 = vld [vmem:[#allocation11_spill] sm:$0xff]  ;;  %v2279_v35 = vand.u32 65535, %v6150_v20 }
 0x244   : > { %1730 = vmin.xlane.f32.xlu0 %v1729_v18  ;;  %2363 = vmin.xlane.f32.xlu1 %v6443_v54  ;;  %v2050_v18 = vcvt.f32.s32 %v6041_v59  ;;  %v7729_v59 = vmov 1.0  }
 0x245   : > { %3068 = vmatpush.msrb.mxu0 %v353_v39  ;;  %3181 = vmatpush.msrb.mxu1 %v369_v7 }
 0x246   : > { %3294 = vmatpush.msrb.mxu2 %v385_v33  ;;  %3407 = vmatpush.msrb.mxu3 %v401_v29  ;;  %v2051_v23 = vshll.u32 %v2050_v18, 16  ;;  %v2071_v33 = vshll.u32 %v2070_v51, 16  ;;  %v2090_v29 = vcvt.f32.s32 %v6106_v60  ;;  %v1097_v18 = vpop.f32.mrf.mxu1 }
 0x247   : > { %4077 = vmatmul.msk.f32.gmra.mxu0 %vm510_vm0, %v6490_v38  ;;  %4125 = vmatmul.msk.f32.gmra.mxu1 %vm510_vm0, %v6490_v38 }
 0x248   : > { %4173 = vmatmul.msk.f32.gmra.mxu2 %vm510_vm0, %v6490_v38  ;;  %4221 = vmatmul.msk.f32.gmra.mxu3 %vm510_vm0, %v6490_v38 }
 0x249   : > { %3069 = vmatpush.msrb.mxu0 %v352_v16  ;;  %3182 = vmatpush.msrb.mxu1 %v368_v6 }
 0x24a   : > { %3295 = vmatpush.msrb.mxu2 %v384_v57  ;;  %3408 = vmatpush.msrb.mxu3 %v400_v2  ;;  %v2091_v57 = vshll.u32 %v2090_v29, 16  ;;  %v4531_v2 = vld [vmem:[%s5136_s19 + $0x228] sm:$0xff]  ;;  %v6617_v29 = vmul.f32 %v6490_v38, %v6490_v38 }
 0x24b   : > { %3070 = vmatpush.msrb.mxu0 %v351_v42  ;;  %3183 = vmatpush.msrb.mxu1 %v367_v40 }
 0x24c   : > { %1735 = vmin.xlane.f32.xlu1 %v1734_v9  ;;  %3296 = vmatpush.msrb.mxu2 %v383_v45  ;;  %v4532_v45 = vld [vmem:[%s5136_s19 + $0x230] sm:$0xff] }
 0x24d   : > { %3409 = vmatpush.msrb.mxu3 %v399_v34  ;;  %3071 = vmatpush.msrb.mxu0 %v350_v13 }
 0x24e   : > { %3184 = vmatpush.msrb.mxu1 %v366_v22  ;;  %3297 = vmatpush.msrb.mxu2 %v382_v8  ;;  %v2261_v22 = vcvt.s32.f32 %v2259_v44  ;;  %v4534_v44 = vld [vmem:[%s5136_s19 + $0x240] sm:$0xff] }
 0x24f   : > { %3410 = vmatpush.msrb.mxu3 %v398_v48  ;;  %3072 = vmatpush.msrb.mxu0 %v349_v43  ;;  %v2110_v48 = vcvt.f32.s32 %v6142_v10  ;;  %v4533_v43 = vld [vmem:[%s5136_s19 + $0x238] sm:$0xff]  ;;  %v984_v10 = vpop.f32.mrf.mxu0 }
 0x250   : > { %3185 = vmatpush.msrb.mxu1 %v365_v14  ;;  %3298 = vmatpush.msrb.mxu2 %v381_v4 }
 0x251   : > { %3411 = vmatpush.msrb.mxu3 %v397_v24 }
 0x266   : > { %v2048_v28 = vpop.xlane.xlu1 %2047 }
 0x267   : > { %v2049_v3 = vcvt.f32.s32 %v2048_v28 }
 0x269   : > { %v2052_v32 = vadd.s32 %v2051_v23, %v2049_v3  ;;  %v2111_v3 = vshll.u32 %v2110_v48, 16  ;;  %v987_v48 = vpop.f32.mrf.mxu0 }
 0x26b   : > { %3542 = vst.msk [vmem:[%s6553_s20] sm:$0xff] %vm3541_vm10, %v2052_v32  ;;  %vm2673_vm11 = vcmp.eq.s32.totalorder %v5548_v15, %v2052_v32  ;;  %vm2674_vm12 = vcmp.eq.s32.totalorder %v5555_v50, %v2052_v32  ;;  %vm2675_vm13 = vcmp.eq.s32.totalorder %v5568_v49, %v2052_v32  ;;  %vm2676_vm14 = vcmp.eq.s32.totalorder %v5611_v11, %v2052_v32 }
 0x26c   : > { %4350 = vmatmul.msk.f32.vlgmr.msrb.gmra.mxu0 %vm2673_vm11, %v7729_v59  ;;  %4382 = vmatmul.msk.f32.vlgmr.msrb.gmra.mxu1 %vm2674_vm12, %v7729_v59 }
 0x26d   : > { %4414 = vmatmul.msk.f32.vlgmr.msrb.gmra.mxu2 %vm2675_vm13, %v7729_v59  ;;  %4446 = vmatmul.msk.f32.vlgmr.msrb.gmra.mxu3 %vm2676_vm14, %v7729_v59 }
 0x26e   : > { %v6567_v63 = vpop.xlane.xlu1 %2243 }
 0x26f   : > { %vm2245_vm15 = vcmp.eq.f32.partialorder %v7833_v61, %v6567_v63  ;;  %v2068_v39 = vpop.xlane.xlu2 %2067 }
 0x270   : > { %v2246_v7 = vsel %vm2245_vm15, %v2241_v25, inf  ;;  %v2069_v9 = vcvt.f32.s32 %v2068_v39  ;;  %v2130_v39 = vcvt.f32.s32 %v6172_v41  ;;  %v4536_v41 = vld [vmem:[%s5136_s19 + $0x250] sm:$0xff] }
 0x271   : > { %2247 = vmin.xlane.f32.xlu2 %v2246_v7 }
 0x272   : > { %v2072_v16 = vadd.s32 %v2071_v33, %v2069_v9  ;;  %v1210_v33 = vpop.f32.mrf.mxu2 }
 0x274   : > { %3543 = vst.msk [vmem:[%s6553_s20 + $0x8] sm:$0xff] %vm3541_vm10, %v2072_v16  ;;  %vm2677_vm1 = vcmp.eq.s32.totalorder %v5548_v15, %v2072_v16  ;;  %vm2678_vm2 = vcmp.eq.s32.totalorder %v5555_v50, %v2072_v16  ;;  %vm2679_vm4 = vcmp.eq.s32.totalorder %v5568_v49, %v2072_v16  ;;  %vm2680_vm5 = vcmp.eq.s32.totalorder %v5611_v11, %v2072_v16 }
 0x275   : > { %4351 = vmatmul.msk.f32.gmra.mxu0 %vm2677_vm1, %v7729_v59  ;;  %4383 = vmatmul.msk.f32.gmra.mxu1 %vm2678_vm2, %v7729_v59 }
 0x276   : > { %v1706_v60 = vpop.xlane.xlu1 %1705  ;;  %4415 = vmatmul.msk.f32.gmra.mxu2 %vm2679_vm4, %v7729_v59  ;;  %4447 = vmatmul.msk.f32.gmra.mxu3 %vm2680_vm5, %v7729_v59 }
 0x277   : > { %v2088_v6 = vpop.xlane.xlu0 %2087  ;;  %vm1845_vm3 = vcmp.eq.f32.partialorder %v4530_v62, %v1706_v60  ;;  %vm1846_vm6 = vcmp.eq.f32.partialorder %v4531_v2, %v1706_v60  ;;  %v6585_v40 = vpop.xlane.xlu2 %2263  ;;  %vm1847_vm7 = vcmp.eq.f32.partialorder %v4532_v45, %v1706_v60  ;;  %vm1848_vm11 = vcmp.eq.f32.partialorder %v4533_v43, %v1706_v60  ;;  %v4535_v60 = vld [vmem:[%s5136_s19 + $0x248] sm:$0xff]  ;;  %v4537_v62 = vld [vmem:[%s5136_s19 + $0x258] sm:$0xff] }
 0x278   : > { %v2089_v42 = vcvt.f32.s32 %v2088_v6  ;;  %v1973_v34 = vsel %vm1845_vm3, %v5548_v15, 512  ;;  %v1974_v13 = vsel %vm1846_vm6, %v5555_v50, 512  ;;  %vm2265_vm9 = vcmp.eq.f32.partialorder %v6114_v26, %v6585_v40  ;;  %v1323_v6 = vpop.f32.mrf.mxu3  ;;  %v1100_v43 = vpop.f32.mrf.mxu1 }
 0x279   : > { %vm2373_vm8 = vcmp.lt.s32.totalorder %v1973_v34, %v1974_v13  ;;  %v2266_v14 = vsel %vm2265_vm9, %v2261_v22, inf  ;;  %v1975_v24 = vsel %vm1847_vm7, %v5568_v49, 512  ;;  %v508_v26 = vmul.f32 %v6421_v21, %v6421_v21 }
 0x27a   : > { %v2092_v8 = vadd.s32 %v2091_v57, %v2089_v42  ;;  %v2374_v4 = vsel %vm2373_vm8, %v1973_v34, %v1974_v13  ;;  %2267 = vmin.xlane.f32.xlu0 %v2266_v14  ;;  %v1976_v28 = vsel %vm1848_vm11, %v5611_v11, 512 }
 0x27b   : > { %vm2375_vm1 = vcmp.lt.s32.totalorder %v2374_v4, %v1975_v24  ;;  %v601_v9 = vsel %vm510_vm0, %v508_v26, 0.0 }
 0x27c   : > { %3544 = vst.msk [vmem:[%s6553_s20 + $0x10] sm:$0xff] %vm3541_vm10, %v2092_v8  ;;  %vm2681_vm12 = vcmp.eq.s32.totalorder %v5548_v15, %v2092_v8  ;;  %vm2682_vm13 = vcmp.eq.s32.totalorder %v5555_v50, %v2092_v8  ;;  %vm2683_vm14 = vcmp.eq.s32.totalorder %v5568_v49, %v2092_v8  ;;  %vm2684_vm15 = vcmp.eq.s32.totalorder %v5611_v11, %v2092_v8 }
 0x27d   : > { %v2376_v23 = vsel %vm2375_vm1, %v2374_v4, %v1975_v24  ;;  %4352 = vmatmul.msk.f32.gmra.mxu0 %vm2681_vm12, %v7729_v59  ;;  %4384 = vmatmul.msk.f32.gmra.mxu1 %vm2682_vm13, %v7729_v59 }
 0x27e   : > { %vm2377_vm2 = vcmp.lt.s32.totalorder %v2376_v23, %v1976_v28  ;;  %4416 = vmatmul.msk.f32.gmra.mxu2 %vm2683_vm14, %v7729_v59  ;;  %4448 = vmatmul.msk.f32.gmra.mxu3 %vm2684_vm15, %v7729_v59 }
 0x27f   : > { %v2108_v32 = vpop.xlane.xlu1 %2107  ;;  %v585_v58 = vpop.xlane.xlu0 %584  ;;  %v6622_v57 = vsel %vm2377_vm2, %v2376_v23, %v1976_v28 }
 0x280   : > { %v2109_v21 = vcvt.f32.s32 %v2108_v32  ;;  %v1452_v51 = vadd.f32 %v5111_v46, %v585_v58  ;;  %v1453_v25 = vadd.f32 %v5113_v47, %v585_v58  ;;  %v1454_v61 = vadd.f32 %v5128_v52, %v585_v58  ;;  %v1711_v7 = vpop.xlane.xlu2 %1710 }
 0x281   : > { %v1455_v20 = vadd.f32 %v5130_v53, %v585_v58  ;;  %vm1849_vm4 = vcmp.eq.f32.partialorder %v4534_v44, %v1711_v7  ;;  %vm1850_vm5 = vcmp.eq.f32.partialorder %v4535_v60, %v1711_v7  ;;  %vm1851_vm3 = vcmp.eq.f32.partialorder %v4536_v41, %v1711_v7 }
 0x282   : > { %v2112_v16 = vadd.s32 %v2111_v3, %v2109_v21  ;;  %vm1852_vm6 = vcmp.eq.f32.partialorder %v4537_v62, %v1711_v7  ;;  %v1977_v2 = vsel %vm1849_vm4, %v5548_v15, 512  ;;  %v1978_v42 = vsel %vm1850_vm5, %v5555_v50, 512  ;;  %602 = vadd.xlane.f32.xlu0 %v601_v9  ;;  %v1326_v7 = vpop.f32.mrf.mxu3 }
 0x283   : > { %vm2393_vm7 = vcmp.lt.s32.totalorder %v1977_v2, %v1978_v42  ;;  %v6630_v38 = vadd.f32 %v1452_v51, %v984_v10  ;;  %v6632_v45 = vadd.f32 %v1453_v25, %v1097_v18  ;;  %v6634_v34 = vadd.f32 %v1454_v61, %v1210_v33  ;;  %v1213_v51 = vpop.f32.mrf.mxu2 }
 0x284   : > { %3545 = vst.msk [vmem:[%s6553_s20 + $0x18] sm:$0xff] %vm3541_vm10, %v2112_v16  ;;  %v6636_v13 = vadd.f32 %v1455_v20, %v1323_v6  ;;  %v2380_v22 = vshra.s32 %v6622_v57, 16  ;;  %vm2685_vm8 = vcmp.eq.s32.totalorder %v5548_v15, %v2112_v16  ;;  %vm2686_vm9 = vcmp.eq.s32.totalorder %v5555_v50, %v2112_v16 }
 0x285   : > { %v1979_v8 = vsel %vm1851_vm3, %v5568_v49, 512  ;;  %3670 = vst [vmem:[%s5136_s19 + $0x300] sm:$0xff] %v6630_v38  ;;  %vm2687_vm11 = vcmp.eq.s32.totalorder %v5568_v49, %v2112_v16  ;;  %vm2688_vm12 = vcmp.eq.s32.totalorder %v5611_v11, %v2112_v16  ;;  %v2394_v14 = vsel %vm2393_vm7, %v1977_v2, %v1978_v42  ;;  %4353 = vmatmul.msk.f32.gmra.mxu0 %vm2685_vm8, %v7729_v59 }
 0x286   : > { %3671 = vst [vmem:[%s5136_s19 + $0x308] sm:$0xff] %v6632_v45  ;;  %v6648_v4 = vcvt.s32.f32 %v2380_v22  ;;  %4385 = vmatmul.msk.f32.gmra.mxu1 %vm2686_vm9, %v7729_v59  ;;  %v2281_v10 = vcvt.s32.f32 %v2279_v35  ;;  %vm2395_vm13 = vcmp.lt.s32.totalorder %v2394_v14, %v1979_v8  ;;  %v1737_v18 = vmin.f32 %v6630_v38, %v6632_v45  ;;  %4417 = vmatmul.msk.f32.gmra.mxu2 %vm2687_vm11, %v7729_v59 }
 0x287   : > { %v588_v24 = vpop.xlane.xlu1 %587  ;;  %v6652_v26 = vpop.xlane.xlu0 %2283  ;;  %3672 = vst [vmem:[%s5136_s19 + $0x310] sm:$0xff] %v6634_v34  ;;  %4449 = vmatmul.msk.f32.gmra.mxu3 %vm2688_vm12, %v7729_v59  ;;  %v1980_v23 = vsel %vm1852_vm6, %v5611_v11, 512  ;;  %v2396_v35 = vsel %vm2395_vm13, %v2394_v14, %v1979_v8  ;;  %v2150_v16 = vcvt.f32.s32 %v6191_v12  ;;  %v604_v62 = vsel %vm510_vm0, %v6617_v29, 0.0 }
 0x288   : > { %vm2285_vm14 = vcmp.eq.f32.partialorder %v6175_v30, %v6652_v26  ;;  %v1456_v28 = vadd.f32 %v5111_v46, %v588_v24  ;;  %3673 = vst [vmem:[%s5136_s19 + $0x318] sm:$0xff] %v6636_v13  ;;  %2383 = vmin.xlane.f32.xlu2 %v6648_v4  ;;  %v2128_v3 = vpop.xlane.xlu2 %2127  ;;  %v1457_v58 = vadd.f32 %v5113_v47, %v588_v24  ;;  %v2131_v30 = vshll.u32 %v2130_v39, 16  ;;  %v990_v14 = vpop.f32.mrf.mxu0 }
 0x289   : > { %v2286_v32 = vsel %vm2285_vm14, %v2281_v10, inf  ;;  %v1738_v21 = vmin.f32 %v1737_v18, %v6634_v34  ;;  %v2129_v25 = vcvt.f32.s32 %v2128_v3  ;;  %vm2397_vm15 = vcmp.lt.s32.totalorder %v2396_v35, %v1980_v23  ;;  %v1103_v10 = vpop.f32.mrf.mxu1 }
 0x28a   : > { %2287 = vmin.xlane.f32.xlu1 %v2286_v32  ;;  %v6670_v61 = vadd.f32 %v1456_v28, %v987_v48  ;;  %v6672_v33 = vadd.f32 %v1457_v58, %v1100_v43  ;;  %v6674_v20 = vsel %vm2397_vm15, %v2396_v35, %v1980_v23  ;;  %v1458_v9 = vadd.f32 %v5128_v52, %v588_v24 }
 0x28b   : > { %v2132_v44 = vadd.s32 %v2131_v30, %v2129_v25  ;;  %v2400_v39 = vshra.s32 %v6674_v20, 16  ;;  %v1459_v60 = vadd.f32 %v5130_v53, %v588_v24  ;;  %v1739_v6 = vmin.f32 %v1738_v21, %v6636_v13  ;;  %v1216_v35 = vpop.f32.mrf.mxu2 }
 0x28c   : > { %3674 = vst [vmem:[%s5136_s19 + $0x320] sm:$0xff] %v6670_v61  ;;  %v6685_v41 = vadd.f32 %v1458_v9, %v1213_v51  ;;  %v1742_v2 = vmin.f32 %v6670_v61, %v6672_v33  ;;  %v2151_v48 = vshll.u32 %v2150_v16, 16  ;;  %v2299_v3 = vand.u32 65535, %v6180_v0  ;;  %v1329_v0 = vpop.f32.mrf.mxu3 }
 0x28d   : > { %3675 = vst [vmem:[%s5136_s19 + $0x328] sm:$0xff] %v6672_v33  ;;  %v6693_v12 = vcvt.s32.f32 %v2400_v39  ;;  %vm2689_vm1 = vcmp.eq.s32.totalorder %v5548_v15, %v2132_v44  ;;  %vm2690_vm2 = vcmp.eq.s32.totalorder %v5555_v50, %v2132_v44  ;;  %vm2691_vm4 = vcmp.eq.s32.totalorder %v5568_v49, %v2132_v44 }
 0x28e   : > { %3546 = vst.msk [vmem:[%s6553_s20 + $0x20] sm:$0xff] %vm3541_vm10, %v2132_v44  ;;  %4354 = vmatmul.msk.f32.gmra.mxu0 %vm2689_vm1, %v7729_v59  ;;  %4386 = vmatmul.msk.f32.gmra.mxu1 %vm2690_vm2, %v7729_v59  ;;  %vm2692_vm5 = vcmp.eq.s32.totalorder %v5611_v11, %v2132_v44  ;;  %v6703_v29 = vadd.f32 %v1459_v60, %v1326_v7  ;;  %v2170_v32 = vcvt.f32.s32 %v6206_v19  ;;  %v2301_v19 = vcvt.s32.f32 %v2299_v3 }
 0x28f   : > { %3676 = vst [vmem:[%s5136_s19 + $0x330] sm:$0xff] %v6685_v41  ;;  %v6705_v42 = vpop.xlane.xlu1 %2303  ;;  %v2148_v22 = vpop.xlane.xlu0 %2147  ;;  %v1743_v8 = vmin.f32 %v1742_v2, %v6685_v41  ;;  %2403 = vmin.xlane.f32.xlu0 %v6693_v12  ;;  %4418 = vmatmul.msk.f32.gmra.mxu2 %vm2691_vm4, %v7729_v59  ;;  %v4539_v2 = vld [vmem:[%s5136_s19 + $0x268] sm:$0xff] }
 0x290   : > { %v2149_v43 = vcvt.f32.s32 %v2148_v22  ;;  %1740 = vmin.xlane.f32.xlu2 %v1739_v6  ;;  %4450 = vmatmul.msk.f32.gmra.mxu3 %vm2692_vm5, %v7729_v59  ;;  %3677 = vst [vmem:[%s5136_s19 + $0x338] sm:$0xff] %v6703_v29  ;;  %v591_v24 = vpop.xlane.xlu2 %590  ;;  %vm2305_vm7 = vcmp.eq.f32.partialorder %v6196_v37, %v6705_v42  ;;  %v2171_v9 = vshll.u32 %v2170_v32, 16  ;;  %v993_v32 = vpop.f32.mrf.mxu0 }
 0x291   : > { %v1460_v28 = vadd.f32 %v5111_v46, %v591_v24  ;;  %v1461_v23 = vadd.f32 %v5113_v47, %v591_v24  ;;  %v1744_v58 = vmin.f32 %v1743_v8, %v6703_v29  ;;  %v1462_v21 = vadd.f32 %v5128_v52, %v591_v24  ;;  %v4540_v8 = vld [vmem:[%s5136_s19 + $0x270] sm:$0xff] }
 0x292   : > { %v2152_v18 = vadd.s32 %v2151_v48, %v2149_v43  ;;  %605 = vadd.xlane.f32.xlu1 %v604_v62  ;;  %v1463_v51 = vadd.f32 %v5130_v53, %v591_v24  ;;  %v2306_v60 = vsel %vm2305_vm7, %v2301_v19, inf  ;;  %v4538_v62 = vld [vmem:[%s5136_s19 + $0x260] sm:$0xff]  ;;  %v2319_v24 = vand.u32 65535, %v6208_v56 }
 0x293   : > { %v6722_v30 = vadd.f32 %v1460_v28, %v990_v14  ;;  %v6724_v25 = vadd.f32 %v1461_v23, %v1103_v10  ;;  %v6733_v7 = vadd.f32 %v1462_v21, %v1216_v35  ;;  %v2190_v10 = vcvt.f32.s32 %v6233_v27  ;;  %v4541_v23 = vld [vmem:[%s5136_s19 + $0x278] sm:$0xff]  ;;  %v1219_v27 = vpop.f32.mrf.mxu2 }
 0x294   : > { %3547 = vst.msk [vmem:[%s6553_s20 + $0x28] sm:$0xff] %vm3541_vm10, %v2152_v18  ;;  %vm2693_vm3 = vcmp.eq.s32.totalorder %v5548_v15, %v2152_v18  ;;  %vm2694_vm6 = vcmp.eq.s32.totalorder %v5555_v50, %v2152_v18  ;;  %vm2695_vm8 = vcmp.eq.s32.totalorder %v5568_v49, %v2152_v18  ;;  %vm2696_vm9 = vcmp.eq.s32.totalorder %v5611_v11, %v2152_v18 }
 0x295   : > { %3678 = vst [vmem:[%s5136_s19 + $0x340] sm:$0xff] %v6722_v30  ;;  %v6740_v37 = vadd.f32 %v1463_v51, %v1329_v0  ;;  %v1747_v39 = vmin.f32 %v6722_v30, %v6724_v25  ;;  %v2321_v56 = vcvt.s32.f32 %v2319_v24  ;;  %v2191_v51 = vshll.u32 %v2190_v10, 16  ;;  %v4545_v10 = vld [vmem:[%s5136_s19 + $0x298] sm:$0xff] }
 0x296   : > { %3679 = vst [vmem:[%s5136_s19 + $0x348] sm:$0xff] %v6724_v25  ;;  %4355 = vmatmul.msk.f32.gmra.mxu0 %vm2693_vm3, %v7729_v59  ;;  %4387 = vmatmul.msk.f32.gmra.mxu1 %vm2694_vm6, %v7729_v59 }
 0x297   : > { %v2168_v16 = vpop.xlane.xlu1 %2167  ;;  %v1716_v44 = vpop.xlane.xlu0 %1715  ;;  %1745 = vmin.xlane.f32.xlu0 %v1744_v58  ;;  %3680 = vst [vmem:[%s5136_s19 + $0x350] sm:$0xff] %v6733_v7  ;;  %4419 = vmatmul.msk.f32.gmra.mxu2 %vm2695_vm8, %v7729_v59  ;;  %v1748_v28 = vmin.f32 %v1747_v39, %v6733_v7  ;;  %v4542_v39 = vld [vmem:[%s5136_s19 + $0x280] sm:$0xff] }
 0x298   : > { %v2169_v6 = vcvt.f32.s32 %v2168_v16  ;;  %vm1853_vm11 = vcmp.eq.f32.partialorder %v4538_v62, %v1716_v44  ;;  %vm1854_vm12 = vcmp.eq.f32.partialorder %v4539_v2, %v1716_v44  ;;  %2307 = vmin.xlane.f32.xlu2 %v2306_v60  ;;  %4451 = vmatmul.msk.f32.gmra.mxu3 %vm2696_vm9, %v7729_v59  ;;  %3681 = vst [vmem:[%s5136_s19 + $0x358] sm:$0xff] %v6740_v37  ;;  %v6756_v22 = vpop.xlane.xlu2 %2323  ;;  %v1106_v58 = vpop.f32.mrf.mxu1  ;;  %v4543_v60 = vld [vmem:[%s5136_s19 + $0x288] sm:$0xff]  ;;  %v2210_v62 = vcvt.f32.s32 %v6219_v5  ;;  %v4544_v2 = vld [vmem:[%s5136_s19 + $0x290] sm:$0xff] }
 0x299   : > { %vm1855_vm13 = vcmp.eq.f32.partialorder %v4540_v8, %v1716_v44  ;;  %v1981_v48 = vsel %vm1853_vm11, %v5548_v15, 512  ;;  %v1982_v43 = vsel %vm1854_vm12, %v5555_v50, 512  ;;  %vm1856_vm15 = vcmp.eq.f32.partialorder %v4541_v23, %v1716_v44 }
 0x29a   : > { %v2172_v14 = vadd.s32 %v2171_v9, %v2169_v6  ;;  %vm2413_vm14 = vcmp.lt.s32.totalorder %v1981_v48, %v1982_v43  ;;  %v1983_v3 = vsel %vm1855_vm13, %v5568_v49, 512  ;;  %v1749_v35 = vmin.f32 %v1748_v28, %v6740_v37  ;;  %v1332_v6 = vpop.f32.mrf.mxu3 }
 0x29b   : > { %v2414_v18 = vsel %vm2413_vm14, %v1981_v48, %v1982_v43  ;;  %vm2325_vm4 = vcmp.eq.f32.partialorder %v6224_v31, %v6756_v22  ;;  %v1984_v31 = vsel %vm1856_vm15, %v5611_v11, 512 }
 0x29c   : > { %3548 = vst.msk [vmem:[%s6553_s20 + $0x30] sm:$0xff] %vm3541_vm10, %v2172_v14  ;;  %vm2697_vm1 = vcmp.eq.s32.totalorder %v5548_v15, %v2172_v14  ;;  %vm2698_vm2 = vcmp.eq.s32.totalorder %v5555_v50, %v2172_v14  ;;  %vm2699_vm5 = vcmp.eq.s32.totalorder %v5568_v49, %v2172_v14  ;;  %vm2415_vm3 = vcmp.lt.s32.totalorder %v2414_v18, %v1983_v3 }
 0x29d   : > { %vm2700_vm6 = vcmp.eq.s32.totalorder %v5611_v11, %v2172_v14  ;;  %v2416_v21 = vsel %vm2415_vm3, %v2414_v18, %v1983_v3  ;;  %v2326_v16 = vsel %vm2325_vm4, %v2321_v56, inf }
 0x29e   : > { %4356 = vmatmul.msk.f32.gmra.mxu0 %vm2697_vm1, %v7729_v59  ;;  %4388 = vmatmul.msk.f32.gmra.mxu1 %vm2698_vm2, %v7729_v59  ;;  %vm2417_vm9 = vcmp.lt.s32.totalorder %v2416_v21, %v1984_v31 }
 0x29f   : > { %v6777_v0 = vpop.xlane.xlu1 %1720  ;;  %v594_v19 = vpop.xlane.xlu0 %593  ;;  %1750 = vmin.xlane.f32.xlu0 %v1749_v35  ;;  %4420 = vmatmul.msk.f32.gmra.mxu2 %vm2699_vm5, %v7729_v59  ;;  %v6801_v28 = vsel %vm2417_vm9, %v2416_v21, %v1984_v31 }
 0x2a0   : > { %vm1857_vm7 = vcmp.eq.f32.partialorder %v4542_v39, %v6777_v0  ;;  %vm1858_vm8 = vcmp.eq.f32.partialorder %v4543_v60, %v6777_v0  ;;  %2327 = vmin.xlane.f32.xlu2 %v2326_v16  ;;  %4452 = vmatmul.msk.f32.gmra.mxu3 %vm2700_vm6, %v7729_v59  ;;  %v2188_v44 = vpop.xlane.xlu2 %2187  ;;  %vm1859_vm11 = vcmp.eq.f32.partialorder %v4544_v2, %v6777_v0  ;;  %v2420_v56 = vshra.s32 %v6801_v28, 16 }
 0x2a1   : > { %v1985_v8 = vsel %vm1857_vm7, %v5548_v15, 512  ;;  %v1986_v48 = vsel %vm1858_vm8, %v5555_v50, 512  ;;  %v2189_v43 = vcvt.f32.s32 %v2188_v44  ;;  %v1464_v24 = vadd.f32 %v5111_v46, %v594_v19 }
 0x2a2   : > { %vm2433_vm12 = vcmp.lt.s32.totalorder %v1985_v8, %v1986_v48  ;;  %v1465_v5 = vadd.f32 %v5113_v47, %v594_v19  ;;  %vm1860_vm13 = vcmp.eq.f32.partialorder %v4545_v10, %v6777_v0  ;;  %v1466_v14 = vadd.f32 %v5128_v52, %v594_v19 }
 0x2a3   : > { %v1467_v18 = vadd.f32 %v5130_v53, %v594_v19  ;;  %v2192_v23 = vadd.s32 %v2191_v51, %v2189_v43  ;;  %v6804_v3 = vadd.f32 %v1464_v24, %v993_v32  ;;  %v1987_v16 = vsel %vm1859_vm11, %v5568_v49, 512  ;;  %v996_v32 = vpop.f32.mrf.mxu0 }
 0x2a4   : > { %v6806_v35 = vadd.f32 %v1465_v5, %v1106_v58  ;;  %v6812_v39 = vadd.f32 %v1466_v14, %v1219_v27  ;;  %v2434_v21 = vsel %vm2433_vm12, %v1985_v8, %v1986_v48  ;;  %v6818_v19 = vcvt.s32.f32 %v2420_v56  ;;  %v1109_v58 = vpop.f32.mrf.mxu1  ;;  %v1222_v48 = vpop.f32.mrf.mxu2 }
 0x2a5   : > { %v6814_v60 = vadd.f32 %v1467_v18, %v1332_v6  ;;  %3549 = vst.msk [vmem:[%s6553_s20 + $0x38] sm:$0xff] %vm3541_vm10, %v2192_v23  ;;  %vm2701_vm14 = vcmp.eq.s32.totalorder %v5548_v15, %v2192_v23  ;;  %vm2702_vm15 = vcmp.eq.s32.totalorder %v5555_v50, %v2192_v23  ;;  %vm2703_vm1 = vcmp.eq.s32.totalorder %v5568_v49, %v2192_v23  ;;  %v4546_v18 = vld [vmem:[%s5136_s19 + $0x2a0] sm:$0xff] }
 0x2a6   : > { %3682 = vst [vmem:[%s5136_s19 + $0x360] sm:$0xff] %v6804_v3  ;;  %4357 = vmatmul.msk.f32.gmra.mxu0 %vm2701_vm14, %v7729_v59  ;;  %4389 = vmatmul.msk.f32.gmra.mxu1 %vm2702_vm15, %v7729_v59  ;;  %vm2704_vm2 = vcmp.eq.s32.totalorder %v5611_v11, %v2192_v23  ;;  %v1752_v31 = vmin.f32 %v6804_v3, %v6806_v35  ;;  %v2230_v6 = vcvt.f32.s32 %v6353_v36  ;;  %v2211_v43 = vshll.u32 %v2210_v62, 16  ;;  %v4547_v62 = vld [vmem:[%s5136_s19 + $0x2a8] sm:$0xff]  ;;  %v4548_v23 = vld [vmem:[%s5136_s19 + $0x2b0] sm:$0xff] }
 0x2a7   : > { %v597_v27 = vpop.xlane.xlu1 %596  ;;  %v2208_v51 = vpop.xlane.xlu0 %2207  ;;  %vm2435_vm4 = vcmp.lt.s32.totalorder %v2434_v21, %v1987_v16  ;;  %3683 = vst [vmem:[%s5136_s19 + $0x368] sm:$0xff] %v6806_v35  ;;  %2423 = vmin.xlane.f32.xlu1 %v6818_v19  ;;  %4421 = vmatmul.msk.f32.gmra.mxu2 %vm2703_vm1, %v7729_v59  ;;  %v1988_v14 = vsel %vm1860_vm13, %v5611_v11, 512 }
 0x2a8   : > { %v2209_v44 = vcvt.f32.s32 %v2208_v51  ;;  %v1468_v2 = vadd.f32 %v5111_v46, %v597_v27  ;;  %v1469_v8 = vadd.f32 %v5113_v47, %v597_v27  ;;  %3684 = vst [vmem:[%s5136_s19 + $0x370] sm:$0xff] %v6812_v39  ;;  %4453 = vmatmul.msk.f32.gmra.mxu3 %vm2704_vm2, %v7729_v59  ;;  %v1726_v36 = vpop.xlane.xlu2 %1725  ;;  %v1753_v24 = vmin.f32 %v1752_v31, %v6812_v39  ;;  %v1335_v51 = vpop.f32.mrf.mxu3  ;;  %v4549_v31 = vld [vmem:[%s5136_s19 + $0x2b8] sm:$0xff] }
 0x2a9   : > { %v1470_v5 = vadd.f32 %v5128_v52, %v597_v27  ;;  %3685 = vst [vmem:[%s5136_s19 + $0x378] sm:$0xff] %v6814_v60  ;;  %vm1861_vm5 = vcmp.eq.f32.partialorder %v4546_v18, %v1726_v36  ;;  %vm1862_vm3 = vcmp.eq.f32.partialorder %v4547_v62, %v1726_v36  ;;  %vm1863_vm6 = vcmp.eq.f32.partialorder %v4548_v23, %v1726_v36 }
 0x2aa   : > { %v2436_v56 = vsel %vm2435_vm4, %v2434_v21, %v1987_v16  ;;  %vm1864_vm7 = vcmp.eq.f32.partialorder %v4549_v31, %v1726_v36  ;;  %v1989_v9 = vsel %vm1861_vm5, %v5548_v15, 512  ;;  %v1990_v0 = vsel %vm1862_vm3, %v5555_v50, 512 }
 0x2ab   : > { %v2212_v10 = vadd.s32 %v2211_v43, %v2209_v44  ;;  %vm2453_vm8 = vcmp.lt.s32.totalorder %v1989_v9, %v1990_v0  ;;  %v6854_v59 = vadd.f32 %v1468_v2, %v996_v32  ;;  %v6856_v18 = vadd.f32 %v1469_v8, %v1109_v58 }
 0x2ac   : > { %v1754_v62 = vmin.f32 %v1753_v24, %v6814_v60  ;;  %v6861_v16 = vadd.f32 %v1470_v5, %v1222_v48  ;;  %vm2437_vm9 = vcmp.lt.s32.totalorder %v2436_v56, %v1988_v14  ;;  %v1471_v21 = vadd.f32 %v5130_v53, %v597_v27  ;;  %v1225_v23 = vpop.f32.mrf.mxu2 }
 0x2ad   : > { %7834 = vst [vmem:[#allocation12_spill] sm:$0xff] %v6854_v59  ;;  %vm2705_vm11 = vcmp.eq.s32.totalorder %v5548_v15, %v2212_v10  ;;  %v6867_v44 = vsel %vm2437_vm9, %v2436_v56, %v1988_v14  ;;  %vm2706_vm12 = vcmp.eq.s32.totalorder %v5555_v50, %v2212_v10  ;;  %vm2707_vm13 = vcmp.eq.s32.totalorder %v5568_v49, %v2212_v10  ;;  %v999_v14 = vpop.f32.mrf.mxu0 }
 0x2ae   : > { %7835 = vst [vmem:[#allocation14_spill] sm:$0xff] %v6856_v18  ;;  %1755 = vmin.xlane.f32.xlu0 %v1754_v62  ;;  %v2440_v32 = vshra.s32 %v6867_v44, 16  ;;  %v6874_v58 = vadd.f32 %v1471_v21, %v1335_v51  ;;  %v7838_v2 = vmov 1.0   ;;  %vm2708_vm14 = vcmp.eq.s32.totalorder %v5611_v11, %v2212_v10 }
 0x2af   : > { %3550 = vst.msk [vmem:[%s6553_s20 + $0x40] sm:$0xff] %vm3541_vm10, %v2212_v10  ;;  %4358 = vmatmul.msk.f32.gmra.mxu0 %vm2705_vm11, %v7838_v2  ;;  %4390 = vmatmul.msk.f32.gmra.mxu1 %vm2706_vm12, %v7838_v2  ;;  %v2228_v27 = vpop.xlane.xlu1 %2227  ;;  %v6879_v8 = vpop.xlane.xlu0 %2343  ;;  %v7839_v48 = vand.u32 65535, %v6340_v1  ;;  %v2231_v24 = vshll.u32 %v2230_v6, 16  ;;  %v1757_v56 = vmin.f32 %v6854_v59, %v6856_v18  ;;  %v1991_v51 = vsel %vm1863_vm6, %v5568_v49, 512 }
 0x2b0   : > { %7836 = vst [vmem:[#allocation15_spill] sm:$0xff] %v6861_v16  ;;  %4422 = vmatmul.msk.f32.gmra.mxu2 %vm2707_vm13, %v7838_v2  ;;  %v2229_v5 = vcvt.f32.s32 %v2228_v27  ;;  %vm2345_vm15 = vcmp.eq.f32.partialorder %v6390_v55, %v6879_v8  ;;  %v6892_v10 = vcvt.s32.f32 %v2440_v32  ;;  %4454 = vmatmul.msk.f32.gmra.mxu3 %vm2708_vm14, %v7838_v2  ;;  %v600_v1 = vpop.xlane.xlu2 %599  ;;  %v1112_v6 = vpop.f32.mrf.mxu1  ;;  %v2454_v21 = vsel %vm2453_vm8, %v1989_v9, %v1990_v0 }
 0x2b1   : > { %3686 = vst [vmem:[%s5136_s19 + $0x380] sm:$0xff] %v6854_v59  ;;  %v2341_v43 = vcvt.s32.f32 %v7839_v48  ;;  %v1472_v48 = vadd.f32 %v5111_v46, %v600_v1  ;;  %v1473_v55 = vadd.f32 %v5113_v47, %v600_v1  ;;  %v1992_v32 = vsel %vm1864_vm7, %v5611_v11, 512  ;;  %v1338_v36 = vpop.f32.mrf.mxu3 }
 0x2b2   : > { %3687 = vst [vmem:[%s5136_s19 + $0x388] sm:$0xff] %v6856_v18  ;;  %v2232_v27 = vadd.s32 %v2231_v24, %v2229_v5  ;;  %2443 = vmin.xlane.f32.xlu1 %v6892_v10  ;;  %v1758_v18 = vmin.f32 %v1757_v56, %v6861_v16  ;;  %v1474_v59 = vadd.f32 %v5128_v52, %v600_v1  ;;  %v2359_v56 = vand.u32 65535, %v6405_v17 }
 0x2b3   : > { %7837 = vst [vmem:[#allocation13_spill] sm:$0xff] %v6874_v58  ;;  %v2346_v62 = vsel %vm2345_vm15, %v2341_v43, inf  ;;  %vm2455_vm1 = vcmp.lt.s32.totalorder %v2454_v21, %v1991_v51  ;;  %v1475_v9 = vadd.f32 %v5130_v53, %v600_v1  ;;  %v6908_v0 = vadd.f32 %v1472_v48, %v999_v14  ;;  %v4552_v48 = vld [vmem:[%s5136_s19 + $0x2d0] sm:$0xff] }
 0x2b4   : > { %3688 = vst [vmem:[%s5136_s19 + $0x390] sm:$0xff] %v6861_v16  ;;  %2347 = vmin.xlane.f32.xlu2 %v2346_v62  ;;  %v6910_v43 = vadd.f32 %v1473_v55, %v1112_v6  ;;  %v2456_v24 = vsel %vm2455_vm1, %v2454_v21, %v1991_v51  ;;  %vm2709_vm2 = vcmp.eq.s32.totalorder %v5548_v15, %v2232_v27  ;;  %v4550_v6 = vld [vmem:[%s5136_s19 + $0x2c0] sm:$0xff]  ;;  %v4551_v62 = vld [vmem:[%s5136_s19 + $0x2c8] sm:$0xff] }
 0x2b5   : > { %7840 = vst [vmem:[#allocation16_spill] sm:$0xff] %v6892_v10  ;;  %v1759_v31 = vmin.f32 %v1758_v18, %v6874_v58  ;;  %v6914_v5 = vadd.f32 %v1474_v59, %v1225_v23  ;;  %vm2457_vm4 = vcmp.lt.s32.totalorder %v2456_v24, %v1992_v32  ;;  %vm2710_vm5 = vcmp.eq.s32.totalorder %v5555_v50, %v2232_v27 }
 0x2b6   : > { %3689 = vst [vmem:[%s5136_s19 + $0x398] sm:$0xff] %v6874_v58  ;;  %v6919_v1 = vsel %vm2457_vm4, %v2456_v24, %v1992_v32  ;;  %vm2711_vm3 = vcmp.eq.s32.totalorder %v5568_v49, %v2232_v27  ;;  %vm2712_vm6 = vcmp.eq.s32.totalorder %v5611_v11, %v2232_v27  ;;  %v6927_v17 = vadd.f32 %v1475_v9, %v1338_v36  ;;  %v4553_v24 = vld [vmem:[%s5136_s19 + $0x2d8] sm:$0xff] }
 0x2b7   : > { %3551 = vst.msk [vmem:[%s6553_s20 + $0x48] sm:$0xff] %vm3541_vm10, %v2232_v27  ;;  %1760 = vmin.xlane.f32.xlu0 %v1759_v31  ;;  %v2460_v59 = vshra.s32 %v6919_v1, 16  ;;  %4359 = vmatmul.msk.f32.gmra.mxu0 %vm2709_vm2, %v7838_v2  ;;  %v6930_v18 = vpop.xlane.xlu1 %2363  ;;  %v1731_v14 = vpop.xlane.xlu0 %1730  ;;  %v1762_v51 = vmin.f32 %v6908_v0, %v6910_v43  ;;  %v2361_v9 = vcvt.s32.f32 %v2359_v56 }
 0x2b8   : > { %7841 = vst [vmem:[#allocation17_spill] sm:$0xff] %v6908_v0  ;;  %4391 = vmatmul.msk.f32.gmra.mxu1 %vm2710_vm5, %v7838_v2  ;;  %4423 = vmatmul.msk.f32.gmra.mxu2 %vm2711_vm3, %v7838_v2  ;;  %vm1865_vm7 = vcmp.eq.f32.partialorder %v4550_v6, %v1731_v14  ;;  %vm1866_vm8 = vcmp.eq.f32.partialorder %v4551_v62, %v1731_v14  ;;  %v4554_v6 = vld [vmem:[%s5136_s19 + $0x2e0] sm:$0xff]  ;;  %v4555_v62 = vld [vmem:[%s5136_s19 + $0x2e8] sm:$0xff] }
 0x2b9   : > { %7842 = vst [vmem:[#allocation18_spill] sm:$0xff] %v6910_v43  ;;  %v6940_v21 = vcvt.s32.f32 %v2460_v59  ;;  %4455 = vmatmul.msk.f32.gmra.mxu3 %vm2712_vm6, %v7838_v2  ;;  %vm1867_vm9 = vcmp.eq.f32.partialorder %v4552_v48, %v1731_v14  ;;  %v1993_v55 = vsel %vm1865_vm7, %v5548_v15, 512  ;;  %v1994_v23 = vsel %vm1866_vm8, %v5555_v50, 512 }
 0x2ba   : > { %7843 = vst [vmem:[#allocation19_spill] sm:$0xff] %v6914_v5  ;;  %v1763_v32 = vmin.f32 %v1762_v51, %v6914_v5  ;;  %vm1868_vm11 = vcmp.eq.f32.partialorder %v4553_v24, %v1731_v14  ;;  %vm2473_vm12 = vcmp.lt.s32.totalorder %v1993_v55, %v1994_v23  ;;  %vm2365_vm13 = vcmp.eq.f32.partialorder %v6443_v54, %v6930_v18  ;;  %v4556_v54 = vld [vmem:[%s5136_s19 + $0x2f0] sm:$0xff] }
 0x2bb   : > { %3690 = vst [vmem:[%s5136_s19 + $0x3a0] sm:$0xff] %v6908_v0  ;;  %2463 = vmin.xlane.f32.xlu1 %v6940_v21  ;;  %v1995_v27 = vsel %vm1867_vm9, %v5568_v49, 512  ;;  %v2366_v31 = vsel %vm2365_vm13, %v2361_v9, inf  ;;  %v2474_v59 = vsel %vm2473_vm12, %v1993_v55, %v1994_v23  ;;  %v1996_v56 = vsel %vm1868_vm11, %v5611_v11, 512  ;;  %v4557_v23 = vld [vmem:[%s5136_s19 + $0x2f8] sm:$0xff] }
 0x2bc   : > { %7844 = vst [vmem:[#allocation20_spill] sm:$0xff] %v6919_v1  ;;  %v1764_v36 = vmin.f32 %v1763_v32, %v6927_v17  ;;  %2367 = vmin.xlane.f32.xlu2 %v2366_v31  ;;  %vm2475_vm14 = vcmp.lt.s32.totalorder %v2474_v59, %v1995_v27 }
 0x2bd   : > { %3691 = vst [vmem:[%s5136_s19 + $0x3a8] sm:$0xff] %v6910_v43  ;;  %v2476_v51 = vsel %vm2475_vm14, %v2474_v59, %v1995_v27 }
 0x2be   : > { %7845 = vst [vmem:[#allocation22_spill] sm:$0xff] %v6927_v17  ;;  %vm2477_vm15 = vcmp.lt.s32.totalorder %v2476_v51, %v1996_v56 }
 0x2bf   : > { %7846 = vst [vmem:[#allocation23_spill] sm:$0xff] %v6930_v18  ;;  %1765 = vmin.xlane.f32.xlu0 %v1764_v36  ;;  %v1736_v14 = vpop.xlane.xlu1 %1735  ;;  %v6963_v55 = vsel %vm2477_vm15, %v2476_v51, %v1996_v56 }
 0x2c0   : > { %3692 = vst [vmem:[%s5136_s19 + $0x3b0] sm:$0xff] %v6914_v5  ;;  %vm1869_vm1 = vcmp.eq.f32.partialorder %v4554_v6, %v1736_v14  ;;  %vm1870_vm2 = vcmp.eq.f32.partialorder %v4555_v62, %v1736_v14  ;;  %vm1871_vm4 = vcmp.eq.f32.partialorder %v4556_v54, %v1736_v14  ;;  %vm1872_vm5 = vcmp.eq.f32.partialorder %v4557_v23, %v1736_v14  ;;  %v1002_v14 = vpop.f32.mrf.mxu0  ;;  %v1115_v62 = vpop.f32.mrf.mxu1 }
 0x2c1   : > { %7847 = vst [vmem:[#allocation21_spill] sm:$0xff] %v6940_v21  ;;  %v1997_v48 = vsel %vm1869_vm1, %v5548_v15, 512  ;;  %v1998_v32 = vsel %vm1870_vm2, %v5555_v50, 512  ;;  %v2480_v9 = vshra.s32 %v6963_v55, 16  ;;  %v1999_v24 = vsel %vm1871_vm4, %v5568_v49, 512  ;;  %v1228_v54 = vpop.f32.mrf.mxu2  ;;  %v4558_v21 = vld [vmem:[%s4910_s15] sm:$0xff] }
 0x2c2   : > { %3693 = vst [vmem:[%s5136_s19 + $0x3b8] sm:$0xff] %v6927_v17  ;;  %vm2493_vm3 = vcmp.lt.s32.totalorder %v1997_v48, %v1998_v32  ;;  %v2000_v31 = vsel %vm1872_vm5, %v5611_v11, 512 }
 0x2c3   : > { %7848 = vst [vmem:[#allocation24_spill] sm:$0xff] %v6963_v55  ;;  %v2494_v27 = vsel %vm2493_vm3, %v1997_v48, %v1998_v32  ;;  %v6968_v36 = vcvt.s32.f32 %v2480_v9  ;;  %v6978_v48 = vpop.f32.mrf.mxu3  ;;  %v2250_v9 = vcvt.f32.s32 %v6567_v63  ;;  %v2270_v63 = vcvt.f32.s32 %v6585_v40 }
 0x2c4   : > { %vm2495_vm6 = vcmp.lt.s32.totalorder %v2494_v27, %v1999_v24 }
 0x2c5   : > { %7849 = vst [vmem:[#allocation26_spill] sm:$0xff] %v6968_v36  ;;  %v2496_v59 = vsel %vm2495_vm6, %v2494_v27, %v1999_v24  ;;  %2483 = vmin.xlane.f32.xlu1 %v6968_v36  ;;  %v2251_v27 = vshll.u32 %v2250_v9, 16 }
 0x2c6   : > { %vm2497_vm7 = vcmp.lt.s32.totalorder %v2496_v59, %v2000_v31 }
 0x2c7   : > { %v6972_v6 = vsel %vm2497_vm7, %v2496_v59, %v2000_v31 }
 0x2c8   : > { %7850 = vst [vmem:[#allocation27_spill] sm:$0xff] %v6972_v6  ;;  %v2500_v56 = vshra.s32 %v6972_v6, 16  ;;  %v6980_v32 = vpop.f32.mrf.mxu0  ;;  %v6982_v23 = vpop.f32.mrf.mxu1 }
 0x2ca   : > { %v6975_v51 = vcvt.s32.f32 %v2500_v56 }
 0x2cb   : > { %v6985_v59 = vpop.f32.mrf.mxu2  ;;  %v6987_v56 = vpop.f32.mrf.mxu3 }
 0x2cc   : > { %7851 = vst [vmem:[#allocation25_spill] sm:$0xff] %v6975_v51 }
 0x2cd   : > { %2503 = vmin.xlane.f32.xlu1 %v6975_v51 }
 0x2e4   : > { %v2248_v24 = vpop.xlane.xlu2 %2247 }
 0x2e5   : > { %v2249_v31 = vcvt.f32.s32 %v2248_v24  ;;  %v2271_v24 = vshll.u32 %v2270_v63, 16 }
 0x2e7   : > { %v2252_v6 = vadd.s32 %v2251_v27, %v2249_v31 }
 0x2e9   : > { %3552 = vst.msk [vmem:[%s6553_s20 + $0x50] sm:$0xff] %vm3541_vm10, %v2252_v6  ;;  %v3074_v51 = vpop.f32.mrf.mxu0  ;;  %v3187_v36 = vpop.f32.mrf.mxu1  ;;  %vm2713_vm8 = vcmp.eq.s32.totalorder %v5548_v15, %v2252_v6  ;;  %vm2714_vm9 = vcmp.eq.s32.totalorder %v5555_v50, %v2252_v6  ;;  %vm2715_vm11 = vcmp.eq.s32.totalorder %v5568_v49, %v2252_v6  ;;  %vm2716_vm12 = vcmp.eq.s32.totalorder %v5611_v11, %v2252_v6 }
 0x2ea   : > { %4360 = vmatmul.msk.f32.gmra.mxu0 %vm2713_vm8, %v7838_v2  ;;  %4392 = vmatmul.msk.f32.gmra.mxu1 %vm2714_vm9, %v7838_v2  ;;  %v3188_v27 = vadd.f32 %v3187_v36, %v3074_v51 }
 0x2eb   : > { %4424 = vmatmul.msk.f32.gmra.mxu2 %vm2715_vm11, %v7838_v2  ;;  %4456 = vmatmul.msk.f32.gmra.mxu3 %vm2716_vm12, %v7838_v2 }
 0x2ed   : > { %v2268_v9 = vpop.xlane.xlu0 %2267 }
 0x2ee   : > { %v2269_v31 = vcvt.f32.s32 %v2268_v9 }
 0x2f0   : > { %v3300_v17 = vpop.f32.mrf.mxu2  ;;  %v3413_v5 = vpop.f32.mrf.mxu3  ;;  %v2272_v55 = vadd.s32 %v2271_v24, %v2269_v31 }
 0x2f1   : > { %v3301_v43 = vadd.f32 %v3300_v17, %v3188_v27 }
 0x2f2   : > { %3553 = vst.msk [vmem:[%s6553_s20 + $0x58] sm:$0xff] %vm3541_vm10, %v2272_v55  ;;  %v3077_v6 = vpop.f32.mrf.mxu0  ;;  %v3190_v0 = vpop.f32.mrf.mxu1  ;;  %vm2717_vm13 = vcmp.eq.s32.totalorder %v5548_v15, %v2272_v55  ;;  %vm2718_vm14 = vcmp.eq.s32.totalorder %v5555_v50, %v2272_v55  ;;  %vm2719_vm15 = vcmp.eq.s32.totalorder %v5568_v49, %v2272_v55  ;;  %vm2720_vm1 = vcmp.eq.s32.totalorder %v5611_v11, %v2272_v55 }
 0x2f3   : > { %v3414_v40 = vadd.f32 %v3413_v5, %v3301_v43  ;;  %4361 = vmatmul.msk.f32.gmra.mxu0 %vm2717_vm13, %v7838_v2  ;;  %4393 = vmatmul.msk.f32.gmra.mxu1 %vm2718_vm14, %v7838_v2  ;;  %v2379_v5 = vand.u32 65535, %v6622_v57  ;;  %v2290_v55 = vcvt.f32.s32 %v6652_v26  ;;  %v3191_v9 = vadd.f32 %v3190_v0, %v3077_v6 }
 0x2f4   : > { %4425 = vmatmul.msk.f32.gmra.mxu2 %vm2719_vm15, %v7838_v2  ;;  %4457 = vmatmul.msk.f32.gmra.mxu3 %vm2720_vm1, %v7838_v2 }
 0x2f5   : > { %3509 = vst.msk [vmem:[%s7004_s29] sm:$0xff] %vm510_vm0, %v3414_v40  ;;  %v603_v43 = vpop.xlane.xlu0 %602  ;;  %v3702_v16 = vsub.f32 %v3414_v40, %v4558_v21 }
 0x2f6   : > { %v1476_v17 = vadd.f32 %v5111_v46, %v603_v43  ;;  %v1477_v36 = vadd.f32 %v5113_v47, %v603_v43  ;;  %v1478_v51 = vadd.f32 %v5128_v52, %v603_v43  ;;  %v1479_v63 = vadd.f32 %v5130_v53, %v603_v43 }
 0x2f7   : > { %v2381_v43 = vcvt.s32.f32 %v2379_v5  ;;  %v3734_v5 = vmul.f32 %v3702_v16, %v3702_v16  ;;  %v2310_v16 = vcvt.f32.s32 %v6705_v42 }
 0x2f8   : > { %v7024_v24 = vadd.f32 %v1476_v17, %v1002_v14  ;;  %v7026_v27 = vadd.f32 %v1477_v36, %v1115_v62  ;;  %v7028_v31 = vadd.f32 %v1478_v51, %v1228_v54  ;;  %v7038_v14 = vadd.f32 %v1479_v63, %v6978_v48  ;;  %v4559_v48 = vld [vmem:[%s4910_s15 + $0x8] sm:$0xff] }
 0x2f9   : > { %v3303_v57 = vpop.f32.mrf.mxu2  ;;  %v3416_v58 = vpop.f32.mrf.mxu3  ;;  %v2291_v62 = vshll.u32 %v2290_v55, 16 }
 0x2fa   : > { %v3304_v1 = vadd.f32 %v3303_v57, %v3191_v9  ;;  %v3080_v10 = vpop.f32.mrf.mxu0  ;;  %3694 = vst [vmem:[%s5136_s19 + $0x3c0] sm:$0xff] %v7024_v24  ;;  %v3193_v26 = vpop.f32.mrf.mxu1  ;;  %v1767_v21 = vmin.f32 %v7024_v24, %v7026_v27 }
 0x2fb   : > { %v7031_v18 = vpop.xlane.xlu2 %2383  ;;  %3695 = vst [vmem:[%s5136_s19 + $0x3c8] sm:$0xff] %v7026_v27  ;;  %v3194_v51 = vadd.f32 %v3193_v26, %v3080_v10 }
 0x2fc   : > { %vm2385_vm2 = vcmp.eq.f32.partialorder %v6648_v4, %v7031_v18  ;;  %v3417_v54 = vadd.f32 %v3416_v58, %v3304_v1  ;;  %3696 = vst [vmem:[%s5136_s19 + $0x3d0] sm:$0xff] %v7028_v31  ;;  %v1768_v4 = vmin.f32 %v1767_v21, %v7028_v31  ;;  %v2399_v58 = vand.u32 65535, %v6674_v20 }
 0x2fd   : > { %v2288_v0 = vpop.xlane.xlu1 %2287  ;;  %v2386_v40 = vsel %vm2385_vm2, %v2381_v43, inf  ;;  %3697 = vst [vmem:[%s5136_s19 + $0x3d8] sm:$0xff] %v7038_v14  ;;  %v3766_v20 = vsel %vm510_vm0, %v3734_v5, 0.0 }
 0x2fe   : > { %v2289_v6 = vcvt.f32.s32 %v2288_v0  ;;  %2387 = vmin.xlane.f32.xlu2 %v2386_v40  ;;  %3510 = vst.msk [vmem:[%s7004_s29 + $0x8] sm:$0xff] %vm510_vm0, %v3417_v54  ;;  %v3703_v17 = vsub.f32 %v3417_v54, %v4559_v48  ;;  %v1769_v63 = vmin.f32 %v1768_v4, %v7038_v14  ;;  %v2401_v40 = vcvt.s32.f32 %v2399_v58 }
 0x300   : > { %v2292_v36 = vadd.s32 %v2291_v62, %v2289_v6  ;;  %v3735_v1 = vmul.f32 %v3703_v17, %v3703_v17  ;;  %1770 = vmin.xlane.f32.xlu0 %v1769_v63 }
 0x301   : > { %v3306_v10 = vpop.f32.mrf.mxu2  ;;  %v3419_v26 = vpop.f32.mrf.mxu3 }
 0x302   : > { %3554 = vst.msk [vmem:[%s6553_s20 + $0x60] sm:$0xff] %vm3541_vm10, %v2292_v36  ;;  %vm2721_vm4 = vcmp.eq.s32.totalorder %v5548_v15, %v2292_v36  ;;  %vm2722_vm5 = vcmp.eq.s32.totalorder %v5555_v50, %v2292_v36  ;;  %vm2723_vm3 = vcmp.eq.s32.totalorder %v5568_v49, %v2292_v36  ;;  %v7060_v55 = vpop.xlane.xlu0 %2403  ;;  %vm2724_vm6 = vcmp.eq.s32.totalorder %v5611_v11, %v2292_v36  ;;  %v3083_v0 = vpop.f32.mrf.mxu0  ;;  %v4560_v36 = vld [vmem:[%s4910_s15 + $0x10] sm:$0xff] }
 0x303   : > { %4362 = vmatmul.msk.f32.gmra.mxu0 %vm2721_vm4, %v7838_v2  ;;  %v3767_v9 = vsel %vm510_vm0, %v3735_v1, 0.0  ;;  %v1741_v57 = vpop.xlane.xlu2 %1740  ;;  %v3307_v43 = vadd.f32 %v3306_v10, %v3194_v51  ;;  %4394 = vmatmul.msk.f32.gmra.mxu1 %vm2722_vm5, %v7838_v2  ;;  %v3196_v21 = vpop.f32.mrf.mxu1  ;;  %vm2405_vm9 = vcmp.eq.f32.partialorder %v6693_v12, %v7060_v55 }
 0x304   : > { %4426 = vmatmul.msk.f32.gmra.mxu2 %vm2723_vm3, %v7838_v2  ;;  %v3768_v42 = vadd.f32 %v3767_v9, %v3766_v20  ;;  %vm1873_vm7 = vcmp.eq.f32.partialorder %v6630_v38, %v1741_v57  ;;  %vm1874_vm8 = vcmp.eq.f32.partialorder %v6632_v45, %v1741_v57  ;;  %4458 = vmatmul.msk.f32.gmra.mxu3 %vm2724_vm6, %v7838_v2  ;;  %v2311_v38 = vshll.u32 %v2310_v16, 16 }
 0x305   : > { %vm1875_vm11 = vcmp.eq.f32.partialorder %v6634_v34, %v1741_v57  ;;  %v2001_v62 = vsel %vm1873_vm7, %v5548_v15, 512  ;;  %v2002_v54 = vsel %vm1874_vm8, %v5555_v50, 512  ;;  %v606_v6 = vpop.xlane.xlu1 %605  ;;  %v2330_v45 = vcvt.f32.s32 %v6756_v22 }
 0x306   : > { %vm2513_vm12 = vcmp.lt.s32.totalorder %v2001_v62, %v2002_v54  ;;  %v3420_v4 = vadd.f32 %v3419_v26, %v3307_v43  ;;  %v2406_v5 = vsel %vm2405_vm9, %v2401_v40, inf  ;;  %v1480_v12 = vadd.f32 %v5111_v46, %v606_v6 }
 0x307   : > { %v1481_v48 = vadd.f32 %v5113_v47, %v606_v6  ;;  %v1482_v17 = vadd.f32 %v5128_v52, %v606_v6  ;;  %v2003_v34 = vsel %vm1875_vm11, %v5568_v49, 512  ;;  %2407 = vmin.xlane.f32.xlu2 %v2406_v5  ;;  %v1483_v63 = vadd.f32 %v5130_v53, %v606_v6 }
 0x308   : > { %3511 = vst.msk [vmem:[%s7004_s29 + $0x10] sm:$0xff] %vm510_vm0, %v3420_v4  ;;  %v3704_v51 = vsub.f32 %v3420_v4, %v4560_v36  ;;  %v2514_v22 = vsel %vm2513_vm12, %v2001_v62, %v2002_v54  ;;  %v7086_v58 = vadd.f32 %v1480_v12, %v6980_v32  ;;  %vm1876_vm14 = vcmp.eq.f32.partialorder %v6636_v13, %v1741_v57  ;;  %v4561_v57 = vld [vmem:[%s4910_s15 + $0x18] sm:$0xff] }
 0x309   : > { %v7089_v46 = vadd.f32 %v1481_v48, %v6982_v23  ;;  %v7092_v47 = vadd.f32 %v1482_v17, %v6985_v59  ;;  %vm2515_vm13 = vcmp.lt.s32.totalorder %v2514_v22, %v2003_v34  ;;  %v3309_v16 = vpop.f32.mrf.mxu2  ;;  %v7098_v53 = vadd.f32 %v1483_v63, %v6987_v56 }
 0x30a   : > { %v3736_v52 = vmul.f32 %v3704_v51, %v3704_v51  ;;  %v7095_v1 = vpop.xlane.xlu0 %1745  ;;  %v2419_v32 = vand.u32 65535, %v6801_v28  ;;  %v3197_v10 = vadd.f32 %v3196_v21, %v3083_v0  ;;  %3698 = vst [vmem:[%s5136_s19 + $0x3e0] sm:$0xff] %v7086_v58  ;;  %v3422_v59 = vpop.f32.mrf.mxu3  ;;  %v2516_v20 = vsel %vm2515_vm13, %v2514_v22, %v2003_v34 }
 0x30b   : > { %v2308_v23 = vpop.xlane.xlu2 %2307  ;;  %vm1877_vm15 = vcmp.eq.f32.partialorder %v6670_v61, %v7095_v1  ;;  %vm1878_vm1 = vcmp.eq.f32.partialorder %v6672_v33, %v7095_v1  ;;  %3699 = vst [vmem:[%s5136_s19 + $0x3e8] sm:$0xff] %v7089_v46  ;;  %v3086_v26 = vpop.f32.mrf.mxu0  ;;  %v2331_v21 = vshll.u32 %v2330_v45, 16  ;;  %v2004_v62 = vsel %vm1876_vm14, %v5611_v11, 512 }
 0x30c   : > { %v3769_v9 = vsel %vm510_vm0, %v3736_v52, 0.0  ;;  %v2309_v56 = vcvt.f32.s32 %v2308_v23  ;;  %v2005_v28 = vsel %vm1877_vm15, %v5548_v15, 512  ;;  %v2006_v43 = vsel %vm1878_vm1, %v5555_v50, 512  ;;  %v3199_v0 = vpop.f32.mrf.mxu1  ;;  %3700 = vst [vmem:[%s5136_s19 + $0x3f0] sm:$0xff] %v7092_v47 }
 0x30d   : > { %v3770_v61 = vadd.f32 %v3769_v9, %v3768_v42  ;;  %v3310_v33 = vadd.f32 %v3309_v16, %v3197_v10  ;;  %vm2533_vm2 = vcmp.lt.s32.totalorder %v2005_v28, %v2006_v43  ;;  %vm2517_vm4 = vcmp.lt.s32.totalorder %v2516_v20, %v2004_v62  ;;  %3701 = vst [vmem:[%s5136_s19 + $0x3f8] sm:$0xff] %v7098_v53 }
 0x30e   : > { %v2312_v54 = vadd.s32 %v2311_v38, %v2309_v56  ;;  %v1772_v40 = vmin.f32 %v7086_v58, %v7089_v46  ;;  %vm1879_vm5 = vcmp.eq.f32.partialorder %v6685_v41, %v7095_v1  ;;  %v7123_v6 = vsel %vm2517_vm4, %v2516_v20, %v2004_v62 }
 0x30f   : > { %v3423_v42 = vadd.f32 %v3422_v59, %v3310_v33  ;;  %v7125_v45 = vcvt.s32.f32 %v2419_v32  ;;  %v2520_v13 = vshra.s32 %v7123_v6, 16  ;;  %v2534_v4 = vsel %vm2533_vm2, %v2005_v28, %v2006_v43 }
 0x310   : > { %3555 = vst.msk [vmem:[%s6553_s20 + $0x68] sm:$0xff] %vm3541_vm10, %v2312_v54  ;;  %vm2725_vm3 = vcmp.eq.s32.totalorder %v5548_v15, %v2312_v54  ;;  %vm2726_vm6 = vcmp.eq.s32.totalorder %v5555_v50, %v2312_v54  ;;  %vm2727_vm7 = vcmp.eq.s32.totalorder %v5568_v49, %v2312_v54  ;;  %vm2728_vm8 = vcmp.eq.s32.totalorder %v5611_v11, %v2312_v54 }
 0x311   : > { %3512 = vst.msk [vmem:[%s7004_s29 + $0x18] sm:$0xff] %vm510_vm0, %v3423_v42  ;;  %v3705_v38 = vsub.f32 %v3423_v42, %v4561_v57  ;;  %4363 = vmatmul.msk.f32.gmra.mxu0 %vm2725_vm3, %v7838_v2  ;;  %4395 = vmatmul.msk.f32.gmra.mxu1 %vm2726_vm6, %v7838_v2  ;;  %vm1880_vm9 = vcmp.eq.f32.partialorder %v6703_v29, %v7095_v1  ;;  %v2007_v5 = vsel %vm1879_vm5, %v5568_v49, 512  ;;  %v7146_v12 = vcvt.s32.f32 %v2520_v13 }
 0x312   : > { %4427 = vmatmul.msk.f32.gmra.mxu2 %vm2727_vm7, %v7838_v2  ;;  %4459 = vmatmul.msk.f32.gmra.mxu3 %vm2728_vm8, %v7838_v2  ;;  %v1751_v48 = vpop.xlane.xlu0 %1750  ;;  %v3312_v17 = vpop.f32.mrf.mxu2  ;;  %v1773_v34 = vmin.f32 %v1772_v40, %v7092_v47  ;;  %v3200_v51 = vadd.f32 %v3199_v0, %v3086_v26  ;;  %vm2535_vm13 = vcmp.lt.s32.totalorder %v2534_v4, %v2007_v5  ;;  %v2008_v9 = vsel %vm1880_vm9, %v5611_v11, 512  ;;  %v4562_v0 = vld [vmem:[%s4910_s15 + $0x20] sm:$0xff] }
 0x313   : > { %v3737_v36 = vmul.f32 %v3705_v38, %v3705_v38  ;;  %v2328_v63 = vpop.xlane.xlu2 %2327  ;;  %vm1881_vm11 = vcmp.eq.f32.partialorder %v6722_v30, %v1751_v48  ;;  %vm1882_vm12 = vcmp.eq.f32.partialorder %v6724_v25, %v1751_v48  ;;  %v3425_v22 = vpop.f32.mrf.mxu3  ;;  %2523 = vmin.xlane.f32.xlu1 %v7146_v12  ;;  %vm1883_vm14 = vcmp.eq.f32.partialorder %v6733_v7, %v1751_v48 }
 0x314   : > { %v2329_v41 = vcvt.f32.s32 %v2328_v63  ;;  %v2009_v52 = vsel %vm1881_vm11, %v5548_v15, 512  ;;  %v2010_v16 = vsel %vm1882_vm12, %v5555_v50, 512  ;;  %v3089_v32 = vpop.f32.mrf.mxu0  ;;  %v3202_v10 = vpop.f32.mrf.mxu1  ;;  %v3313_v30 = vadd.f32 %v3312_v17, %v3200_v51 }
 0x315   : > { %v3771_v23 = vsel %vm510_vm0, %v3737_v36, 0.0  ;;  %vm2553_vm15 = vcmp.lt.s32.totalorder %v2009_v52, %v2010_v16  ;;  %v1774_v20 = vmin.f32 %v1773_v34, %v7098_v53  ;;  %v3203_v28 = vadd.f32 %v3202_v10, %v3089_v32 }
 0x316   : > { %v3772_v25 = vadd.f32 %v3771_v23, %v3770_v61  ;;  %v2332_v59 = vadd.s32 %v2331_v21, %v2329_v41  ;;  %v3426_v56 = vadd.f32 %v3425_v22, %v3313_v30  ;;  %v2536_v43 = vsel %vm2535_vm13, %v2534_v4, %v2007_v5 }
 0x317   : > { %v2554_v26 = vsel %vm2553_vm15, %v2009_v52, %v2010_v16  ;;  %v2011_v7 = vsel %vm1883_vm14, %v5568_v49, 512  ;;  %1775 = vmin.xlane.f32.xlu0 %v1774_v20  ;;  %vm2537_vm1 = vcmp.lt.s32.totalorder %v2536_v43, %v2008_v9  ;;  %vm1884_vm3 = vcmp.eq.f32.partialorder %v6740_v37, %v1751_v48 }
 0x318   : > { %3556 = vst.msk [vmem:[%s6553_s20 + $0x70] sm:$0xff] %vm3541_vm10, %v2332_v59  ;;  %vm2729_vm2 = vcmp.eq.s32.totalorder %v5548_v15, %v2332_v59  ;;  %vm2730_vm4 = vcmp.eq.s32.totalorder %v5555_v50, %v2332_v59  ;;  %v3706_v21 = vsub.f32 %v3426_v56, %v4562_v0  ;;  %v7171_v29 = vsel %vm2537_vm1, %v2536_v43, %v2008_v9 }
 0x319   : > { %3513 = vst.msk [vmem:[%s7004_s29 + $0x20] sm:$0xff] %vm510_vm0, %v3426_v56  ;;  %4364 = vmatmul.msk.f32.gmra.mxu0 %vm2729_vm2, %v7838_v2  ;;  %4396 = vmatmul.msk.f32.gmra.mxu1 %vm2730_vm4, %v7838_v2  ;;  %vm2731_vm5 = vcmp.eq.s32.totalorder %v5568_v49, %v2332_v59  ;;  %v2540_v1 = vshra.s32 %v7171_v29, 16  ;;  %vm2732_vm6 = vcmp.eq.s32.totalorder %v5611_v11, %v2332_v59  ;;  %v2012_v34 = vsel %vm1884_vm3, %v5611_v11, 512 }
 0x31a   : > { %4428 = vmatmul.msk.f32.gmra.mxu2 %vm2731_vm5, %v7838_v2  ;;  %v7180_v61 = vpop.xlane.xlu1 %2423  ;;  %v3315_v33 = vpop.f32.mrf.mxu2  ;;  %vm2555_vm7 = vcmp.lt.s32.totalorder %v2554_v26, %v2011_v7  ;;  %v3738_v62 = vmul.f32 %v3706_v21, %v3706_v21  ;;  %4460 = vmatmul.msk.f32.gmra.mxu3 %vm2732_vm6, %v7838_v2  ;;  %v2439_v16 = vand.u32 65535, %v6867_v44 }
 0x31b   : > { %v3316_v54 = vadd.f32 %v3315_v33, %v3203_v28  ;;  %v3428_v40 = vpop.f32.mrf.mxu3  ;;  %vm2425_vm8 = vcmp.eq.f32.partialorder %v6818_v19, %v7180_v61  ;;  %v7185_v42 = vcvt.s32.f32 %v2540_v1  ;;  %v2556_v4 = vsel %vm2555_vm7, %v2554_v26, %v2011_v7  ;;  %v4563_v19 = vld [vmem:[%s4910_s15 + $0x28] sm:$0xff]  ;;  %v7852_v26 = vld [vmem:[#allocation16_spill] sm:$0xff]  ;;  %v4564_v1 = vld [vmem:[%s4910_s15 + $0x30] sm:$0xff] }
 0x31c   : > { %v3092_v13 = vpop.f32.mrf.mxu0  ;;  %v3205_v57 = vpop.f32.mrf.mxu1  ;;  %v2426_v38 = vsel %vm2425_vm8, %v7125_v45, inf  ;;  %v3773_v5 = vsel %vm510_vm0, %v3738_v62, 0.0  ;;  %vm2557_vm9 = vcmp.lt.s32.totalorder %v2556_v4, %v2012_v34  ;;  %v2350_v45 = vcvt.f32.s32 %v6879_v8 }
 0x31d   : > { %v3429_v17 = vadd.f32 %v3428_v40, %v3316_v54  ;;  %2427 = vmin.xlane.f32.xlu2 %v2426_v38  ;;  %v3774_v36 = vadd.f32 %v3773_v5, %v3772_v25  ;;  %2543 = vmin.xlane.f32.xlu1 %v7185_v42  ;;  %v7196_v63 = vsel %vm2557_vm9, %v2556_v4, %v2012_v34  ;;  %v2441_v28 = vcvt.s32.f32 %v2439_v16  ;;  %v7853_v38 = vld [vmem:[#allocation20_spill] sm:$0xff] }
 0x31e   : > { %v3206_v22 = vadd.f32 %v3205_v57, %v3092_v13  ;;  %v2560_v41 = vshra.s32 %v7196_v63, 16  ;;  %v2351_v20 = vshll.u32 %v2350_v45, 16  ;;  %v2459_v4 = vand.u32 65535, %v7853_v38 }
 0x31f   : > { %3514 = vst.msk [vmem:[%s7004_s29 + $0x28] sm:$0xff] %vm510_vm0, %v3429_v17  ;;  %v3707_v51 = vsub.f32 %v3429_v17, %v4563_v19  ;;  %v7856_v19 = vld [vmem:[#allocation14_spill] sm:$0xff] }
 0x320   : > { %v7204_v48 = vcvt.s32.f32 %v2560_v41 }
 0x321   : > { %v1756_v52 = vpop.xlane.xlu0 %1755  ;;  %v3739_v37 = vmul.f32 %v3707_v51, %v3707_v51 }
 0x322   : > { %vm1885_vm11 = vcmp.eq.f32.partialorder %v6804_v3, %v1756_v52  ;;  %vm1886_vm12 = vcmp.eq.f32.partialorder %v6806_v35, %v1756_v52  ;;  %vm1887_vm13 = vcmp.eq.f32.partialorder %v6812_v39, %v1756_v52  ;;  %v3318_v8 = vpop.f32.mrf.mxu2  ;;  %vm1888_vm14 = vcmp.eq.f32.partialorder %v6814_v60, %v1756_v52  ;;  %2563 = vmin.xlane.f32.xlu0 %v7204_v48  ;;  %v7854_v60 = vld [vmem:[#allocation23_spill] sm:$0xff] }
 0x323   : > { %v2013_v32 = vsel %vm1885_vm11, %v5548_v15, 512  ;;  %v2014_v10 = vsel %vm1886_vm12, %v5555_v50, 512  ;;  %v3775_v23 = vsel %vm510_vm0, %v3739_v37, 0.0  ;;  %v3319_v44 = vadd.f32 %v3318_v8, %v3206_v22  ;;  %v3431_v30 = vpop.f32.mrf.mxu3  ;;  %v7857_v22 = vld [vmem:[#allocation15_spill] sm:$0xff] }
 0x324   : > { %vm2573_vm15 = vcmp.lt.s32.totalorder %v2013_v32, %v2014_v10  ;;  %v3776_v25 = vadd.f32 %v3775_v23, %v3774_v36  ;;  %v2015_v3 = vsel %vm1887_vm13, %v5568_v49, 512  ;;  %v3095_v35 = vpop.f32.mrf.mxu0  ;;  %v3208_v39 = vpop.f32.mrf.mxu1  ;;  %v2016_v0 = vsel %vm1888_vm14, %v5611_v11, 512  ;;  %v7855_v36 = vld [vmem:[#allocation12_spill] sm:$0xff] }
 0x325   : > { %v2574_v59 = vsel %vm2573_vm15, %v2013_v32, %v2014_v10  ;;  %v7212_v9 = vpop.xlane.xlu1 %2443  ;;  %v3432_v56 = vadd.f32 %v3431_v30, %v3319_v44  ;;  %v2370_v17 = vcvt.f32.s32 %v7854_v60  ;;  %v3209_v34 = vadd.f32 %v3208_v39, %v3095_v35  ;;  %v7859_v35 = vld [vmem:[#allocation13_spill] sm:$0xff] }
 0x326   : > { %vm2575_vm1 = vcmp.lt.s32.totalorder %v2574_v59, %v2015_v3  ;;  %vm2445_vm2 = vcmp.eq.f32.partialorder %v7852_v26, %v7212_v9  ;;  %v2461_v30 = vcvt.s32.f32 %v2459_v4 }
 0x327   : > { %v2348_v43 = vpop.xlane.xlu2 %2347  ;;  %v2576_v21 = vsel %vm2575_vm1, %v2574_v59, %v2015_v3  ;;  %3515 = vst.msk [vmem:[%s7004_s29 + $0x30] sm:$0xff] %vm510_vm0, %v3432_v56  ;;  %v3708_v33 = vsub.f32 %v3432_v56, %v4564_v1  ;;  %v2446_v62 = vsel %vm2445_vm2, %v2441_v28, inf  ;;  %v2371_v28 = vshll.u32 %v2370_v17, 16 }
 0x328   : > { %v2349_v7 = vcvt.f32.s32 %v2348_v43  ;;  %vm2577_vm4 = vcmp.lt.s32.totalorder %v2576_v21, %v2016_v0  ;;  %2447 = vmin.xlane.f32.xlu2 %v2446_v62  ;;  %v4565_v43 = vld [vmem:[%s4910_s15 + $0x38] sm:$0xff] }
 0x329   : > { %v7222_v40 = vsel %vm2577_vm4, %v2576_v21, %v2016_v0  ;;  %v3740_v13 = vmul.f32 %v3708_v33, %v3708_v33 }
 0x32a   : > { %v2352_v54 = vadd.s32 %v2351_v20, %v2349_v7  ;;  %v1761_v57 = vpop.xlane.xlu0 %1760  ;;  %v2580_v5 = vshra.s32 %v7222_v40, 16  ;;  %v3321_v51 = vpop.f32.mrf.mxu2 }
 0x32b   : > { %vm1889_vm5 = vcmp.eq.f32.partialorder %v7855_v36, %v1761_v57  ;;  %vm1890_vm3 = vcmp.eq.f32.partialorder %v7856_v19, %v1761_v57  ;;  %v3777_v45 = vsel %vm510_vm0, %v3740_v13, 0.0  ;;  %vm1891_vm6 = vcmp.eq.f32.partialorder %v7857_v22, %v1761_v57  ;;  %v3434_v16 = vpop.f32.mrf.mxu3  ;;  %v7861_v13 = vld [vmem:[#allocation18_spill] sm:$0xff] }
 0x32c   : > { %3557 = vst.msk [vmem:[%s6553_s20 + $0x78] sm:$0xff] %vm3541_vm10, %v2352_v54  ;;  %v2017_v41 = vsel %vm1889_vm5, %v5548_v15, 512  ;;  %v2018_v52 = vsel %vm1890_vm3, %v5555_v50, 512  ;;  %v3778_v37 = vadd.f32 %v3777_v45, %v3776_v25  ;;  %v3322_v32 = vadd.f32 %v3321_v51, %v3209_v34  ;;  %v3098_v10 = vpop.f32.mrf.mxu0  ;;  %v3211_v8 = vpop.f32.mrf.mxu1  ;;  %v7858_v25 = vld [vmem:[#allocation21_spill] sm:$0xff]  ;;  %v7862_v34 = vld [vmem:[#allocation24_spill] sm:$0xff]  ;;  %v7863_v51 = vld [vmem:[#allocation19_spill] sm:$0xff] }
 0x32d   : > { %vm2593_vm7 = vcmp.lt.s32.totalorder %v2017_v41, %v2018_v52  ;;  %v7235_v23 = vcvt.s32.f32 %v2580_v5  ;;  %vm2733_vm8 = vcmp.eq.s32.totalorder %v5548_v15, %v2352_v54  ;;  %vm2734_vm9 = vcmp.eq.s32.totalorder %v5555_v50, %v2352_v54 }
 0x32e   : > { %v7237_v44 = vpop.xlane.xlu1 %2463  ;;  %vm2735_vm11 = vcmp.eq.s32.totalorder %v5568_v49, %v2352_v54  ;;  %v3435_v3 = vadd.f32 %v3434_v16, %v3322_v32  ;;  %4365 = vmatmul.msk.f32.gmra.mxu0 %vm2733_vm8, %v7838_v2  ;;  %4397 = vmatmul.msk.f32.gmra.mxu1 %vm2734_vm9, %v7838_v2  ;;  %vm2736_vm13 = vcmp.eq.s32.totalorder %v5611_v11, %v2352_v54  ;;  %v2019_v39 = vsel %vm1891_vm6, %v5568_v49, 512  ;;  %v7860_v54 = vld [vmem:[#allocation17_spill] sm:$0xff] }
 0x32f   : > { %vm2465_vm12 = vcmp.eq.f32.partialorder %v7858_v25, %v7237_v44  ;;  %vm1892_vm14 = vcmp.eq.f32.partialorder %v7859_v35, %v1761_v57  ;;  %4429 = vmatmul.msk.f32.gmra.mxu2 %vm2735_vm11, %v7838_v2  ;;  %4461 = vmatmul.msk.f32.gmra.mxu3 %vm2736_vm13, %v7838_v2  ;;  %v2368_v20 = vpop.xlane.xlu2 %2367  ;;  %v2594_v56 = vsel %vm2593_vm7, %v2017_v41, %v2018_v52  ;;  %v2479_v36 = vand.u32 65535, %v7862_v34  ;;  %v7864_v41 = vld [vmem:[#allocation22_spill] sm:$0xff] }
 0x330   : > { %v2466_v59 = vsel %vm2465_vm12, %v2461_v30, inf  ;;  %3516 = vst.msk [vmem:[%s7004_s29 + $0x38] sm:$0xff] %vm510_vm0, %v3435_v3  ;;  %v3709_v26 = vsub.f32 %v3435_v3, %v4565_v43  ;;  %2583 = vmin.xlane.f32.xlu2 %v7235_v23  ;;  %v2369_v7 = vcvt.f32.s32 %v2368_v20  ;;  %vm2595_vm15 = vcmp.lt.s32.totalorder %v2594_v56, %v2019_v39  ;;  %v4566_v30 = vld [vmem:[%s4910_s15 + $0x40] sm:$0xff]  ;;  %v7865_v20 = vld [vmem:[#allocation26_spill] sm:$0xff] }
 0x331   : > { %2467 = vmin.xlane.f32.xlu1 %v2466_v59  ;;  %v3212_v0 = vadd.f32 %v3211_v8, %v3098_v10  ;;  %v2596_v1 = vsel %vm2595_vm15, %v2594_v56, %v2019_v39  ;;  %v2020_v17 = vsel %vm1892_vm14, %v5611_v11, 512  ;;  %v2481_v39 = vcvt.s32.f32 %v2479_v36 }
 0x332   : > { %v1766_v21 = vpop.xlane.xlu0 %1765  ;;  %v3741_v33 = vmul.f32 %v3709_v26, %v3709_v26  ;;  %v2372_v62 = vadd.s32 %v2371_v28, %v2369_v7  ;;  %vm2597_vm6 = vcmp.lt.s32.totalorder %v2596_v1, %v2020_v17 }
 0x333   : > { %vm1893_vm1 = vcmp.eq.f32.partialorder %v7860_v54, %v1766_v21  ;;  %vm1894_vm2 = vcmp.eq.f32.partialorder %v7861_v13, %v1766_v21  ;;  %v3324_v38 = vpop.f32.mrf.mxu2  ;;  %v3437_v60 = vpop.f32.mrf.mxu3  ;;  %vm1895_vm4 = vcmp.eq.f32.partialorder %v7863_v51, %v1766_v21  ;;  %vm1896_vm3 = vcmp.eq.f32.partialorder %v7864_v41, %v1766_v21  ;;  %v7866_v54 = vld [vmem:[#allocation27_spill] sm:$0xff] }
 0x334   : > { %v2021_v4 = vsel %vm1893_vm1, %v5548_v15, 512  ;;  %v2022_v5 = vsel %vm1894_vm2, %v5555_v50, 512  ;;  %v3779_v19 = vsel %vm510_vm0, %v3741_v33, 0.0  ;;  %3558 = vst.msk [vmem:[%s6553_s20 + $0x80] sm:$0xff] %vm3541_vm10, %v2372_v62  ;;  %v3325_v45 = vadd.f32 %v3324_v38, %v3212_v0  ;;  %v3101_v52 = vpop.f32.mrf.mxu0 }
 0x335   : > { %vm2613_vm5 = vcmp.lt.s32.totalorder %v2021_v4, %v2022_v5  ;;  %v3780_v22 = vadd.f32 %v3779_v19, %v3778_v37  ;;  %v3214_v16 = vpop.f32.mrf.mxu1  ;;  %vm2737_vm7 = vcmp.eq.s32.totalorder %v5548_v15, %v2372_v62  ;;  %v7272_v32 = vsel %vm2597_vm6, %v2596_v1, %v2020_v17  ;;  %v7867_v19 = vld [vmem:[#allocation25_spill] sm:$0xff] }
 0x336   : > { %v3438_v57 = vadd.f32 %v3437_v60, %v3325_v45  ;;  %4366 = vmatmul.msk.f32.gmra.mxu0 %vm2737_vm7, %v7838_v2  ;;  %vm2738_vm8 = vcmp.eq.s32.totalorder %v5555_v50, %v2372_v62  ;;  %vm2739_vm9 = vcmp.eq.s32.totalorder %v5568_v49, %v2372_v62  ;;  %v2023_v37 = vsel %vm1895_vm4, %v5568_v49, 512 }
 0x337   : > { %v2600_v10 = vshra.s32 %v7272_v32, 16  ;;  %4398 = vmatmul.msk.f32.gmra.mxu1 %vm2738_vm8, %v7838_v2  ;;  %4430 = vmatmul.msk.f32.gmra.mxu2 %vm2739_vm9, %v7838_v2  ;;  %vm2740_vm11 = vcmp.eq.s32.totalorder %v5611_v11, %v2372_v62  ;;  %v2614_v8 = vsel %vm2613_vm5, %v2021_v4, %v2022_v5  ;;  %v3215_v25 = vadd.f32 %v3214_v16, %v3101_v52  ;;  %v4567_v5 = vld [vmem:[%s4910_s15 + $0x48] sm:$0xff] }
 0x338   : > { %3517 = vst.msk [vmem:[%s7004_s29 + $0x40] sm:$0xff] %vm510_vm0, %v3438_v57  ;;  %v3710_v3 = vsub.f32 %v3438_v57, %v4566_v30  ;;  %4462 = vmatmul.msk.f32.gmra.mxu3 %vm2740_vm11, %v7838_v2  ;;  %v7287_v35 = vpop.xlane.xlu1 %2483  ;;  %vm2615_vm12 = vcmp.lt.s32.totalorder %v2614_v8, %v2023_v37  ;;  %v2024_v56 = vsel %vm1896_vm3, %v5611_v11, 512  ;;  %v2499_v13 = vand.u32 65535, %v7866_v54 }
 0x339   : > { %v7289_v59 = vcvt.s32.f32 %v2600_v10  ;;  %vm2485_vm13 = vcmp.eq.f32.partialorder %v7865_v20, %v7287_v35  ;;  %v2616_v28 = vsel %vm2615_vm12, %v2614_v8, %v2023_v37  ;;  %v2390_v37 = vcvt.f32.s32 %v7031_v18 }
 0x33a   : > { %v3742_v43 = vmul.f32 %v3710_v3, %v3710_v3  ;;  %v2486_v7 = vsel %vm2485_vm13, %v2481_v39, inf  ;;  %vm2617_vm14 = vcmp.lt.s32.totalorder %v2616_v28, %v2024_v56  ;;  %v2501_v34 = vcvt.s32.f32 %v2499_v13 }
 0x33b   : > { %v3327_v26 = vpop.f32.mrf.mxu2  ;;  %2603 = vmin.xlane.f32.xlu1 %v7289_v59  ;;  %2487 = vmin.xlane.f32.xlu0 %v2486_v7  ;;  %v7297_v1 = vsel %vm2617_vm14, %v2616_v28, %v2024_v56  ;;  %v2391_v39 = vshll.u32 %v2390_v37, 16  ;;  %v2410_v54 = vcvt.f32.s32 %v7060_v55 }
 0x33c   : > { %v3328_v0 = vadd.f32 %v3327_v26, %v3215_v25  ;;  %v3781_v33 = vsel %vm510_vm0, %v3742_v43, 0.0  ;;  %v3440_v62 = vpop.f32.mrf.mxu3  ;;  %v2620_v4 = vshra.s32 %v7297_v1, 16  ;;  %v4568_v43 = vld [vmem:[%s4910_s15 + $0x50] sm:$0xff] }
 0x33d   : > { %v3782_v21 = vadd.f32 %v3781_v33, %v3780_v22 }
 0x33e   : > { %v3441_v38 = vadd.f32 %v3440_v62, %v3328_v0  ;;  %v7309_v51 = vcvt.s32.f32 %v2620_v4 }
 0x340   : > { %3518 = vst.msk [vmem:[%s7004_s29 + $0x48] sm:$0xff] %vm510_vm0, %v3441_v38  ;;  %v3711_v60 = vsub.f32 %v3441_v38, %v4567_v5  ;;  %v7305_v17 = vpop.xlane.xlu1 %2503 }
 0x341   : > { %vm2505_vm15 = vcmp.eq.f32.partialorder %v7867_v19, %v7305_v17 }
 0x342   : > { %v3743_v36 = vmul.f32 %v3711_v60, %v3711_v60  ;;  %v2506_v45 = vsel %vm2505_vm15, %v2501_v34, inf  ;;  %v2411_v34 = vshll.u32 %v2410_v54, 16  ;;  %v2430_v54 = vcvt.f32.s32 %v7180_v61 }
 0x343   : > { %2507 = vmin.xlane.f32.xlu2 %v2506_v45  ;;  %2623 = vmin.xlane.f32.xlu0 %v7309_v51 }
 0x344   : > { %v3783_v41 = vsel %vm510_vm0, %v3743_v36, 0.0  ;;  %v2431_v61 = vshll.u32 %v2430_v54, 16 }
 0x345   : > { %v3784_v22 = vadd.f32 %v3783_v41, %v3782_v21  ;;  %v4569_v41 = vld [vmem:[%s4910_s15 + $0x58] sm:$0xff] }
 0x367   : > { %v3104_v52 = vpop.f32.mrf.mxu0  ;;  %v3217_v16 = vpop.f32.mrf.mxu1 }
 0x368   : > { %v3218_v57 = vadd.f32 %v3217_v16, %v3104_v52 }
 0x36e   : > { %v3330_v10 = vpop.f32.mrf.mxu2  ;;  %v3443_v30 = vpop.f32.mrf.mxu3 }
 0x36f   : > { %v3331_v8 = vadd.f32 %v3330_v10, %v3218_v57 }
 0x370   : > { %v3107_v56 = vpop.f32.mrf.mxu0  ;;  %v3220_v28 = vpop.f32.mrf.mxu1 }
 0x371   : > { %v2388_v3 = vpop.xlane.xlu2 %2387  ;;  %v3444_v25 = vadd.f32 %v3443_v30, %v3331_v8  ;;  %v3221_v33 = vadd.f32 %v3220_v28, %v3107_v56 }
 0x372   : > { %v2389_v20 = vcvt.f32.s32 %v2388_v3 }
 0x373   : > { %3519 = vst.msk [vmem:[%s7004_s29 + $0x50] sm:$0xff] %vm510_vm0, %v3444_v25  ;;  %v3712_v26 = vsub.f32 %v3444_v25, %v4568_v43  ;;  %v1771_v62 = vpop.xlane.xlu0 %1770  ;;  %v2519_v25 = vand.u32 65535, %v7123_v6  ;;  %v2539_v6 = vand.u32 65535, %v7171_v29 }
 0x374   : > { %v2392_v7 = vadd.s32 %v2391_v39, %v2389_v20  ;;  %vm1897_vm3 = vcmp.eq.f32.partialorder %v7024_v24, %v1771_v62  ;;  %vm1898_vm6 = vcmp.eq.f32.partialorder %v7026_v27, %v1771_v62  ;;  %vm1899_vm7 = vcmp.eq.f32.partialorder %v7028_v31, %v1771_v62 }
 0x375   : > { %v3744_v0 = vmul.f32 %v3712_v26, %v3712_v26  ;;  %v2025_v21 = vsel %vm1897_vm3, %v5548_v15, 512  ;;  %v2026_v38 = vsel %vm1898_vm6, %v5555_v50, 512  ;;  %vm1900_vm8 = vcmp.eq.f32.partialorder %v7038_v14, %v1771_v62  ;;  %v4570_v62 = vld [vmem:[%s4910_s15 + $0x60] sm:$0xff] }
 0x376   : > { %3559 = vst.msk [vmem:[%s6553_s20 + $0x88] sm:$0xff] %vm3541_vm10, %v2392_v7  ;;  %vm2741_vm1 = vcmp.eq.s32.totalorder %v5548_v15, %v2392_v7  ;;  %vm2742_vm2 = vcmp.eq.s32.totalorder %v5555_v50, %v2392_v7  ;;  %vm2743_vm4 = vcmp.eq.s32.totalorder %v5568_v49, %v2392_v7  ;;  %vm2744_vm5 = vcmp.eq.s32.totalorder %v5611_v11, %v2392_v7 }
 0x377   : > { %v3785_v18 = vsel %vm510_vm0, %v3744_v0, 0.0  ;;  %4367 = vmatmul.msk.f32.gmra.mxu0 %vm2741_vm1, %v7838_v2  ;;  %4399 = vmatmul.msk.f32.gmra.mxu1 %vm2742_vm2, %v7838_v2  ;;  %v3333_v4 = vpop.f32.mrf.mxu2  ;;  %vm2633_vm9 = vcmp.lt.s32.totalorder %v2025_v21, %v2026_v38  ;;  %v2027_v27 = vsel %vm1899_vm7, %v5568_v49, 512  ;;  %v3446_v31 = vpop.f32.mrf.mxu3  ;;  %v2028_v19 = vsel %vm1900_vm8, %v5611_v11, 512 }
 0x378   : > { %v3786_v13 = vadd.f32 %v3785_v18, %v3784_v22  ;;  %4431 = vmatmul.msk.f32.gmra.mxu2 %vm2743_vm4, %v7838_v2  ;;  %4463 = vmatmul.msk.f32.gmra.mxu3 %vm2744_vm5, %v7838_v2  ;;  %v3334_v24 = vadd.f32 %v3333_v4, %v3221_v33  ;;  %v2634_v55 = vsel %vm2633_vm9, %v2025_v21, %v2026_v38  ;;  %v2521_v28 = vcvt.s32.f32 %v2519_v25 }
 0x379   : > { %vm2635_vm11 = vcmp.lt.s32.totalorder %v2634_v55, %v2027_v27 }
 0x37a   : > { %v2408_v5 = vpop.xlane.xlu2 %2407  ;;  %v3447_v60 = vadd.f32 %v3446_v31, %v3334_v24  ;;  %v2636_v45 = vsel %vm2635_vm11, %v2634_v55, %v2027_v27  ;;  %v2541_v27 = vcvt.s32.f32 %v2539_v6 }
 0x37b   : > { %v2409_v36 = vcvt.f32.s32 %v2408_v5  ;;  %vm2637_vm12 = vcmp.lt.s32.totalorder %v2636_v45, %v2028_v19 }
 0x37c   : > { %3520 = vst.msk [vmem:[%s7004_s29 + $0x58] sm:$0xff] %vm510_vm0, %v3447_v60  ;;  %v3713_v22 = vsub.f32 %v3447_v60, %v4569_v41  ;;  %v7340_v52 = vsel %vm2637_vm12, %v2636_v45, %v2028_v19  ;;  %v2559_v19 = vand.u32 65535, %v7196_v63 }
 0x37d   : > { %v2412_v14 = vadd.s32 %v2411_v34, %v2409_v36  ;;  %v2640_v57 = vshra.s32 %v7340_v52, 16 }
 0x37e   : > { %v3745_v16 = vmul.f32 %v3713_v22, %v3713_v22 }
 0x37f   : > { %3560 = vst.msk [vmem:[%s6553_s20 + $0x90] sm:$0xff] %vm3541_vm10, %v2412_v14  ;;  %vm2745_vm13 = vcmp.eq.s32.totalorder %v5548_v15, %v2412_v14  ;;  %vm2746_vm14 = vcmp.eq.s32.totalorder %v5555_v50, %v2412_v14  ;;  %vm2747_vm15 = vcmp.eq.s32.totalorder %v5568_v49, %v2412_v14  ;;  %vm2748_vm1 = vcmp.eq.s32.totalorder %v5611_v11, %v2412_v14 }
 0x380   : > { %v3787_v37 = vsel %vm510_vm0, %v3745_v16, 0.0  ;;  %4368 = vmatmul.msk.f32.gmra.mxu0 %vm2745_vm13, %v7838_v2  ;;  %4400 = vmatmul.msk.f32.gmra.mxu1 %vm2746_vm14, %v7838_v2  ;;  %v7352_v10 = vcvt.s32.f32 %v2640_v57  ;;  %v3110_v30 = vpop.f32.mrf.mxu0  ;;  %v3223_v3 = vpop.f32.mrf.mxu1  ;;  %v2561_v57 = vcvt.s32.f32 %v2559_v19 }
 0x381   : > { %v3788_v8 = vadd.f32 %v3787_v37, %v3786_v13  ;;  %4432 = vmatmul.msk.f32.gmra.mxu2 %vm2747_vm15, %v7838_v2  ;;  %4464 = vmatmul.msk.f32.gmra.mxu3 %vm2748_vm1, %v7838_v2  ;;  %v3224_v39 = vadd.f32 %v3223_v3, %v3110_v30  ;;  %v2450_v37 = vcvt.f32.s32 %v7212_v9 }
 0x382   : > { %2643 = vmin.xlane.f32.xlu2 %v7352_v10 }
 0x386   : > { %v7358_v56 = vpop.xlane.xlu1 %2523 }
 0x387   : > { %v3336_v20 = vpop.f32.mrf.mxu2  ;;  %vm2525_vm2 = vcmp.eq.f32.partialorder %v7146_v12, %v7358_v56  ;;  %v3449_v26 = vpop.f32.mrf.mxu3 }
 0x388   : > { %v3337_v43 = vadd.f32 %v3336_v20, %v3224_v39  ;;  %v2526_v7 = vsel %vm2525_vm2, %v2521_v28, inf  ;;  %v4571_v39 = vld [vmem:[%s4910_s15 + $0x68] sm:$0xff] }
 0x389   : > { %2527 = vmin.xlane.f32.xlu1 %v2526_v7 }
 0x38a   : > { %v3450_v0 = vadd.f32 %v3449_v26, %v3337_v43  ;;  %v1776_v33 = vpop.xlane.xlu0 %1775  ;;  %v2451_v43 = vshll.u32 %v2450_v37, 16  ;;  %v2619_v37 = vand.u32 65535, %v7297_v1 }
 0x38b   : > { %vm1901_vm4 = vcmp.eq.f32.partialorder %v7086_v58, %v1776_v33  ;;  %vm1902_vm5 = vcmp.eq.f32.partialorder %v7089_v46, %v1776_v33  ;;  %vm1903_vm3 = vcmp.eq.f32.partialorder %v7092_v47, %v1776_v33  ;;  %vm1904_vm6 = vcmp.eq.f32.partialorder %v7098_v53, %v1776_v33 }
 0x38c   : > { %3521 = vst.msk [vmem:[%s7004_s29 + $0x60] sm:$0xff] %vm510_vm0, %v3450_v0  ;;  %v3714_v18 = vsub.f32 %v3450_v0, %v4570_v62  ;;  %v2029_v12 = vsel %vm1901_vm4, %v5548_v15, 512  ;;  %v2030_v13 = vsel %vm1902_vm5, %v5555_v50, 512  ;;  %v2031_v38 = vsel %vm1903_vm3, %v5568_v49, 512 }
 0x38d   : > { %vm2653_vm7 = vcmp.lt.s32.totalorder %v2029_v12, %v2030_v13  ;;  %v2032_v5 = vsel %vm1904_vm6, %v5611_v11, 512 }
 0x38e   : > { %v3746_v21 = vmul.f32 %v3714_v18, %v3714_v18  ;;  %v3113_v4 = vpop.f32.mrf.mxu0  ;;  %v3226_v46 = vpop.f32.mrf.mxu1  ;;  %v2654_v24 = vsel %vm2653_vm7, %v2029_v12, %v2030_v13  ;;  %v2470_v18 = vcvt.f32.s32 %v7237_v44  ;;  %v2579_v12 = vand.u32 65535, %v7222_v40  ;;  %v4572_v44 = vld [vmem:[%s4910_s15 + $0x70] sm:$0xff] }
 0x38f   : > { %vm2655_vm8 = vcmp.lt.s32.totalorder %v2654_v24, %v2031_v38  ;;  %v3227_v45 = vadd.f32 %v3226_v46, %v3113_v4 }
 0x390   : > { %v3789_v58 = vsel %vm510_vm0, %v3746_v21, 0.0  ;;  %v2428_v29 = vpop.xlane.xlu2 %2427  ;;  %v7375_v31 = vpop.xlane.xlu1 %2543  ;;  %v2656_v53 = vsel %vm2655_vm8, %v2654_v24, %v2031_v38  ;;  %v2471_v4 = vshll.u32 %v2470_v18, 16 }
 0x391   : > { %v3790_v47 = vadd.f32 %v3789_v58, %v3788_v8  ;;  %v2429_v55 = vcvt.f32.s32 %v2428_v29  ;;  %vm2545_vm9 = vcmp.eq.f32.partialorder %v7185_v42, %v7375_v31  ;;  %vm2657_vm11 = vcmp.lt.s32.totalorder %v2656_v53, %v2032_v5 }
 0x392   : > { %v2546_v60 = vsel %vm2545_vm9, %v2541_v27, inf  ;;  %v7380_v36 = vsel %vm2657_vm11, %v2656_v53, %v2032_v5  ;;  %v2581_v58 = vcvt.s32.f32 %v2579_v12 }
 0x393   : > { %v2432_v34 = vadd.s32 %v2431_v61, %v2429_v55  ;;  %2547 = vmin.xlane.f32.xlu0 %v2546_v60  ;;  %v2660_v41 = vshra.s32 %v7380_v36, 16  ;;  %v2490_v55 = vcvt.f32.s32 %v7287_v35 }
 0x395   : > { %3561 = vst.msk [vmem:[%s6553_s20 + $0x98] sm:$0xff] %vm3541_vm10, %v2432_v34  ;;  %v3339_v22 = vpop.f32.mrf.mxu2  ;;  %v3452_v14 = vpop.f32.mrf.mxu3  ;;  %vm2749_vm12 = vcmp.eq.s32.totalorder %v5548_v15, %v2432_v34  ;;  %vm2750_vm13 = vcmp.eq.s32.totalorder %v5555_v50, %v2432_v34  ;;  %vm2751_vm14 = vcmp.eq.s32.totalorder %v5568_v49, %v2432_v34  ;;  %vm2752_vm15 = vcmp.eq.s32.totalorder %v5611_v11, %v2432_v34 }
 0x396   : > { %v3340_v42 = vadd.f32 %v3339_v22, %v3227_v45  ;;  %v7390_v63 = vcvt.s32.f32 %v2660_v41  ;;  %4369 = vmatmul.msk.f32.gmra.mxu0 %vm2749_vm12, %v7838_v2  ;;  %4401 = vmatmul.msk.f32.gmra.mxu1 %vm2750_vm13, %v7838_v2  ;;  %v7394_v16 = vpop.xlane.xlu0 %2563  ;;  %v3116_v30 = vpop.f32.mrf.mxu0  ;;  %v2491_v45 = vshll.u32 %v2490_v55, 16 }
 0x397   : > { %4433 = vmatmul.msk.f32.gmra.mxu2 %vm2751_vm14, %v7838_v2  ;;  %4465 = vmatmul.msk.f32.gmra.mxu3 %vm2752_vm15, %v7838_v2  ;;  %vm2565_vm1 = vcmp.eq.f32.partialorder %v7204_v48, %v7394_v16  ;;  %v3229_v3 = vpop.f32.mrf.mxu1 }
 0x398   : > { %v3453_v8 = vadd.f32 %v3452_v14, %v3340_v42  ;;  %2663 = vmin.xlane.f32.xlu1 %v7390_v63  ;;  %v2566_v25 = vsel %vm2565_vm1, %v2561_v57, inf  ;;  %v3230_v7 = vadd.f32 %v3229_v3, %v3116_v30 }
 0x399   : > { %2567 = vmin.xlane.f32.xlu2 %v2566_v25  ;;  %v2621_v25 = vcvt.s32.f32 %v2619_v37 }
 0x39a   : > { %3522 = vst.msk [vmem:[%s7004_s29 + $0x68] sm:$0xff] %vm510_vm0, %v3453_v8  ;;  %v3715_v20 = vsub.f32 %v3453_v8, %v4571_v39 }
 0x39b   : > { %v2448_v28 = vpop.xlane.xlu2 %2447 }
 0x39c   : > { %v3747_v26 = vmul.f32 %v3715_v20, %v3715_v20  ;;  %v2449_v9 = vcvt.f32.s32 %v2448_v28  ;;  %v4573_v20 = vld [vmem:[%s4910_s15 + $0x78] sm:$0xff] }
 0x39d   : > { %v3342_v0 = vpop.f32.mrf.mxu2  ;;  %v3455_v54 = vpop.f32.mrf.mxu3 }
 0x39e   : > { %v3791_v33 = vsel %vm510_vm0, %v3747_v26, 0.0  ;;  %v2452_v48 = vadd.s32 %v2451_v43, %v2449_v9  ;;  %v3343_v62 = vadd.f32 %v3342_v0, %v3230_v7 }
 0x39f   : > { %v3792_v6 = vadd.f32 %v3791_v33, %v3790_v47 }
 0x3a0   : > { %3562 = vst.msk [vmem:[%s6553_s20 + $0xa0] sm:$0xff] %vm3541_vm10, %v2452_v48  ;;  %v3456_v13 = vadd.f32 %v3455_v54, %v3343_v62  ;;  %vm2753_vm2 = vcmp.eq.s32.totalorder %v5548_v15, %v2452_v48  ;;  %vm2754_vm4 = vcmp.eq.s32.totalorder %v5555_v50, %v2452_v48  ;;  %vm2755_vm5 = vcmp.eq.s32.totalorder %v5568_v49, %v2452_v48  ;;  %v4574_v54 = vld [vmem:[%s4910_s15 + $0x80] sm:$0xff] }
 0x3a1   : > { %4370 = vmatmul.msk.f32.gmra.mxu0 %vm2753_vm2, %v7838_v2  ;;  %4402 = vmatmul.msk.f32.gmra.mxu1 %vm2754_vm4, %v7838_v2  ;;  %vm2756_vm3 = vcmp.eq.s32.totalorder %v5611_v11, %v2452_v48 }
 0x3a2   : > { %3523 = vst.msk [vmem:[%s7004_s29 + $0x70] sm:$0xff] %vm510_vm0, %v3456_v13  ;;  %v3716_v40 = vsub.f32 %v3456_v13, %v4572_v44  ;;  %4434 = vmatmul.msk.f32.gmra.mxu2 %vm2755_vm5, %v7838_v2  ;;  %4466 = vmatmul.msk.f32.gmra.mxu3 %vm2756_vm3, %v7838_v2 }
 0x3a3   : > { %v7421_v38 = vpop.xlane.xlu2 %2583 }
 0x3a4   : > { %v2468_v21 = vpop.xlane.xlu1 %2467  ;;  %v3748_v46 = vmul.f32 %v3716_v40, %v3716_v40  ;;  %vm2585_vm6 = vcmp.eq.f32.partialorder %v7235_v23, %v7421_v38  ;;  %v2599_v23 = vand.u32 65535, %v7272_v32  ;;  %v2510_v32 = vcvt.f32.s32 %v7305_v17 }
 0x3a5   : > { %v2469_v24 = vcvt.f32.s32 %v2468_v21  ;;  %v2586_v47 = vsel %vm2585_vm6, %v2581_v58, inf  ;;  %v2639_v21 = vand.u32 65535, %v7340_v52 }
 0x3a6   : > { %v3793_v27 = vsel %vm510_vm0, %v3748_v46, 0.0  ;;  %2587 = vmin.xlane.f32.xlu0 %v2586_v47  ;;  %v2601_v34 = vcvt.s32.f32 %v2599_v23  ;;  %v2511_v39 = vshll.u32 %v2510_v32, 16 }
 0x3a7   : > { %v2472_v29 = vadd.s32 %v2471_v4, %v2469_v24  ;;  %v3794_v61 = vadd.f32 %v3793_v27, %v3792_v6  ;;  %v2641_v4 = vcvt.s32.f32 %v2639_v21  ;;  %v2530_v27 = vcvt.f32.s32 %v7358_v56 }
 0x3a8   : > { %v2550_v56 = vcvt.f32.s32 %v7375_v31  ;;  %v2659_v31 = vand.u32 65535, %v7380_v36 }
 0x3a9   : > { %3563 = vst.msk [vmem:[%s6553_s20 + $0xa8] sm:$0xff] %vm3541_vm10, %v2472_v29  ;;  %vm2757_vm7 = vcmp.eq.s32.totalorder %v5548_v15, %v2472_v29  ;;  %vm2758_vm8 = vcmp.eq.s32.totalorder %v5555_v50, %v2472_v29  ;;  %vm2759_vm9 = vcmp.eq.s32.totalorder %v5568_v49, %v2472_v29  ;;  %vm2760_vm11 = vcmp.eq.s32.totalorder %v5611_v11, %v2472_v29 }
 0x3aa   : > { %4371 = vmatmul.msk.f32.gmra.mxu0 %vm2757_vm7, %v7838_v2  ;;  %4403 = vmatmul.msk.f32.gmra.mxu1 %vm2758_vm8, %v7838_v2 }
 0x3ab   : > { %4435 = vmatmul.msk.f32.gmra.mxu2 %vm2759_vm9, %v7838_v2  ;;  %4467 = vmatmul.msk.f32.gmra.mxu3 %vm2760_vm11, %v7838_v2  ;;  %v3119_v5 = vpop.f32.mrf.mxu0  ;;  %v3232_v53 = vpop.f32.mrf.mxu1 }
 0x3ac   : > { %v3233_v14 = vadd.f32 %v3232_v53, %v3119_v5  ;;  %v2531_v5 = vshll.u32 %v2530_v27, 16 }
 0x3ae   : > { %v7438_v60 = vpop.xlane.xlu1 %2603  ;;  %v2488_v19 = vpop.xlane.xlu0 %2487 }
 0x3af   : > { %vm2605_vm12 = vcmp.eq.f32.partialorder %v7289_v59, %v7438_v60  ;;  %v2489_v41 = vcvt.f32.s32 %v2488_v19 }
 0x3b0   : > { %v2606_v22 = vsel %vm2605_vm12, %v2601_v34, inf }
 0x3b1   : > { %2607 = vmin.xlane.f32.xlu1 %v2606_v22  ;;  %v2492_v42 = vadd.s32 %v2491_v45, %v2489_v41  ;;  %v4575_v45 = vld [vmem:[%s4910_s15 + $0x88] sm:$0xff] }
 0x3b2   : > { %v3345_v57 = vpop.f32.mrf.mxu2  ;;  %v3458_v35 = vpop.f32.mrf.mxu3 }
 0x3b3   : > { %3564 = vst.msk [vmem:[%s6553_s20 + $0xb0] sm:$0xff] %vm3541_vm10, %v2492_v42  ;;  %v3346_v8 = vadd.f32 %v3345_v57, %v3233_v14  ;;  %vm2761_vm13 = vcmp.eq.s32.totalorder %v5548_v15, %v2492_v42  ;;  %vm2762_vm14 = vcmp.eq.s32.totalorder %v5555_v50, %v2492_v42  ;;  %vm2763_vm15 = vcmp.eq.s32.totalorder %v5568_v49, %v2492_v42  ;;  %v3122_v17 = vpop.f32.mrf.mxu0 }
 0x3b4   : > { %4372 = vmatmul.msk.f32.gmra.mxu0 %vm2761_vm13, %v7838_v2  ;;  %4404 = vmatmul.msk.f32.gmra.mxu1 %vm2762_vm14, %v7838_v2  ;;  %vm2764_vm1 = vcmp.eq.s32.totalorder %v5611_v11, %v2492_v42  ;;  %v3235_v1 = vpop.f32.mrf.mxu1 }
 0x3b5   : > { %v3459_v59 = vadd.f32 %v3458_v35, %v3346_v8  ;;  %4436 = vmatmul.msk.f32.gmra.mxu2 %vm2763_vm15, %v7838_v2  ;;  %4468 = vmatmul.msk.f32.gmra.mxu3 %vm2764_vm1, %v7838_v2  ;;  %v3236_v9 = vadd.f32 %v3235_v1, %v3122_v17  ;;  %v2551_v17 = vshll.u32 %v2550_v56, 16 }
 0x3b6   : > { %v2508_v30 = vpop.xlane.xlu2 %2507  ;;  %v7454_v3 = vpop.xlane.xlu0 %2623 }
 0x3b7   : > { %3524 = vst.msk [vmem:[%s7004_s29 + $0x78] sm:$0xff] %vm510_vm0, %v3459_v59  ;;  %v3717_v28 = vsub.f32 %v3459_v59, %v4573_v20  ;;  %v2509_v43 = vcvt.f32.s32 %v2508_v30  ;;  %vm2625_vm2 = vcmp.eq.f32.partialorder %v7309_v51, %v7454_v3  ;;  %v4576_v20 = vld [vmem:[%s4910_s15 + $0x90] sm:$0xff] }
 0x3b8   : > { %v2626_v26 = vsel %vm2625_vm2, %v2621_v25, inf  ;;  %v2570_v25 = vcvt.f32.s32 %v7394_v16 }
 0x3b9   : > { %v3749_v7 = vmul.f32 %v3717_v28, %v3717_v28  ;;  %v2512_v0 = vadd.s32 %v2511_v39, %v2509_v43  ;;  %2627 = vmin.xlane.f32.xlu2 %v2626_v26 }
 0x3ba   : > { %v3348_v33 = vpop.f32.mrf.mxu2  ;;  %v2571_v16 = vshll.u32 %v2570_v25, 16 }
 0x3bb   : > { %v3795_v48 = vsel %vm510_vm0, %v3749_v7, 0.0  ;;  %3565 = vst.msk [vmem:[%s6553_s20 + $0xb8] sm:$0xff] %vm3541_vm10, %v2512_v0  ;;  %v3349_v62 = vadd.f32 %v3348_v33, %v3236_v9  ;;  %vm2765_vm4 = vcmp.eq.s32.totalorder %v5548_v15, %v2512_v0  ;;  %vm2766_vm5 = vcmp.eq.s32.totalorder %v5555_v50, %v2512_v0  ;;  %v3461_v6 = vpop.f32.mrf.mxu3 }
 0x3bc   : > { %v3796_v18 = vadd.f32 %v3795_v48, %v3794_v61  ;;  %4373 = vmatmul.msk.f32.gmra.mxu0 %vm2765_vm4, %v7838_v2  ;;  %4405 = vmatmul.msk.f32.gmra.mxu1 %vm2766_vm5, %v7838_v2  ;;  %vm2767_vm3 = vcmp.eq.s32.totalorder %v5568_v49, %v2512_v0  ;;  %vm2768_vm6 = vcmp.eq.s32.totalorder %v5611_v11, %v2512_v0  ;;  %v2661_v7 = vcvt.s32.f32 %v2659_v31 }
 0x3bd   : > { %v3462_v51 = vadd.f32 %v3461_v6, %v3349_v62  ;;  %4437 = vmatmul.msk.f32.gmra.mxu2 %vm2767_vm3, %v7838_v2  ;;  %4469 = vmatmul.msk.f32.gmra.mxu3 %vm2768_vm6, %v7838_v2  ;;  %v2590_v6 = vcvt.f32.s32 %v7421_v38  ;;  %v4577_v38 = vld [vmem:[%s4910_s15 + $0x98] sm:$0xff] }
 0x3bf   : > { %3525 = vst.msk [vmem:[%s7004_s29 + $0x80] sm:$0xff] %vm510_vm0, %v3462_v51  ;;  %v3718_v12 = vsub.f32 %v3462_v51, %v4574_v54 }
 0x3c1   : > { %v3750_v13 = vmul.f32 %v3718_v12, %v3718_v12  ;;  %v2591_v12 = vshll.u32 %v2590_v6, 16 }
 0x3c3   : > { %v3797_v44 = vsel %vm510_vm0, %v3750_v13, 0.0 }
 0x3c4   : > { %v3798_v40 = vadd.f32 %v3797_v44, %v3796_v18 }
 0x3f4   : > { %v3125_v46 = vpop.f32.mrf.mxu0  ;;  %v3238_v24 = vpop.f32.mrf.mxu1 }
 0x3f5   : > { %v7477_v58 = vpop.xlane.xlu2 %2643  ;;  %v3239_v29 = vadd.f32 %v3238_v24, %v3125_v46 }
 0x3f6   : > { %vm2645_vm7 = vcmp.eq.f32.partialorder %v7352_v10, %v7477_v58 }
 0x3f7   : > { %v2646_v47 = vsel %vm2645_vm7, %v2641_v4, inf }
 0x3f8   : > { %2647 = vmin.xlane.f32.xlu0 %v2646_v47 }
 0x3fb   : > { %v3351_v61 = vpop.f32.mrf.mxu2  ;;  %v3464_v52 = vpop.f32.mrf.mxu3 }
 0x3fc   : > { %v3352_v23 = vadd.f32 %v3351_v61, %v3239_v29  ;;  %v2528_v55 = vpop.xlane.xlu1 %2527  ;;  %v2610_v29 = vcvt.f32.s32 %v7438_v60 }
 0x3fd   : > { %v2529_v53 = vcvt.f32.s32 %v2528_v55  ;;  %v3128_v22 = vpop.f32.mrf.mxu0  ;;  %v3241_v10 = vpop.f32.mrf.mxu1 }
 0x3fe   : > { %v3465_v34 = vadd.f32 %v3464_v52, %v3352_v23  ;;  %v3242_v32 = vadd.f32 %v3241_v10, %v3128_v22  ;;  %v2630_v10 = vcvt.f32.s32 %v7454_v3 }
 0x3ff   : > { %v2532_v19 = vadd.s32 %v2531_v5, %v2529_v53  ;;  %v2611_v53 = vshll.u32 %v2610_v29, 16 }
 0x400   : > { %3526 = vst.msk [vmem:[%s7004_s29 + $0x88] sm:$0xff] %vm510_vm0, %v3465_v34  ;;  %v3719_v41 = vsub.f32 %v3465_v34, %v4575_v45 }
 0x401   : > { %3566 = vst.msk [vmem:[%s6553_s20 + $0xc0] sm:$0xff] %vm3541_vm10, %v2532_v19  ;;  %vm2769_vm8 = vcmp.eq.s32.totalorder %v5548_v15, %v2532_v19  ;;  %vm2770_vm9 = vcmp.eq.s32.totalorder %v5555_v50, %v2532_v19  ;;  %vm2771_vm11 = vcmp.eq.s32.totalorder %v5568_v49, %v2532_v19  ;;  %vm2772_vm12 = vcmp.eq.s32.totalorder %v5611_v11, %v2532_v19 }
 0x402   : > { %v3751_v14 = vmul.f32 %v3719_v41, %v3719_v41  ;;  %4374 = vmatmul.msk.f32.gmra.mxu0 %vm2769_vm8, %v7838_v2  ;;  %4406 = vmatmul.msk.f32.gmra.mxu1 %vm2770_vm9, %v7838_v2 }
 0x403   : > { %4438 = vmatmul.msk.f32.gmra.mxu2 %vm2771_vm11, %v7838_v2  ;;  %4470 = vmatmul.msk.f32.gmra.mxu3 %vm2772_vm12, %v7838_v2 }
 0x404   : > { %v3799_v42 = vsel %vm510_vm0, %v3751_v14, 0.0  ;;  %v3354_v35 = vpop.f32.mrf.mxu2  ;;  %v3467_v59 = vpop.f32.mrf.mxu3 }
 0x405   : > { %v3800_v57 = vadd.f32 %v3799_v42, %v3798_v40  ;;  %v3355_v37 = vadd.f32 %v3354_v35, %v3242_v32  ;;  %v4578_v42 = vld [vmem:[%s4910_s15 + $0xa0] sm:$0xff] }
 0x406   : > { %v2548_v8 = vpop.xlane.xlu0 %2547 }
 0x407   : > { %v2549_v1 = vcvt.f32.s32 %v2548_v8  ;;  %v3468_v30 = vadd.f32 %v3467_v59, %v3355_v37  ;;  %v2631_v37 = vshll.u32 %v2630_v10, 16 }
 0x409   : > { %v2552_v39 = vadd.s32 %v2551_v17, %v2549_v1  ;;  %3527 = vst.msk [vmem:[%s7004_s29 + $0x90] sm:$0xff] %vm510_vm0, %v3468_v30  ;;  %v3720_v28 = vsub.f32 %v3468_v30, %v4576_v20  ;;  %v4579_v20 = vld [vmem:[%s4910_s15 + $0xa8] sm:$0xff] }
 0x40b   : > { %v7502_v43 = vpop.xlane.xlu1 %2663  ;;  %3567 = vst.msk [vmem:[%s6553_s20 + $0xc8] sm:$0xff] %vm3541_vm10, %v2552_v39  ;;  %v3752_v26 = vmul.f32 %v3720_v28, %v3720_v28  ;;  %vm2773_vm13 = vcmp.eq.s32.totalorder %v5548_v15, %v2552_v39  ;;  %vm2774_vm14 = vcmp.eq.s32.totalorder %v5555_v50, %v2552_v39  ;;  %vm2775_vm15 = vcmp.eq.s32.totalorder %v5568_v49, %v2552_v39 }
 0x40c   : > { %4375 = vmatmul.msk.f32.gmra.mxu0 %vm2773_vm13, %v7838_v2  ;;  %4407 = vmatmul.msk.f32.gmra.mxu1 %vm2774_vm14, %v7838_v2  ;;  %vm2776_vm1 = vcmp.eq.s32.totalorder %v5611_v11, %v2552_v39  ;;  %v2568_v36 = vpop.xlane.xlu2 %2567  ;;  %vm2665_vm2 = vcmp.eq.f32.partialorder %v7390_v63, %v7502_v43 }
 0x40d   : > { %v3801_v9 = vsel %vm510_vm0, %v3752_v26, 0.0  ;;  %4439 = vmatmul.msk.f32.gmra.mxu2 %vm2775_vm15, %v7838_v2  ;;  %4471 = vmatmul.msk.f32.gmra.mxu3 %vm2776_vm1, %v7838_v2  ;;  %v2569_v0 = vcvt.f32.s32 %v2568_v36  ;;  %v2666_v33 = vsel %vm2665_vm2, %v2661_v7, inf }
 0x40e   : > { %v3802_v48 = vadd.f32 %v3801_v9, %v3800_v57  ;;  %2667 = vmin.xlane.f32.xlu1 %v2666_v33 }
 0x40f   : > { %v2572_v62 = vadd.s32 %v2571_v16, %v2569_v0 }
 0x411   : > { %3568 = vst.msk [vmem:[%s6553_s20 + $0xd0] sm:$0xff] %vm3541_vm10, %v2572_v62  ;;  %vm2777_vm4 = vcmp.eq.s32.totalorder %v5548_v15, %v2572_v62  ;;  %vm2778_vm5 = vcmp.eq.s32.totalorder %v5555_v50, %v2572_v62  ;;  %vm2779_vm3 = vcmp.eq.s32.totalorder %v5568_v49, %v2572_v62  ;;  %vm2780_vm6 = vcmp.eq.s32.totalorder %v5611_v11, %v2572_v62 }
 0x413   : > { %v3131_v63 = vpop.f32.mrf.mxu0  ;;  %v3244_v18 = vpop.f32.mrf.mxu1 }
 0x414   : > { %4376 = vmatmul.msk.f32.gmra.mxu0 %vm2777_vm4, %v7838_v2  ;;  %4408 = vmatmul.msk.f32.gmra.mxu1 %vm2778_vm5, %v7838_v2  ;;  %v3245_v51 = vadd.f32 %v3244_v18, %v3131_v63 }
 0x415   : > { %4440 = vmatmul.msk.f32.gmra.mxu2 %vm2779_vm3, %v7838_v2  ;;  %4472 = vmatmul.msk.f32.gmra.mxu3 %vm2780_vm6, %v7838_v2 }
 0x419   : > { %v2588_v54 = vpop.xlane.xlu0 %2587 }
 0x41a   : > { %v2589_v13 = vcvt.f32.s32 %v2588_v54  ;;  %v3357_v44 = vpop.f32.mrf.mxu2  ;;  %v3470_v21 = vpop.f32.mrf.mxu3 }
 0x41b   : > { %v3358_v40 = vadd.f32 %v3357_v44, %v3245_v51  ;;  %v4580_v51 = vld [vmem:[%s4910_s15 + $0xb0] sm:$0xff] }
 0x41c   : > { %v2592_v4 = vadd.s32 %v2591_v12, %v2589_v13 }
 0x41d   : > { %v3471_v46 = vadd.f32 %v3470_v21, %v3358_v40 }
 0x41e   : > { %3569 = vst.msk [vmem:[%s6553_s20 + $0xd8] sm:$0xff] %vm3541_vm10, %v2592_v4  ;;  %vm2781_vm7 = vcmp.eq.s32.totalorder %v5548_v15, %v2592_v4  ;;  %vm2782_vm8 = vcmp.eq.s32.totalorder %v5555_v50, %v2592_v4  ;;  %vm2783_vm9 = vcmp.eq.s32.totalorder %v5568_v49, %v2592_v4  ;;  %vm2784_vm11 = vcmp.eq.s32.totalorder %v5611_v11, %v2592_v4  ;;  %v3134_v47 = vpop.f32.mrf.mxu0  ;;  %v3247_v27 = vpop.f32.mrf.mxu1 }
 0x41f   : > { %3528 = vst.msk [vmem:[%s7004_s29 + $0x98] sm:$0xff] %vm510_vm0, %v3471_v46  ;;  %v3721_v24 = vsub.f32 %v3471_v46, %v4577_v38  ;;  %4377 = vmatmul.msk.f32.gmra.mxu0 %vm2781_vm7, %v7838_v2  ;;  %4409 = vmatmul.msk.f32.gmra.mxu1 %vm2782_vm8, %v7838_v2  ;;  %v3248_v52 = vadd.f32 %v3247_v27, %v3134_v47 }
 0x420   : > { %4441 = vmatmul.msk.f32.gmra.mxu2 %vm2783_vm9, %v7838_v2  ;;  %4473 = vmatmul.msk.f32.gmra.mxu3 %vm2784_vm11, %v7838_v2 }
 0x421   : > { %v3753_v61 = vmul.f32 %v3721_v24, %v3721_v24  ;;  %v4581_v24 = vld [vmem:[%s4910_s15 + $0xb8] sm:$0xff] }
 0x423   : > { %v3803_v23 = vsel %vm510_vm0, %v3753_v61, 0.0 }
 0x424   : > { %v3804_v55 = vadd.f32 %v3803_v23, %v3802_v48  ;;  %v2608_v5 = vpop.xlane.xlu1 %2607  ;;  %v2650_v23 = vcvt.f32.s32 %v7477_v58  ;;  %v2670_v58 = vcvt.f32.s32 %v7502_v43 }
 0x425   : > { %v2609_v34 = vcvt.f32.s32 %v2608_v5  ;;  %v3360_v19 = vpop.f32.mrf.mxu2  ;;  %v3473_v45 = vpop.f32.mrf.mxu3 }
 0x426   : > { %v3361_v41 = vadd.f32 %v3360_v19, %v3248_v52  ;;  %v2651_v52 = vshll.u32 %v2650_v23, 16 }
 0x427   : > { %v2612_v22 = vadd.s32 %v2611_v53, %v2609_v34  ;;  %v3137_v60 = vpop.f32.mrf.mxu0  ;;  %v3250_v56 = vpop.f32.mrf.mxu1 }
 0x428   : > { %v3474_v14 = vadd.f32 %v3473_v45, %v3361_v41  ;;  %v3251_v57 = vadd.f32 %v3250_v56, %v3137_v60  ;;  %v2671_v41 = vshll.u32 %v2670_v58, 16 }
 0x429   : > { %3570 = vst.msk [vmem:[%s6553_s20 + $0xe0] sm:$0xff] %vm3541_vm10, %v2612_v22  ;;  %vm2785_vm12 = vcmp.eq.s32.totalorder %v5548_v15, %v2612_v22  ;;  %vm2786_vm13 = vcmp.eq.s32.totalorder %v5555_v50, %v2612_v22  ;;  %vm2787_vm14 = vcmp.eq.s32.totalorder %v5568_v49, %v2612_v22  ;;  %vm2788_vm15 = vcmp.eq.s32.totalorder %v5611_v11, %v2612_v22 }
 0x42a   : > { %3529 = vst.msk [vmem:[%s7004_s29 + $0xa0] sm:$0xff] %vm510_vm0, %v3474_v14  ;;  %v3722_v32 = vsub.f32 %v3474_v14, %v4578_v42  ;;  %4378 = vmatmul.msk.f32.gmra.mxu0 %vm2785_vm12, %v7838_v2  ;;  %4410 = vmatmul.msk.f32.gmra.mxu1 %vm2786_vm13, %v7838_v2 }
 0x42b   : > { %4442 = vmatmul.msk.f32.gmra.mxu2 %vm2787_vm14, %v7838_v2  ;;  %4474 = vmatmul.msk.f32.gmra.mxu3 %vm2788_vm15, %v7838_v2 }
 0x42c   : > { %v3754_v3 = vmul.f32 %v3722_v32, %v3722_v32  ;;  %v2628_v35 = vpop.xlane.xlu2 %2627 }
 0x42d   : > { %v2629_v59 = vcvt.f32.s32 %v2628_v35 }
 0x42e   : > { %v3363_v8 = vpop.f32.mrf.mxu2  ;;  %v3805_v17 = vsel %vm510_vm0, %v3754_v3, 0.0  ;;  %v3476_v31 = vpop.f32.mrf.mxu3 }
 0x42f   : > { %v3364_v1 = vadd.f32 %v3363_v8, %v3251_v57  ;;  %v3806_v30 = vadd.f32 %v3805_v17, %v3804_v55  ;;  %v2632_v25 = vadd.s32 %v2631_v37, %v2629_v59 }
 0x431   : > { %v3477_v39 = vadd.f32 %v3476_v31, %v3364_v1  ;;  %3571 = vst.msk [vmem:[%s6553_s20 + $0xe8] sm:$0xff] %vm3541_vm10, %v2632_v25  ;;  %vm2789_vm1 = vcmp.eq.s32.totalorder %v5548_v15, %v2632_v25  ;;  %vm2790_vm2 = vcmp.eq.s32.totalorder %v5555_v50, %v2632_v25  ;;  %vm2791_vm4 = vcmp.eq.s32.totalorder %v5568_v49, %v2632_v25  ;;  %v3140_v26 = vpop.f32.mrf.mxu0  ;;  %v3253_v7 = vpop.f32.mrf.mxu1 }
 0x432   : > { %vm2792_vm5 = vcmp.eq.s32.totalorder %v5611_v11, %v2632_v25  ;;  %4379 = vmatmul.msk.f32.gmra.mxu0 %vm2789_vm1, %v7838_v2  ;;  %4411 = vmatmul.msk.f32.gmra.mxu1 %vm2790_vm2, %v7838_v2  ;;  %v3254_v0 = vadd.f32 %v3253_v7, %v3140_v26 }
 0x433   : > { %3530 = vst.msk [vmem:[%s7004_s29 + $0xa8] sm:$0xff] %vm510_vm0, %v3477_v39  ;;  %v3723_v28 = vsub.f32 %v3477_v39, %v4579_v20  ;;  %4443 = vmatmul.msk.f32.gmra.mxu2 %vm2791_vm4, %v7838_v2  ;;  %4475 = vmatmul.msk.f32.gmra.mxu3 %vm2792_vm5, %v7838_v2 }
 0x435   : > { %v3755_v36 = vmul.f32 %v3723_v28, %v3723_v28 }
 0x437   : > { %v3807_v16 = vsel %vm510_vm0, %v3755_v36, 0.0 }
 0x438   : > { %v3808_v9 = vadd.f32 %v3807_v16, %v3806_v30  ;;  %v3366_v33 = vpop.f32.mrf.mxu2  ;;  %v3479_v48 = vpop.f32.mrf.mxu3  ;;  %v4583_v30 = vld [vmem:[%s4910_s15 + $0xc8] sm:$0xff] }
 0x439   : > { %v3367_v62 = vadd.f32 %v3366_v33, %v3254_v0  ;;  %v3143_v18 = vpop.f32.mrf.mxu0  ;;  %v3256_v6 = vpop.f32.mrf.mxu1 }
 0x43a   : > { %v3257_v13 = vadd.f32 %v3256_v6, %v3143_v18 }
 0x43b   : > { %v3480_v63 = vadd.f32 %v3479_v48, %v3367_v62 }
 0x43d   : > { %3531 = vst.msk [vmem:[%s7004_s29 + $0xb0] sm:$0xff] %vm510_vm0, %v3480_v63  ;;  %v3724_v54 = vsub.f32 %v3480_v63, %v4580_v51 }
 0x43f   : > { %v3756_v12 = vmul.f32 %v3724_v54, %v3724_v54 }
 0x440   : > { %v3369_v44 = vpop.f32.mrf.mxu2  ;;  %v3482_v46 = vpop.f32.mrf.mxu3 }
 0x441   : > { %v3809_v40 = vsel %vm510_vm0, %v3756_v12, 0.0  ;;  %v3370_v21 = vadd.f32 %v3369_v44, %v3257_v13  ;;  %v4585_v44 = vld [vmem:[%s4910_s15 + $0xd8] sm:$0xff] }
 0x442   : > { %v3810_v4 = vadd.f32 %v3809_v40, %v3808_v9  ;;  %v4584_v9 = vld [vmem:[%s4910_s15 + $0xd0] sm:$0xff] }
 0x443   : > { %v3483_v38 = vadd.f32 %v3482_v46, %v3370_v21 }
 0x445   : > { %3532 = vst.msk [vmem:[%s7004_s29 + $0xb8] sm:$0xff] %vm510_vm0, %v3483_v38  ;;  %v3725_v47 = vsub.f32 %v3483_v38, %v4581_v24 }
 0x447   : > { %v3757_v27 = vmul.f32 %v3725_v47, %v3725_v47 }
 0x449   : > { %v3811_v29 = vsel %vm510_vm0, %v3757_v27, 0.0 }
 0x44a   : > { %v3812_v61 = vadd.f32 %v3811_v29, %v3810_v4 }
 0x46b   : > { %v2648_v55 = vpop.xlane.xlu0 %2647 }
 0x46c   : > { %v2649_v5 = vcvt.f32.s32 %v2648_v55 }
 0x46e   : > { %v2652_v53 = vadd.s32 %v2651_v52, %v2649_v5  ;;  %v4586_v5 = vld [vmem:[%s4910_s15 + $0xe0] sm:$0xff] }
 0x470   : > { %3572 = vst.msk [vmem:[%s6553_s20 + $0xf0] sm:$0xff] %vm3541_vm10, %v2652_v53  ;;  %vm2793_vm3 = vcmp.eq.s32.totalorder %v5548_v15, %v2652_v53  ;;  %vm2794_vm6 = vcmp.eq.s32.totalorder %v5555_v50, %v2652_v53  ;;  %vm2795_vm7 = vcmp.eq.s32.totalorder %v5568_v49, %v2652_v53  ;;  %vm2796_vm8 = vcmp.eq.s32.totalorder %v5611_v11, %v2652_v53 }
 0x471   : > { %4380 = vmatmul.msk.f32.gmra.mxu0 %vm2793_vm3, %v7838_v2  ;;  %4412 = vmatmul.msk.f32.gmra.mxu1 %vm2794_vm6, %v7838_v2 }
 0x472   : > { %4444 = vmatmul.msk.f32.gmra.mxu2 %vm2795_vm7, %v7838_v2  ;;  %4476 = vmatmul.msk.f32.gmra.mxu3 %vm2796_vm8, %v7838_v2 }
 0x47f   : > { %v3146_v34 = vpop.f32.mrf.mxu0  ;;  %v3259_v19 = vpop.f32.mrf.mxu1 }
 0x480   : > { %v3260_v14 = vadd.f32 %v3259_v19, %v3146_v34 }
 0x481   : > { %v2668_v45 = vpop.xlane.xlu1 %2667 }
 0x482   : > { %v2669_v22 = vcvt.f32.s32 %v2668_v45 }
 0x484   : > { %v2672_v10 = vadd.s32 %v2671_v41, %v2669_v22 }
 0x486   : > { %3573 = vst.msk [vmem:[%s6553_s20 + $0xf8] sm:$0xff] %vm3541_vm10, %v2672_v10  ;;  %v3372_v60 = vpop.f32.mrf.mxu2  ;;  %v3485_v56 = vpop.f32.mrf.mxu3  ;;  %vm2797_vm9 = vcmp.eq.s32.totalorder %v5548_v15, %v2672_v10  ;;  %vm2798_vm11 = vcmp.eq.s32.totalorder %v5555_v50, %v2672_v10  ;;  %vm2799_vm12 = vcmp.eq.s32.totalorder %v5568_v49, %v2672_v10  ;;  %vm2800_vm13 = vcmp.eq.s32.totalorder %v5611_v11, %v2672_v10  ;;  %v4582_v50 = vld [vmem:[%s4910_s15 + $0xc0] sm:$0xff]  ;;  %s4606_s20 = scalar_lea.hbm %s4605_s18, 1024 }
 0x487   : > { %v3373_v43 = vadd.f32 %v3372_v60, %v3260_v14  ;;  %4381 = vmatmul.msk.f32.gmra.mxu0 %vm2797_vm9, %v7838_v2  ;;  %4413 = vmatmul.msk.f32.gmra.mxu1 %vm2798_vm11, %v7838_v2  ;;  %v4587_v60 = vld [vmem:[%s4910_s15 + $0xe8] sm:$0xff]  ;;  %p4607_p11 = scmp.ne.s32.totalorder %s4605_s18, %s4606_s20 }
 0x488   : > { %4445 = vmatmul.msk.f32.gmra.mxu2 %vm2799_vm12, %v7838_v2  ;;  %4477 = vmatmul.msk.f32.gmra.mxu3 %vm2800_vm13, %v7838_v2 }
 0x489   : > { %v3486_v42 = vadd.f32 %v3485_v56, %v3373_v43  ;;  %v3149_v32 = vpop.f32.mrf.mxu0  ;;  %v3262_v15 = vpop.f32.mrf.mxu1  ;;  %p4608_p12 = pnand %p4607_p11, %p4735_p5 }
 0x48a   : > { %v3263_v57 = vadd.f32 %v3262_v15, %v3149_v32 }
 0x48b   : > { %3533 = vst.msk [vmem:[%s7004_s29 + $0xc0] sm:$0xff] %vm510_vm0, %v3486_v42  ;;  %v3726_v49 = vsub.f32 %v3486_v42, %v4582_v50  ;;  %p4609_p13 = pneg %p4608_p12 }
 0x48d   : > { %v3758_v3 = vmul.f32 %v3726_v49, %v3726_v49 }
 0x48f   : > { %v3813_v11 = vsel %vm510_vm0, %v3758_v3, 0.0 }
 0x490   : > { %v3814_v35 = vadd.f32 %v3813_v11, %v3812_v61  ;;  %v3375_v37 = vpop.f32.mrf.mxu2  ;;  %v3488_v8 = vpop.f32.mrf.mxu3 }
 0x491   : > { %v3376_v59 = vadd.f32 %v3375_v37, %v3263_v57  ;;  %v3152_v17 = vpop.f32.mrf.mxu0  ;;  %v3265_v1 = vpop.f32.mrf.mxu1 }
 0x492   : > { %v3266_v39 = vadd.f32 %v3265_v1, %v3152_v17 }
 0x493   : > { %v3489_v2 = vadd.f32 %v3488_v8, %v3376_v59  ;;  %v4588_v59 = vld [vmem:[%s4910_s15 + $0xf0] sm:$0xff] }
 0x495   : > { %3534 = vst.msk [vmem:[%s7004_s29 + $0xc8] sm:$0xff] %vm510_vm0, %v3489_v2  ;;  %v3727_v31 = vsub.f32 %v3489_v2, %v4583_v30 }
 0x497   : > { %v3759_v25 = vmul.f32 %v3727_v31, %v3727_v31 }
 0x498   : > { %v3378_v20 = vpop.f32.mrf.mxu2  ;;  %v3491_v36 = vpop.f32.mrf.mxu3 }
 0x499   : > { %v3815_v28 = vsel %vm510_vm0, %v3759_v25, 0.0  ;;  %v3379_v26 = vadd.f32 %v3378_v20, %v3266_v39  ;;  %v4589_v20 = vld [vmem:[%s4910_s15 + $0xf8] sm:$0xff]  ;;  %s3851_s15 = scalar_lea.sflag [#allocation3], %s285_s17 }
 0x49a   : > { %v3816_v7 = vadd.f32 %v3815_v28, %v3814_v35 }
 0x49b   : > { %v3492_v16 = vadd.f32 %v3491_v36, %v3379_v26 }
 0x49c   : > { %v3155_v33 = vpop.f32.mrf.mxu0  ;;  %v3268_v48 = vpop.f32.mrf.mxu1 }
 0x49d   : > { %3535 = vst.msk [vmem:[%s7004_s29 + $0xd0] sm:$0xff] %vm510_vm0, %v3492_v16  ;;  %v3728_v0 = vsub.f32 %v3492_v16, %v4584_v9  ;;  %v3269_v18 = vadd.f32 %v3268_v48, %v3155_v33 }
 0x49f   : > { %v3760_v62 = vmul.f32 %v3728_v0, %v3728_v0 }
 0x4a1   : > { %v3817_v63 = vsel %vm510_vm0, %v3760_v62, 0.0 }
 0x4a2   : > { %v3818_v6 = vadd.f32 %v3817_v63, %v3816_v7 }
 0x4a3   : > { %v3381_v51 = vpop.f32.mrf.mxu2  ;;  %v3494_v12 = vpop.f32.mrf.mxu3 }
 0x4a4   : > { %v3382_v54 = vadd.f32 %v3381_v51, %v3269_v18 }
 0x4a6   : > { %v3495_v13 = vadd.f32 %v3494_v12, %v3382_v54 }
 0x4a7   : > { %v3158_v4 = vpop.f32.mrf.mxu0  ;;  %v3271_v46 = vpop.f32.mrf.mxu1 }
 0x4a8   : > { %3536 = vst.msk [vmem:[%s7004_s29 + $0xd8] sm:$0xff] %vm510_vm0, %v3495_v13  ;;  %v3729_v40 = vsub.f32 %v3495_v13, %v4585_v44  ;;  %v3272_v47 = vadd.f32 %v3271_v46, %v3158_v4 }
 0x4aa   : > { %v3761_v21 = vmul.f32 %v3729_v40, %v3729_v40 }
 0x4ac   : > { %v3819_v38 = vsel %vm510_vm0, %v3761_v21, 0.0 }
 0x4ad   : > { %v3820_v24 = vadd.f32 %v3819_v38, %v3818_v6 }
 0x4ae   : > { %v3384_v27 = vpop.f32.mrf.mxu2  ;;  %v3497_v61 = vpop.f32.mrf.mxu3 }
 0x4af   : > { %v3385_v29 = vadd.f32 %v3384_v27, %v3272_v47  ;;  %v3161_v55 = vpop.f32.mrf.mxu0  ;;  %v3274_v52 = vpop.f32.mrf.mxu1 }
 0x4b0   : > { %v3275_v34 = vadd.f32 %v3274_v52, %v3161_v55 }
 0x4b1   : > { %v3498_v23 = vadd.f32 %v3497_v61, %v3385_v29 }
 0x4b3   : > { %3537 = vst.msk [vmem:[%s7004_s29 + $0xe0] sm:$0xff] %vm510_vm0, %v3498_v23  ;;  %v3730_v53 = vsub.f32 %v3498_v23, %v4586_v5 }
 0x4b5   : > { %v3762_v58 = vmul.f32 %v3730_v53, %v3730_v53 }
 0x4b6   : > { %v3387_v19 = vpop.f32.mrf.mxu2  ;;  %v3500_v10 = vpop.f32.mrf.mxu3 }
 0x4b7   : > { %v3821_v45 = vsel %vm510_vm0, %v3762_v58, 0.0  ;;  %v3388_v41 = vadd.f32 %v3387_v19, %v3275_v34 }
 0x4b8   : > { %v3822_v22 = vadd.f32 %v3821_v45, %v3820_v24 }
 0x4b9   : > { %v3501_v14 = vadd.f32 %v3500_v10, %v3388_v41 }
 0x4bb   : > { %3538 = vst.msk [vmem:[%s7004_s29 + $0xe8] sm:$0xff] %vm510_vm0, %v3501_v14  ;;  %v3731_v56 = vsub.f32 %v3501_v14, %v4587_v60 }
 0x4bd   : > { %v3763_v43 = vmul.f32 %v3731_v56, %v3731_v56 }
 0x4bf   : > { %v3823_v42 = vsel %vm510_vm0, %v3763_v43, 0.0 }
 0x4c0   : > { %v3824_v32 = vadd.f32 %v3823_v42, %v3822_v22 }
 0x4ee   : > { %v3164_v15 = vpop.f32.mrf.mxu0  ;;  %v3277_v50 = vpop.f32.mrf.mxu1 }
 0x4ef   : > { %v3278_v49 = vadd.f32 %v3277_v50, %v3164_v15 }
 0x4f5   : > { %v3390_v3 = vpop.f32.mrf.mxu2  ;;  %v3503_v57 = vpop.f32.mrf.mxu3 }
 0x4f6   : > { %v3391_v11 = vadd.f32 %v3390_v3, %v3278_v49 }
 0x4f8   : > { %v3504_v35 = vadd.f32 %v3503_v57, %v3391_v11 }
 0x4fa   : > { %3539 = vst.msk [vmem:[%s7004_s29 + $0xf0] sm:$0xff] %vm510_vm0, %v3504_v35  ;;  %v3732_v2 = vsub.f32 %v3504_v35, %v4588_v59 }
 0x4fc   : > { %v3764_v30 = vmul.f32 %v3732_v2, %v3732_v2 }
 0x4fe   : > { %v3825_v26 = vsel %vm510_vm0, %v3764_v30, 0.0 }
 0x4ff   : > { %v3826_v36 = vadd.f32 %v3825_v26, %v3824_v32 }
 0x504   : > { %v3167_v37 = vpop.f32.mrf.mxu0  ;;  %v3280_v8 = vpop.f32.mrf.mxu1 }
 0x505   : > { %v3281_v17 = vadd.f32 %v3280_v8, %v3167_v37 }
 0x50b   : > { %v3393_v1 = vpop.f32.mrf.mxu2  ;;  %v3506_v25 = vpop.f32.mrf.mxu3 }
 0x50c   : > { %v3394_v31 = vadd.f32 %v3393_v1, %v3281_v17 }
 0x50e   : > { %v3507_v39 = vadd.f32 %v3506_v25, %v3394_v31 }
 0x510   : > { %3540 = vst.msk [vmem:[%s7004_s29 + $0xf8] sm:$0xff] %vm510_vm0, %v3507_v39  ;;  %v3733_v28 = vsub.f32 %v3507_v39, %v4589_v20  ;;  %s4610_s29 = scalar_lea.hbm %s7679_s6, 2048 }
 0x511   : > { %p4612_p1 = scmp.lt.s32.totalorder %s4610_s29, %s4606_s20 }
 0x512   : > { %v3765_v7 = vmul.f32 %v3733_v28, %v3733_v28 }
 0x513   : > { %p4613_p2 = por %p4612_p1, %p4611_p0 }
 0x514   : > { %v3827_v16 = vsel %vm510_vm0, %v3765_v7, 0.0 }
 0x515   : > { %v3828_v9 = vadd.f32 %v3827_v16, %v3826_v36  ;;  %p4614_p3 = pnand %p4613_p2, %p4609_p13 }
 0x517   : > { %3829 = vadd.xlane.f32.xlu2 %v3828_v9 }
 0x518   : > { %4617 = shalt.err (!%p4614_p3)
}
 0x519   : > { %s4655_s17 = smov 512   ;;  %s4656_s19 = smov 32  }
 0x51a   : > { %4488 = dma.vmem_to_hbm [thread:$0]  (%p4735_p5), %s3877_s13, 16384, %s3879_s16, %s3851_s15, %s4655_s17, %s4655_s17, %s4656_s19  }
 0x51b   : > { %p313_p4 = scmp.lt.s32.totalorder %s4718_s28, 1 }
 0x51d   : > { %s7875_s28 = smov (!%p313_p4, %s4718_s28), 1 }
 0x51e   : > { %s4029_s0 = sshll.u32 %s7875_s28, 3 }
 0x51f   : > { %s316_s14 = scalar_lea.vmem %s7680_s7, %s4029_s0 }
 0x58a   : > { %v3830_v0 = vpop.xlane.xlu2 %3829 }
 0x58b   : > { %v3831_v33 = vrot.slane %v3830_v0, 4 }
 0x58d   : > { %v3832_v48 = vadd.f32 %v3831_v33, %v3830_v0 }
 0x58f   : > { %v3833_v62 = vrot.slane %v3832_v48, 2 }
 0x591   : > { %v3834_v63 = vadd.f32 %v3833_v62, %v3832_v48 }
 0x593   : > { %v3835_v18 = vrot.slane %v3834_v63, 1 }
 0x595   : > { %v3836_v6 = vadd.f32 %v3835_v18, %v3834_v63 }
 0x597   : > { %4486 = vpush %v3836_v6 }
 0x5c8   : > { %s4487_s18 = spop %4486 }
 0x5c9   : > { %v3838_v51 = vstv %s4487_s18 }
 0x5ca   : > { %3839 = vst [vmem:[%s316_s14] sm:$0xff] %v3838_v51 }
 0x5cb PF: > { %p4494_p5 = scmp.ge.s32.totalorder %s4652_s27, 2  ;;  %s3912_s11 = sand.u32 1, %s4640_s24  }
 0x5cc   : > { %s3913_s13 = scalar_lea.sflag [#allocation3], %s3912_s11 }
 0x5cd   : > { %p4491_p7 = pnand %p4494_p5, %p4739_p6 }
 0x5cf   : > { %p4492_p8 = pneg %p4491_p7 }
 0x5d1   : > { %4635 = dma.done.wait (%p4492_p8), %s3913_s13, 16384  }
 0x5d2   : > { %4637 = vsyncadd (%p4492_p8), %s3913_s13, 4294950912  ;;  %p18_p9 = scmp.ge.s32.totalorder %s4722_s30, 4   ;;  %s7868_s24 = smov %s4644_s25 }
 0x5d3   : > { %s7869_s25 = smov %s4648_s26  ;;  %s7870_s26 = smov %s4733_s10 }
 0x5d4   : > { %s7871_s27 = smov %s4722_s30  ;;  %20 = sbr.rel (!%p18_p9) target bundleno = 5 (0x5), region = 107 }
 0x5d9   :  { %3926 = vsyncpa [#allocation3], 1 }
 0x5da   :  { %3928 = vsyncpa [#allocation3 + $0x1], 1 }

</bundles_post_ra>
